<compile_context>
chip_gen: v6e
topology: v6e:2x2x1
jax: 0.10.0
libtpu: 0.0.40
codegen_flags: <defaults>
</compile_context>

<pallas_src>
import functools
import math

import numpy as np
import jax
import jax.numpy as jnp
from jax.experimental import pallas as pl
from jax.experimental.pallas import tpu as pltpu


# ---------------- fused decoder-stack kernel ----------------

def _decoder_stack_kernel(x_ref, pe_ref, ew_ref, eb_ref, enc_ref,
                          n1a_ref, n1b_ref, wqkv1_ref, bqkv1_ref, wo1_ref, bo1_ref,
                          n2a_ref, n2b_ref, wq2_ref, bq2_ref, wkv2_ref, bkv2_ref,
                          wo2_ref, bo2_ref,
                          n3a_ref, n3b_ref, w1_ref, b1_ref, w2_ref, b2_ref,
                          nfa_ref, nfb_ref,
                          o_ref, state_ref,
                          *, bs, seq_q, seq_kv, heads, d_model, in_size, eps,
                          n_layers):
    bf16 = jnp.bfloat16
    d_k = d_model // heads
    inv_sqrt_dk = 1.0 / math.sqrt(d_k)

    def _norm(x, a, b):
        # torch Norm: alpha * (x - mean) / (std_unbiased + eps) + bias  (exact division)
        mean = jnp.mean(x, axis=-1, keepdims=True)
        var = jnp.sum((x - mean) ** 2, axis=-1, keepdims=True) * (1.0 / (d_model - 1))
        return (x - mean) / (jnp.sqrt(var) + eps) * a + b

    def _split_heads(t, rows_per_b):
        # (bs*rows, d_model) -> (bs*heads, rows, d_k); slices + leading-axis stack
        # (no lane-axis concat anywhere).
        parts = [t[b * rows_per_b:(b + 1) * rows_per_b, h * d_k:(h + 1) * d_k]
                 for b in range(bs) for h in range(heads)]
        return jnp.stack(parts, axis=0)

    def _mha(q2d, k2d, v2d, wo3, bo, rows_kv):
        # q2d: (bs*seq_q, d_model) pre-scaled by 1/sqrt(d_k); k2d/v2d: (bs*rows_kv, d_model)
        q3 = _split_heads(q2d, seq_q).astype(bf16)       # (bs*heads, seq_q, d_k)
        k3 = _split_heads(k2d, rows_kv).astype(bf16)     # (bs*heads, rows_kv, d_k)
        v3 = _split_heads(v2d, rows_kv).astype(bf16)
        # one batched contraction for all (batch, head) pairs
        s = jnp.einsum('bqd,bkd->bqk', q3, k3, preferred_element_type=jnp.float32)
        s = s - jnp.max(s, axis=-1, keepdims=True)       # stable softmax
        p = jnp.exp(s)
        p = p * pl.reciprocal(jnp.sum(p, axis=-1, keepdims=True), approx=True)
        o3 = jnp.einsum('bqk,bkd->bqd', p.astype(bf16), v3,
                        preferred_element_type=jnp.float32)     # (bs*heads, seq_q, d_k)
        # fold the head re-merge into the output projection: sum_h o_h @ Wo_h
        wo_t = jnp.concatenate([wo3] * bs, axis=0)              # (bs*heads, d_k, d_model) bf16
        tmp = jnp.einsum('bqd,bdm->bqm', o3.astype(bf16), wo_t,
                         preferred_element_type=jnp.float32)    # (bs*heads, seq_q, d_model)
        tmp = jnp.sum(tmp.reshape(bs, heads, seq_q, d_model), axis=1)
        return tmp.reshape(bs * seq_q, d_model) + bo

    l = pl.program_id(0)

    # --- embed + positional encoding (only on the first grid step) ---
    @pl.when(l == 0)
    def _embed():
        x0 = x_ref[...].reshape(bs * seq_q, in_size).astype(bf16)
        h = jnp.dot(x0, ew_ref[...], preferred_element_type=jnp.float32) + eb_ref[...]
        pe = jnp.concatenate([pe_ref[...]] * bs, axis=0)        # (bs*seq_q, d_model)
        state_ref[...] = h * math.sqrt(d_model) + pe

    x = state_ref[...]                                          # (bs*seq_q, d_model) f32

    # --- self-attention block ---
    x2 = _norm(x, n1a_ref[0], n1b_ref[0])
    qkv = jnp.dot(x2.astype(bf16), wqkv1_ref[0],
                  preferred_element_type=jnp.float32) + bqkv1_ref[0]
    q = qkv[:, :d_model] * inv_sqrt_dk
    k = qkv[:, d_model:2 * d_model]
    v = qkv[:, 2 * d_model:]
    x = x + _mha(q, k, v, wo1_ref[0], bo1_ref[0], seq_q)

    # --- cross-attention block (K/V from encoder outputs) ---
    x2 = _norm(x, n2a_ref[0], n2b_ref[0])
    e2d = enc_ref[...].reshape(bs * seq_kv, d_model)
    q = (jnp.dot(x2.astype(bf16), wq2_ref[0],
                 preferred_element_type=jnp.float32) + bq2_ref[0]) * inv_sqrt_dk
    kv = jnp.dot(e2d.astype(bf16), wkv2_ref[0],
                 preferred_element_type=jnp.float32) + bkv2_ref[0]
    k = kv[:, :d_model]
    v = kv[:, d_model:]
    x = x + _mha(q, k, v, wo2_ref[0], bo2_ref[0], seq_kv)

    # --- feed-forward block ---
    x2 = _norm(x, n3a_ref[0], n3b_ref[0])
    h1 = jnp.maximum(jnp.dot(x2.astype(bf16), w1_ref[0],
                             preferred_element_type=jnp.float32) + b1_ref[0], 0.0)
    x = x + jnp.dot(h1.astype(bf16), w2_ref[0],
                    preferred_element_type=jnp.float32) + b2_ref[0]

    state_ref[...] = x

    # --- final Norm of the Decoder, only on the last layer step ---
    @pl.when(l == n_layers - 1)
    def _final():
        o_ref[...] = _norm(x, nfa_ref[...], nfb_ref[...]).astype(o_ref.dtype)


# ---------------- jitted forward pass (single pallas_call) ----------------

@functools.partial(jax.jit, static_argnames=("heads",))
def decoder_forward(params, x, e_outputs, pe, heads):
    bs, seq_q, in_size = x.shape
    _, seq_kv, d_model = e_outputs.shape
    n_layers = params["wqkv1"].shape[0]
    d_ff = params["w1"].shape[2]
    d_k = d_model // heads

    kernel = functools.partial(
        _decoder_stack_kernel, bs=bs, seq_q=seq_q, seq_kv=seq_kv, heads=heads,
        d_model=d_model, in_size=in_size, eps=1e-6, n_layers=n_layers)

    def const_spec(shape):
        n_zero = len(shape)
        return pl.BlockSpec(shape, lambda l: (0,) * n_zero)

    def layer_spec(*per_layer_shape):
        n_zero = len(per_layer_shape)
        return pl.BlockSpec((1,) + per_layer_shape, lambda l: (l,) + (0,) * n_zero)

    in_specs = [
        const_spec((bs, seq_q, in_size)),                       # x
        const_spec((seq_q, d_model)),                           # pe[:seq_q]
        const_spec((in_size, d_model)),                         # embed w (bf16)
        const_spec((1, d_model)),                               # embed b
        const_spec((bs, seq_kv, d_model)),                      # e_outputs (resident)
        layer_spec(1, d_model), layer_spec(1, d_model),         # norm1 a, b
        layer_spec(d_model, 3 * d_model), layer_spec(1, 3 * d_model),   # wqkv1, bqkv1
        layer_spec(heads, d_k, d_model), layer_spec(1, d_model),        # wo1, bo1
        layer_spec(1, d_model), layer_spec(1, d_model),         # norm2 a, b
        layer_spec(d_model, d_model), layer_spec(1, d_model),   # wq2, bq2
        layer_spec(d_model, 2 * d_model), layer_spec(1, 2 * d_model),   # wkv2, bkv2
        layer_spec(heads, d_k, d_model), layer_spec(1, d_model),        # wo2, bo2
        layer_spec(1, d_model), layer_spec(1, d_model),         # norm3 a, b
        layer_spec(d_model, d_ff), layer_spec(1, d_ff),         # ff w1, b1
        layer_spec(d_ff, d_model), layer_spec(1, d_model),      # ff w2, b2
        const_spec((1, d_model)), const_spec((1, d_model)),     # final norm a, b
    ]

    args = (x, pe[:seq_q], params["embed_w"], params["embed_b"], e_outputs,
            params["n1a"], params["n1b"], params["wqkv1"], params["bqkv1"],
            params["wo1"], params["bo1"],
            params["n2a"], params["n2b"], params["wq2"], params["bq2"],
            params["wkv2"], params["bkv2"], params["wo2"], params["bo2"],
            params["n3a"], params["n3b"], params["w1"], params["b1"],
            params["w2"], params["b2"],
            params["nf_a"], params["nf_b"])

    # advisory cost estimate so XLA schedules the surrounding graph sensibly
    m_q, m_kv = bs * seq_q, bs * seq_kv
    per_layer_flops = (
        2 * m_q * d_model * 3 * d_model            # fused QKV projection
        + 2 * m_q * d_model * d_model              # cross-attn Q projection
        + 2 * m_kv * d_model * 2 * d_model         # cross-attn fused KV projection
        + 2 * 2 * m_q * d_model * d_model          # two output projections
        + 4 * bs * heads * seq_q * seq_q * d_k     # self-attn QK^T + PV
        + 4 * bs * heads * seq_q * seq_kv * d_k    # cross-attn QK^T + PV
        + 4 * m_q * d_model * d_ff)                # feed-forward
    flops = 2 * m_q * in_size * d_model + n_layers * per_layer_flops

    def _nbytes(a):
        return int(np.prod(a.shape)) * a.dtype.itemsize

    bytes_accessed = (sum(_nbytes(a) for a in jax.tree_util.tree_leaves(params))
                      + _nbytes(x) + _nbytes(e_outputs)
                      + seq_q * d_model * 4 + m_q * d_model * 4)
    cost = pl.CostEstimate(
        flops=int(flops),
        transcendentals=int(n_layers * bs * heads * seq_q * (seq_q + seq_kv)),
        bytes_accessed=int(bytes_accessed))

    out2d = pl.pallas_call(
        kernel,
        out_shape=jax.ShapeDtypeStruct((bs * seq_q, d_model), jnp.float32),
        grid=(n_layers,),
        in_specs=in_specs,
        out_specs=pl.BlockSpec((bs * seq_q, d_model), lambda l: (0, 0)),
        scratch_shapes=[pltpu.VMEM((bs * seq_q, d_model), jnp.float32)],
        compiler_params=pltpu.CompilerParams(
            dimension_semantics=("arbitrary",),
            vmem_limit_bytes=32 * 1024 * 1024),
        cost_estimate=cost,
    )(*args)
    return out2d.reshape(bs, seq_q, d_model)


# ---------------- parameters / buffers (deterministic synthetic init) ----------------

def init_decoder_params(key, d_model, n_layers, heads, in_size, d_ff=2048):
    """Per-layer weights stacked along a leading layer axis; matmul weights in bf16,
    pre-transposed to (K, N); Wo reshaped to (heads, d_k, d_model) for the head-merge fold."""
    d_k = d_model // heads
    bf16 = jnp.bfloat16

    def lin(k, fin, fout, scale=0.05):
        kw, kb = jax.random.split(k)
        return (jax.random.normal(kw, (fin, fout), jnp.float32) * scale,
                jax.random.normal(kb, (1, fout), jnp.float32) * scale)

    keys = jax.random.split(key, 1 + n_layers)
    ew, eb = lin(keys[0], in_size, d_model)

    wqkv1, bqkv1, wo1, bo1 = [], [], [], []
    wq2, bq2, wkv2, bkv2, wo2, bo2 = [], [], [], [], [], []
    w1, b1, w2, b2 = [], [], [], []
    for n in range(n_layers):
        lk = jax.random.split(keys[1 + n], 10)
        q1w, q1b = lin(lk[0], d_model, d_model)
        k1w, k1b = lin(lk[1], d_model, d_model)
        v1w, v1b = lin(lk[2], d_model, d_model)
        o1w, o1b = lin(lk[3], d_model, d_model)
        q2w, q2b = lin(lk[4], d_model, d_model)
        k2w, k2b = lin(lk[5], d_model, d_model)
        v2w, v2b = lin(lk[6], d_model, d_model)
        o2w, o2b = lin(lk[7], d_model, d_model)
        f1w, f1b = lin(lk[8], d_model, d_ff)
        f2w, f2b = lin(lk[9], d_ff, d_model)
        wqkv1.append(jnp.concatenate([q1w, k1w, v1w], axis=1))
        bqkv1.append(jnp.concatenate([q1b, k1b, v1b], axis=1))
        wo1.append(o1w.reshape(heads, d_k, d_model)); bo1.append(o1b)
        wq2.append(q2w); bq2.append(q2b)
        wkv2.append(jnp.concatenate([k2w, v2w], axis=1))
        bkv2.append(jnp.concatenate([k2b, v2b], axis=1))
        wo2.append(o2w.reshape(heads, d_k, d_model)); bo2.append(o2b)
        w1.append(f1w); b1.append(f1b); w2.append(f2w); b2.append(f2b)

    st = lambda xs: jnp.stack(xs, axis=0)
    ones = lambda: jnp.ones((n_layers, 1, d_model), jnp.float32)
    zeros = lambda: jnp.zeros((n_layers, 1, d_model), jnp.float32)
    return {
        "embed_w": ew.astype(bf16), "embed_b": eb,
        "n1a": ones(), "n1b": zeros(),
        "n2a": ones(), "n2b": zeros(),
        "n3a": ones(), "n3b": zeros(),
        "wqkv1": st(wqkv1).astype(bf16), "bqkv1": st(bqkv1),
        "wo1": st(wo1).astype(bf16), "bo1": st(bo1),
        "wq2": st(wq2).astype(bf16), "bq2": st(bq2),
        "wkv2": st(wkv2).astype(bf16), "bkv2": st(bkv2),
        "wo2": st(wo2).astype(bf16), "bo2": st(bo2),
        "w1": st(w1).astype(bf16), "b1": st(b1),
        "w2": st(w2).astype(bf16), "b2": st(b2),
        "nf_a": jnp.ones((1, d_model), jnp.float32),
        "nf_b": jnp.zeros((1, d_model), jnp.float32),
    }


def build_pe(d_model, max_seq_len=512):
    # replicates the reference repo's (non-canonical) exponent exactly
    pe = np.zeros((max_seq_len, d_model), dtype=np.float32)
    for pos in range(max_seq_len):
        for i in range(0, d_model, 2):
            pe[pos, i] = math.sin(pos / 10000 ** (2 * i / d_model))
            pe[pos, i + 1] = math.cos(pos / 10000 ** (2 * (i + 1) / d_model))
    return jnp.asarray(pe)


if __name__ == "__main__":
    # Module-faithful small config: d_model = transformer_d_model * heads = 64,
    # N = 2 layers, heads = 2, decoder in_size = 204 (68*3 landmarks), d_ff = 2048.
    transformer_d_model, heads, N = 32, 2, 2
    d_model = transformer_d_model * heads
    in_size, d_ff = 204, 2048
    bs, seq_trg, seq_src = 2, 8, 8

    key = jax.random.PRNGKey(0)
    kp, kx, ke = jax.random.split(key, 3)
    params = init_decoder_params(kp, d_model, N, heads, in_size, d_ff)
    pe = build_pe(d_model)

    x = jax.random.normal(kx, (bs, seq_trg, in_size), jnp.float32)
    e_outputs = jax.random.normal(ke, (bs, seq_src, d_model), jnp.float32)

    out = decoder_forward(params, x, e_outputs, pe, heads=heads)
    out = jax.block_until_ready(out)
    assert out.shape == (bs, seq_trg, d_model)
    assert bool(jnp.all(jnp.isfinite(out)))
    print("KERNEL_OK")
</pallas_src>

<mosaic_0001>
module attributes {stable_mosaic.version = 11 : i64} {
  func.func @_decoder_stack_kernel(%arg0: i32, %arg1: memref<2x8x204xf32, #tpu.memory_space<vmem>>, %arg2: memref<8x64xf32, #tpu.memory_space<vmem>>, %arg3: memref<204x64xbf16, #tpu.memory_space<vmem>>, %arg4: memref<1x64xf32, #tpu.memory_space<vmem>>, %arg5: memref<2x8x64xf32, #tpu.memory_space<vmem>>, %arg6: memref<1x1x64xf32, #tpu.memory_space<vmem>>, %arg7: memref<1x1x64xf32, #tpu.memory_space<vmem>>, %arg8: memref<1x64x192xbf16, #tpu.memory_space<vmem>>, %arg9: memref<1x1x192xf32, #tpu.memory_space<vmem>>, %arg10: memref<1x2x32x64xbf16, #tpu.memory_space<vmem>>, %arg11: memref<1x1x64xf32, #tpu.memory_space<vmem>>, %arg12: memref<1x1x64xf32, #tpu.memory_space<vmem>>, %arg13: memref<1x1x64xf32, #tpu.memory_space<vmem>>, %arg14: memref<1x64x64xbf16, #tpu.memory_space<vmem>>, %arg15: memref<1x1x64xf32, #tpu.memory_space<vmem>>, %arg16: memref<1x64x128xbf16, #tpu.memory_space<vmem>>, %arg17: memref<1x1x128xf32, #tpu.memory_space<vmem>>, %arg18: memref<1x2x32x64xbf16, #tpu.memory_space<vmem>>, %arg19: memref<1x1x64xf32, #tpu.memory_space<vmem>>, %arg20: memref<1x1x64xf32, #tpu.memory_space<vmem>>, %arg21: memref<1x1x64xf32, #tpu.memory_space<vmem>>, %arg22: memref<1x64x2048xbf16, #tpu.memory_space<vmem>>, %arg23: memref<1x1x2048xf32, #tpu.memory_space<vmem>>, %arg24: memref<1x2048x64xbf16, #tpu.memory_space<vmem>>, %arg25: memref<1x1x64xf32, #tpu.memory_space<vmem>>, %arg26: memref<1x64xf32, #tpu.memory_space<vmem>>, %arg27: memref<1x64xf32, #tpu.memory_space<vmem>>, %arg28: memref<16x64xf32, #tpu.memory_space<vmem>>, %arg29: memref<16x64xf32, #tpu.memory_space<vmem>>) attributes {dimension_semantics = [#tpu.dimension_semantics<arbitrary>], iteration_bounds = array<i64: 2>, scalar_prefetch = 0 : i64, scratch_operands = 1 : i64, tpu.core_type = #tpu.core_type<tc>, window_params = [{pipeline_mode = #tpu.pipeline_mode<synchronous>, transform_indices = @transform_0, window_bounds = array<i64: 2, 8, 204>}, {pipeline_mode = #tpu.pipeline_mode<synchronous>, transform_indices = @transform_1, window_bounds = array<i64: 8, 64>}, {pipeline_mode = #tpu.pipeline_mode<synchronous>, transform_indices = @transform_2, window_bounds = array<i64: 204, 64>}, {pipeline_mode = #tpu.pipeline_mode<synchronous>, transform_indices = @transform_3, window_bounds = array<i64: 1, 64>}, {pipeline_mode = #tpu.pipeline_mode<synchronous>, transform_indices = @transform_4, window_bounds = array<i64: 2, 8, 64>}, {transform_indices = @transform_5, window_bounds = array<i64: 1, 1, 64>}, {transform_indices = @transform_6, window_bounds = array<i64: 1, 1, 64>}, {transform_indices = @transform_7, window_bounds = array<i64: 1, 64, 192>}, {transform_indices = @transform_8, window_bounds = array<i64: 1, 1, 192>}, {transform_indices = @transform_9, window_bounds = array<i64: 1, 2, 32, 64>}, {transform_indices = @transform_10, window_bounds = array<i64: 1, 1, 64>}, {transform_indices = @transform_11, window_bounds = array<i64: 1, 1, 64>}, {transform_indices = @transform_12, window_bounds = array<i64: 1, 1, 64>}, {transform_indices = @transform_13, window_bounds = array<i64: 1, 64, 64>}, {transform_indices = @transform_14, window_bounds = array<i64: 1, 1, 64>}, {transform_indices = @transform_15, window_bounds = array<i64: 1, 64, 128>}, {transform_indices = @transform_16, window_bounds = array<i64: 1, 1, 128>}, {transform_indices = @transform_17, window_bounds = array<i64: 1, 2, 32, 64>}, {transform_indices = @transform_18, window_bounds = array<i64: 1, 1, 64>}, {transform_indices = @transform_19, window_bounds = array<i64: 1, 1, 64>}, {transform_indices = @transform_20, window_bounds = array<i64: 1, 1, 64>}, {transform_indices = @transform_21, window_bounds = array<i64: 1, 64, 2048>}, {transform_indices = @transform_22, window_bounds = array<i64: 1, 1, 2048>}, {transform_indices = @transform_23, window_bounds = array<i64: 1, 2048, 64>}, {transform_indices = @transform_24, window_bounds = array<i64: 1, 1, 64>}, {pipeline_mode = #tpu.pipeline_mode<synchronous>, transform_indices = @transform_25, window_bounds = array<i64: 1, 64>}, {pipeline_mode = #tpu.pipeline_mode<synchronous>, transform_indices = @transform_26, window_bounds = array<i64: 1, 64>}, {pipeline_mode = #tpu.pipeline_mode<synchronous>, transform_indices = @transform_27, window_bounds = array<i64: 16, 64>}]} {
    %c0_i32 = arith.constant 0 : i32
    %0 = arith.cmpi eq, %arg0, %c0_i32 : i32
    %1 = arith.extui %0 : i1 to i32
    %c0_i32_0 = arith.constant 0 : i32
    %2 = arith.cmpi ne, %1, %c0_i32_0 : i32
    scf.if %2 {
      %c0_104 = arith.constant 0 : index
      %c0_105 = arith.constant 0 : index
      %c0_106 = arith.constant 0 : index
      %252 = vector.load %arg1[%c0_104, %c0_105, %c0_106] : memref<2x8x204xf32, #tpu.memory_space<vmem>>, vector<2x8x204xf32>
      %253 = vector.shape_cast %252 : vector<2x8x204xf32> to vector<16x204xf32>
      %254 = arith.truncf %253 : vector<16x204xf32> to vector<16x204xbf16>
      %c0_107 = arith.constant 0 : index
      %c0_108 = arith.constant 0 : index
      %255 = vector.load %arg3[%c0_107, %c0_108] : memref<204x64xbf16, #tpu.memory_space<vmem>>, vector<204x64xbf16>
      %cst_109 = arith.constant dense<0.000000e+00> : vector<16x64xf32>
      %256 = tpu.matmul %254, %255, %cst_109 {dimension_numbers = #tpu.dot_dimension_numbers<[1], [0], [0], [1], [0, 0, 1, 1], [], []>} : vector<16x204xbf16>, vector<204x64xbf16>, vector<16x64xf32> -> vector<16x64xf32>
      %c0_110 = arith.constant 0 : index
      %c0_111 = arith.constant 0 : index
      %257 = vector.load %arg4[%c0_110, %c0_111] : memref<1x64xf32, #tpu.memory_space<vmem>>, vector<1x64xf32>
      %258 = vector.broadcast %257 : vector<1x64xf32> to vector<16x64xf32>
      %259 = arith.addf %256, %258 : vector<16x64xf32>
      %c0_112 = arith.constant 0 : index
      %c0_113 = arith.constant 0 : index
      %260 = vector.load %arg2[%c0_112, %c0_113] : memref<8x64xf32, #tpu.memory_space<vmem>>, vector<8x64xf32>
      %261 = tpu.concatenate %260, %260 in 0 : vector<8x64xf32>, vector<8x64xf32> -> vector<16x64xf32>
      %cst_114 = arith.constant 8.000000e+00 : f32
      %262 = vector.broadcast %cst_114 : f32 to vector<16x64xf32>
      %263 = arith.mulf %259, %262 : vector<16x64xf32>
      %264 = arith.addf %263, %261 : vector<16x64xf32>
      %c0_115 = arith.constant 0 : index
      %c0_116 = arith.constant 0 : index
      %265 = vector.load %arg29[%c0_115, %c0_116] : memref<16x64xf32, #tpu.memory_space<vmem>>, vector<16x64xf32>
      tpu.vector_store %arg29[%c0_115, %c0_116], %264 {strides = array<i32>} : memref<16x64xf32, #tpu.memory_space<vmem>>, vector<16x64xf32>,
    } else {
    }
    %c0 = arith.constant 0 : index
    %c0_1 = arith.constant 0 : index
    %3 = vector.load %arg29[%c0, %c0_1] : memref<16x64xf32, #tpu.memory_space<vmem>>, vector<16x64xf32>
    %c0_2 = arith.constant 0 : index
    %c0_3 = arith.constant 0 : index
    %c0_4 = arith.constant 0 : index
    %4 = vector.load %arg6[%c0_2, %c0_3, %c0_4] : memref<1x1x64xf32, #tpu.memory_space<vmem>>, vector<1x1x64xf32>
    %5 = vector.shape_cast %4 : vector<1x1x64xf32> to vector<1x64xf32>
    %c0_5 = arith.constant 0 : index
    %c0_6 = arith.constant 0 : index
    %c0_7 = arith.constant 0 : index
    %6 = vector.load %arg7[%c0_5, %c0_6, %c0_7] : memref<1x1x64xf32, #tpu.memory_space<vmem>>, vector<1x1x64xf32>
    %7 = vector.shape_cast %6 : vector<1x1x64xf32> to vector<1x64xf32>
    %cst = arith.constant dense<0.000000e+00> : vector<16xf32>
    %8 = vector.multi_reduction <add>, %3, %cst [1] : vector<16x64xf32> to vector<16xf32>
    %9 = vector.shape_cast %8 : vector<16xf32> to vector<16x1xf32>
    %cst_8 = arith.constant 6.400000e+01 : f32
    %10 = vector.broadcast %cst_8 : f32 to vector<16x1xf32>
    %11 = arith.divf %9, %10 : vector<16x1xf32>
    %12 = vector.broadcast %11 : vector<16x1xf32> to vector<16x64xf32>
    %13 = arith.subf %3, %12 : vector<16x64xf32>
    %14 = arith.mulf %13, %13 : vector<16x64xf32>
    %cst_9 = arith.constant dense<0.000000e+00> : vector<16xf32>
    %15 = vector.multi_reduction <add>, %14, %cst_9 [1] : vector<16x64xf32> to vector<16xf32>
    %16 = vector.shape_cast %15 : vector<16xf32> to vector<16x1xf32>
    %cst_10 = arith.constant 0.0158730168 : f32
    %17 = vector.broadcast %cst_10 : f32 to vector<16x1xf32>
    %18 = arith.mulf %16, %17 : vector<16x1xf32>
    %19 = vector.broadcast %11 : vector<16x1xf32> to vector<16x64xf32>
    %20 = arith.subf %3, %19 : vector<16x64xf32>
    %21 = math.sqrt %18 : vector<16x1xf32>
    %cst_11 = arith.constant 9.99999997E-7 : f32
    %22 = vector.broadcast %cst_11 : f32 to vector<16x1xf32>
    %23 = arith.addf %21, %22 : vector<16x1xf32>
    %24 = vector.broadcast %23 : vector<16x1xf32> to vector<16x64xf32>
    %25 = arith.divf %20, %24 : vector<16x64xf32>
    %26 = vector.broadcast %5 : vector<1x64xf32> to vector<16x64xf32>
    %27 = arith.mulf %25, %26 : vector<16x64xf32>
    %28 = vector.broadcast %7 : vector<1x64xf32> to vector<16x64xf32>
    %29 = arith.addf %27, %28 : vector<16x64xf32>
    %30 = arith.truncf %29 : vector<16x64xf32> to vector<16x64xbf16>
    %c0_12 = arith.constant 0 : index
    %c0_13 = arith.constant 0 : index
    %c0_14 = arith.constant 0 : index
    %31 = vector.load %arg8[%c0_12, %c0_13, %c0_14] : memref<1x64x192xbf16, #tpu.memory_space<vmem>>, vector<1x64x192xbf16>
    %32 = vector.shape_cast %31 : vector<1x64x192xbf16> to vector<64x192xbf16>
    %cst_15 = arith.constant dense<0.000000e+00> : vector<16x192xf32>
    %33 = tpu.matmul %30, %32, %cst_15 {dimension_numbers = #tpu.dot_dimension_numbers<[1], [0], [0], [1], [0, 0, 1, 1], [], []>} : vector<16x64xbf16>, vector<64x192xbf16>, vector<16x192xf32> -> vector<16x192xf32>
    %c0_16 = arith.constant 0 : index
    %c0_17 = arith.constant 0 : index
    %c0_18 = arith.constant 0 : index
    %34 = vector.load %arg9[%c0_16, %c0_17, %c0_18] : memref<1x1x192xf32, #tpu.memory_space<vmem>>, vector<1x1x192xf32>
    %35 = vector.shape_cast %34 : vector<1x1x192xf32> to vector<1x192xf32>
    %36 = vector.broadcast %35 : vector<1x192xf32> to vector<16x192xf32>
    %37 = arith.addf %33, %36 : vector<16x192xf32>
    %38 = vector.extract_strided_slice %37 {offsets = [0, 0], sizes = [16, 64], strides = [1, 1]} : vector<16x192xf32> to vector<16x64xf32>
    %cst_19 = arith.constant 0.176776692 : f32
    %39 = vector.broadcast %cst_19 : f32 to vector<16x64xf32>
    %40 = arith.mulf %38, %39 : vector<16x64xf32>
    %41 = vector.extract_strided_slice %37 {offsets = [0, 64], sizes = [16, 64], strides = [1, 1]} : vector<16x192xf32> to vector<16x64xf32>
    %42 = vector.extract_strided_slice %37 {offsets = [0, 128], sizes = [16, 64], strides = [1, 1]} : vector<16x192xf32> to vector<16x64xf32>
    %c0_20 = arith.constant 0 : index
    %c0_21 = arith.constant 0 : index
    %c0_22 = arith.constant 0 : index
    %c0_23 = arith.constant 0 : index
    %43 = vector.load %arg10[%c0_20, %c0_21, %c0_22, %c0_23] : memref<1x2x32x64xbf16, #tpu.memory_space<vmem>>, vector<1x2x32x64xbf16>
    %44 = vector.shape_cast %43 : vector<1x2x32x64xbf16> to vector<2x32x64xbf16>
    %c0_24 = arith.constant 0 : index
    %c0_25 = arith.constant 0 : index
    %c0_26 = arith.constant 0 : index
    %45 = vector.load %arg11[%c0_24, %c0_25, %c0_26] : memref<1x1x64xf32, #tpu.memory_space<vmem>>, vector<1x1x64xf32>
    %46 = vector.shape_cast %45 : vector<1x1x64xf32> to vector<1x64xf32>
    %47 = vector.extract_strided_slice %40 {offsets = [0, 0], sizes = [8, 32], strides = [1, 1]} : vector<16x64xf32> to vector<8x32xf32>
    %48 = vector.extract_strided_slice %40 {offsets = [0, 32], sizes = [8, 32], strides = [1, 1]} : vector<16x64xf32> to vector<8x32xf32>
    %49 = vector.extract_strided_slice %40 {offsets = [8, 0], sizes = [8, 32], strides = [1, 1]} : vector<16x64xf32> to vector<8x32xf32>
    %50 = vector.extract_strided_slice %40 {offsets = [8, 32], sizes = [8, 32], strides = [1, 1]} : vector<16x64xf32> to vector<8x32xf32>
    %51 = vector.shape_cast %47 : vector<8x32xf32> to vector<1x8x32xf32>
    %52 = vector.shape_cast %48 : vector<8x32xf32> to vector<1x8x32xf32>
    %53 = vector.shape_cast %49 : vector<8x32xf32> to vector<1x8x32xf32>
    %54 = vector.shape_cast %50 : vector<8x32xf32> to vector<1x8x32xf32>
    %55 = tpu.concatenate %51, %52, %53, %54 in 0 : vector<1x8x32xf32>, vector<1x8x32xf32>, vector<1x8x32xf32>, vector<1x8x32xf32> -> vector<4x8x32xf32>
    %56 = arith.truncf %55 : vector<4x8x32xf32> to vector<4x8x32xbf16>
    %57 = vector.extract_strided_slice %41 {offsets = [0, 0], sizes = [8, 32], strides = [1, 1]} : vector<16x64xf32> to vector<8x32xf32>
    %58 = vector.extract_strided_slice %41 {offsets = [0, 32], sizes = [8, 32], strides = [1, 1]} : vector<16x64xf32> to vector<8x32xf32>
    %59 = vector.extract_strided_slice %41 {offsets = [8, 0], sizes = [8, 32], strides = [1, 1]} : vector<16x64xf32> to vector<8x32xf32>
    %60 = vector.extract_strided_slice %41 {offsets = [8, 32], sizes = [8, 32], strides = [1, 1]} : vector<16x64xf32> to vector<8x32xf32>
    %61 = vector.shape_cast %57 : vector<8x32xf32> to vector<1x8x32xf32>
    %62 = vector.shape_cast %58 : vector<8x32xf32> to vector<1x8x32xf32>
    %63 = vector.shape_cast %59 : vector<8x32xf32> to vector<1x8x32xf32>
    %64 = vector.shape_cast %60 : vector<8x32xf32> to vector<1x8x32xf32>
    %65 = tpu.concatenate %61, %62, %63, %64 in 0 : vector<1x8x32xf32>, vector<1x8x32xf32>, vector<1x8x32xf32>, vector<1x8x32xf32> -> vector<4x8x32xf32>
    %66 = arith.truncf %65 : vector<4x8x32xf32> to vector<4x8x32xbf16>
    %67 = vector.extract_strided_slice %42 {offsets = [0, 0], sizes = [8, 32], strides = [1, 1]} : vector<16x64xf32> to vector<8x32xf32>
    %68 = vector.extract_strided_slice %42 {offsets = [0, 32], sizes = [8, 32], strides = [1, 1]} : vector<16x64xf32> to vector<8x32xf32>
    %69 = vector.extract_strided_slice %42 {offsets = [8, 0], sizes = [8, 32], strides = [1, 1]} : vector<16x64xf32> to vector<8x32xf32>
    %70 = vector.extract_strided_slice %42 {offsets = [8, 32], sizes = [8, 32], strides = [1, 1]} : vector<16x64xf32> to vector<8x32xf32>
    %71 = vector.shape_cast %67 : vector<8x32xf32> to vector<1x8x32xf32>
    %72 = vector.shape_cast %68 : vector<8x32xf32> to vector<1x8x32xf32>
    %73 = vector.shape_cast %69 : vector<8x32xf32> to vector<1x8x32xf32>
    %74 = vector.shape_cast %70 : vector<8x32xf32> to vector<1x8x32xf32>
    %75 = tpu.concatenate %71, %72, %73, %74 in 0 : vector<1x8x32xf32>, vector<1x8x32xf32>, vector<1x8x32xf32>, vector<1x8x32xf32> -> vector<4x8x32xf32>
    %76 = arith.truncf %75 : vector<4x8x32xf32> to vector<4x8x32xbf16>
    "tpu.trace_start"() <{level = 10 : i32, message = "bqd,bkd->bqk"}> : () -> ()
    %cst_27 = arith.constant dense<0.000000e+00> : vector<4x8x8xf32>
    %77 = tpu.matmul %56, %66, %cst_27 {dimension_numbers = #tpu.dot_dimension_numbers<[2], [2], [1], [1], [0, 0, 0, 1, 1, 1], [0], [0]>} : vector<4x8x32xbf16>, vector<4x8x32xbf16>, vector<4x8x8xf32> -> vector<4x8x8xf32>
    "tpu.trace_stop"() : () -> ()
    %cst_28 = arith.constant dense<0xFF800000> : vector<4x8xf32>
    %78 = vector.multi_reduction <maximumf>, %77, %cst_28 [2] : vector<4x8x8xf32> to vector<4x8xf32>
    %79 = vector.shape_cast %78 : vector<4x8xf32> to vector<4x8x1xf32>
    %80 = vector.broadcast %79 : vector<4x8x1xf32> to vector<4x8x8xf32>
    %81 = arith.subf %77, %80 : vector<4x8x8xf32>
    %82 = math.exp %81 : vector<4x8x8xf32>
    %cst_29 = arith.constant dense<0.000000e+00> : vector<4x8xf32>
    %83 = vector.multi_reduction <add>, %82, %cst_29 [2] : vector<4x8x8xf32> to vector<4x8xf32>
    %84 = vector.shape_cast %83 : vector<4x8xf32> to vector<4x8x1xf32>
    %85 = tpu.reciprocal %84 {approx = true} : vector<4x8x1xf32> -> vector<4x8x1xf32>
    %86 = vector.broadcast %85 : vector<4x8x1xf32> to vector<4x8x8xf32>
    %87 = arith.mulf %82, %86 : vector<4x8x8xf32>
    %88 = arith.truncf %87 : vector<4x8x8xf32> to vector<4x8x8xbf16>
    "tpu.trace_start"() <{level = 10 : i32, message = "bqk,bkd->bqd"}> : () -> ()
    %cst_30 = arith.constant dense<0.000000e+00> : vector<4x8x32xf32>
    %89 = tpu.matmul %88, %76, %cst_30 {dimension_numbers = #tpu.dot_dimension_numbers<[2], [1], [1], [2], [0, 0, 0, 1, 1, 2], [0], [0]>} : vector<4x8x8xbf16>, vector<4x8x32xbf16>, vector<4x8x32xf32> -> vector<4x8x32xf32>
    "tpu.trace_stop"() : () -> ()
    %90 = tpu.concatenate %44, %44 in 0 : vector<2x32x64xbf16>, vector<2x32x64xbf16> -> vector<4x32x64xbf16>
    %91 = arith.truncf %89 : vector<4x8x32xf32> to vector<4x8x32xbf16>
    "tpu.trace_start"() <{level = 10 : i32, message = "bqd,bdm->bqm"}> : () -> ()
    %cst_31 = arith.constant dense<0.000000e+00> : vector<4x8x64xf32>
    %92 = tpu.matmul %91, %90, %cst_31 {dimension_numbers = #tpu.dot_dimension_numbers<[2], [1], [1], [2], [0, 0, 0, 1, 1, 2], [0], [0]>} : vector<4x8x32xbf16>, vector<4x32x64xbf16>, vector<4x8x64xf32> -> vector<4x8x64xf32>
    "tpu.trace_stop"() : () -> ()
    %93 = vector.shape_cast %92 : vector<4x8x64xf32> to vector<2x2x8x64xf32>
    %cst_32 = arith.constant dense<0.000000e+00> : vector<2x8x64xf32>
    %94 = vector.multi_reduction <add>, %93, %cst_32 [1] : vector<2x2x8x64xf32> to vector<2x8x64xf32>
    %95 = vector.shape_cast %94 : vector<2x8x64xf32> to vector<16x64xf32>
    %96 = vector.broadcast %46 : vector<1x64xf32> to vector<16x64xf32>
    %97 = arith.addf %95, %96 : vector<16x64xf32>
    %98 = arith.addf %3, %97 : vector<16x64xf32>
    %c0_33 = arith.constant 0 : index
    %c0_34 = arith.constant 0 : index
    %c0_35 = arith.constant 0 : index
    %99 = vector.load %arg12[%c0_33, %c0_34, %c0_35] : memref<1x1x64xf32, #tpu.memory_space<vmem>>, vector<1x1x64xf32>
    %100 = vector.shape_cast %99 : vector<1x1x64xf32> to vector<1x64xf32>
    %c0_36 = arith.constant 0 : index
    %c0_37 = arith.constant 0 : index
    %c0_38 = arith.constant 0 : index
    %101 = vector.load %arg13[%c0_36, %c0_37, %c0_38] : memref<1x1x64xf32, #tpu.memory_space<vmem>>, vector<1x1x64xf32>
    %102 = vector.shape_cast %101 : vector<1x1x64xf32> to vector<1x64xf32>
    %cst_39 = arith.constant dense<0.000000e+00> : vector<16xf32>
    %103 = vector.multi_reduction <add>, %98, %cst_39 [1] : vector<16x64xf32> to vector<16xf32>
    %104 = vector.shape_cast %103 : vector<16xf32> to vector<16x1xf32>
    %cst_40 = arith.constant 6.400000e+01 : f32
    %105 = vector.broadcast %cst_40 : f32 to vector<16x1xf32>
    %106 = arith.divf %104, %105 : vector<16x1xf32>
    %107 = vector.broadcast %106 : vector<16x1xf32> to vector<16x64xf32>
    %108 = arith.subf %98, %107 : vector<16x64xf32>
    %109 = arith.mulf %108, %108 : vector<16x64xf32>
    %cst_41 = arith.constant dense<0.000000e+00> : vector<16xf32>
    %110 = vector.multi_reduction <add>, %109, %cst_41 [1] : vector<16x64xf32> to vector<16xf32>
    %111 = vector.shape_cast %110 : vector<16xf32> to vector<16x1xf32>
    %cst_42 = arith.constant 0.0158730168 : f32
    %112 = vector.broadcast %cst_42 : f32 to vector<16x1xf32>
    %113 = arith.mulf %111, %112 : vector<16x1xf32>
    %114 = vector.broadcast %106 : vector<16x1xf32> to vector<16x64xf32>
    %115 = arith.subf %98, %114 : vector<16x64xf32>
    %116 = math.sqrt %113 : vector<16x1xf32>
    %cst_43 = arith.constant 9.99999997E-7 : f32
    %117 = vector.broadcast %cst_43 : f32 to vector<16x1xf32>
    %118 = arith.addf %116, %117 : vector<16x1xf32>
    %119 = vector.broadcast %118 : vector<16x1xf32> to vector<16x64xf32>
    %120 = arith.divf %115, %119 : vector<16x64xf32>
    %121 = vector.broadcast %100 : vector<1x64xf32> to vector<16x64xf32>
    %122 = arith.mulf %120, %121 : vector<16x64xf32>
    %123 = vector.broadcast %102 : vector<1x64xf32> to vector<16x64xf32>
    %124 = arith.addf %122, %123 : vector<16x64xf32>
    %c0_44 = arith.constant 0 : index
    %c0_45 = arith.constant 0 : index
    %c0_46 = arith.constant 0 : index
    %125 = vector.load %arg5[%c0_44, %c0_45, %c0_46] : memref<2x8x64xf32, #tpu.memory_space<vmem>>, vector<2x8x64xf32>
    %126 = vector.shape_cast %125 : vector<2x8x64xf32> to vector<16x64xf32>
    %127 = arith.truncf %124 : vector<16x64xf32> to vector<16x64xbf16>
    %c0_47 = arith.constant 0 : index
    %c0_48 = arith.constant 0 : index
    %c0_49 = arith.constant 0 : index
    %128 = vector.load %arg14[%c0_47, %c0_48, %c0_49] : memref<1x64x64xbf16, #tpu.memory_space<vmem>>, vector<1x64x64xbf16>
    %129 = vector.shape_cast %128 : vector<1x64x64xbf16> to vector<64x64xbf16>
    %cst_50 = arith.constant dense<0.000000e+00> : vector<16x64xf32>
    %130 = tpu.matmul %127, %129, %cst_50 {dimension_numbers = #tpu.dot_dimension_numbers<[1], [0], [0], [1], [0, 0, 1, 1], [], []>} : vector<16x64xbf16>, vector<64x64xbf16>, vector<16x64xf32> -> vector<16x64xf32>
    %c0_51 = arith.constant 0 : index
    %c0_52 = arith.constant 0 : index
    %c0_53 = arith.constant 0 : index
    %131 = vector.load %arg15[%c0_51, %c0_52, %c0_53] : memref<1x1x64xf32, #tpu.memory_space<vmem>>, vector<1x1x64xf32>
    %132 = vector.shape_cast %131 : vector<1x1x64xf32> to vector<1x64xf32>
    %133 = vector.broadcast %132 : vector<1x64xf32> to vector<16x64xf32>
    %134 = arith.addf %130, %133 : vector<16x64xf32>
    %cst_54 = arith.constant 0.176776692 : f32
    %135 = vector.broadcast %cst_54 : f32 to vector<16x64xf32>
    %136 = arith.mulf %134, %135 : vector<16x64xf32>
    %137 = arith.truncf %126 : vector<16x64xf32> to vector<16x64xbf16>
    %c0_55 = arith.constant 0 : index
    %c0_56 = arith.constant 0 : index
    %c0_57 = arith.constant 0 : index
    %138 = vector.load %arg16[%c0_55, %c0_56, %c0_57] : memref<1x64x128xbf16, #tpu.memory_space<vmem>>, vector<1x64x128xbf16>
    %139 = vector.shape_cast %138 : vector<1x64x128xbf16> to vector<64x128xbf16>
    %cst_58 = arith.constant dense<0.000000e+00> : vector<16x128xf32>
    %140 = tpu.matmul %137, %139, %cst_58 {dimension_numbers = #tpu.dot_dimension_numbers<[1], [0], [0], [1], [0, 0, 1, 1], [], []>} : vector<16x64xbf16>, vector<64x128xbf16>, vector<16x128xf32> -> vector<16x128xf32>
    %c0_59 = arith.constant 0 : index
    %c0_60 = arith.constant 0 : index
    %c0_61 = arith.constant 0 : index
    %141 = vector.load %arg17[%c0_59, %c0_60, %c0_61] : memref<1x1x128xf32, #tpu.memory_space<vmem>>, vector<1x1x128xf32>
    %142 = vector.shape_cast %141 : vector<1x1x128xf32> to vector<1x128xf32>
    %143 = vector.broadcast %142 : vector<1x128xf32> to vector<16x128xf32>
    %144 = arith.addf %140, %143 : vector<16x128xf32>
    %145 = vector.extract_strided_slice %144 {offsets = [0, 0], sizes = [16, 64], strides = [1, 1]} : vector<16x128xf32> to vector<16x64xf32>
    %146 = vector.extract_strided_slice %144 {offsets = [0, 64], sizes = [16, 64], strides = [1, 1]} : vector<16x128xf32> to vector<16x64xf32>
    %c0_62 = arith.constant 0 : index
    %c0_63 = arith.constant 0 : index
    %c0_64 = arith.constant 0 : index
    %c0_65 = arith.constant 0 : index
    %147 = vector.load %arg18[%c0_62, %c0_63, %c0_64, %c0_65] : memref<1x2x32x64xbf16, #tpu.memory_space<vmem>>, vector<1x2x32x64xbf16>
    %148 = vector.shape_cast %147 : vector<1x2x32x64xbf16> to vector<2x32x64xbf16>
    %c0_66 = arith.constant 0 : index
    %c0_67 = arith.constant 0 : index
    %c0_68 = arith.constant 0 : index
    %149 = vector.load %arg19[%c0_66, %c0_67, %c0_68] : memref<1x1x64xf32, #tpu.memory_space<vmem>>, vector<1x1x64xf32>
    %150 = vector.shape_cast %149 : vector<1x1x64xf32> to vector<1x64xf32>
    %151 = vector.extract_strided_slice %136 {offsets = [0, 0], sizes = [8, 32], strides = [1, 1]} : vector<16x64xf32> to vector<8x32xf32>
    %152 = vector.extract_strided_slice %136 {offsets = [0, 32], sizes = [8, 32], strides = [1, 1]} : vector<16x64xf32> to vector<8x32xf32>
    %153 = vector.extract_strided_slice %136 {offsets = [8, 0], sizes = [8, 32], strides = [1, 1]} : vector<16x64xf32> to vector<8x32xf32>
    %154 = vector.extract_strided_slice %136 {offsets = [8, 32], sizes = [8, 32], strides = [1, 1]} : vector<16x64xf32> to vector<8x32xf32>
    %155 = vector.shape_cast %151 : vector<8x32xf32> to vector<1x8x32xf32>
    %156 = vector.shape_cast %152 : vector<8x32xf32> to vector<1x8x32xf32>
    %157 = vector.shape_cast %153 : vector<8x32xf32> to vector<1x8x32xf32>
    %158 = vector.shape_cast %154 : vector<8x32xf32> to vector<1x8x32xf32>
    %159 = tpu.concatenate %155, %156, %157, %158 in 0 : vector<1x8x32xf32>, vector<1x8x32xf32>, vector<1x8x32xf32>, vector<1x8x32xf32> -> vector<4x8x32xf32>
    %160 = arith.truncf %159 : vector<4x8x32xf32> to vector<4x8x32xbf16>
    %161 = vector.extract_strided_slice %145 {offsets = [0, 0], sizes = [8, 32], strides = [1, 1]} : vector<16x64xf32> to vector<8x32xf32>
    %162 = vector.extract_strided_slice %145 {offsets = [0, 32], sizes = [8, 32], strides = [1, 1]} : vector<16x64xf32> to vector<8x32xf32>
    %163 = vector.extract_strided_slice %145 {offsets = [8, 0], sizes = [8, 32], strides = [1, 1]} : vector<16x64xf32> to vector<8x32xf32>
    %164 = vector.extract_strided_slice %145 {offsets = [8, 32], sizes = [8, 32], strides = [1, 1]} : vector<16x64xf32> to vector<8x32xf32>
    %165 = vector.shape_cast %161 : vector<8x32xf32> to vector<1x8x32xf32>
    %166 = vector.shape_cast %162 : vector<8x32xf32> to vector<1x8x32xf32>
    %167 = vector.shape_cast %163 : vector<8x32xf32> to vector<1x8x32xf32>
    %168 = vector.shape_cast %164 : vector<8x32xf32> to vector<1x8x32xf32>
    %169 = tpu.concatenate %165, %166, %167, %168 in 0 : vector<1x8x32xf32>, vector<1x8x32xf32>, vector<1x8x32xf32>, vector<1x8x32xf32> -> vector<4x8x32xf32>
    %170 = arith.truncf %169 : vector<4x8x32xf32> to vector<4x8x32xbf16>
    %171 = vector.extract_strided_slice %146 {offsets = [0, 0], sizes = [8, 32], strides = [1, 1]} : vector<16x64xf32> to vector<8x32xf32>
    %172 = vector.extract_strided_slice %146 {offsets = [0, 32], sizes = [8, 32], strides = [1, 1]} : vector<16x64xf32> to vector<8x32xf32>
    %173 = vector.extract_strided_slice %146 {offsets = [8, 0], sizes = [8, 32], strides = [1, 1]} : vector<16x64xf32> to vector<8x32xf32>
    %174 = vector.extract_strided_slice %146 {offsets = [8, 32], sizes = [8, 32], strides = [1, 1]} : vector<16x64xf32> to vector<8x32xf32>
    %175 = vector.shape_cast %171 : vector<8x32xf32> to vector<1x8x32xf32>
    %176 = vector.shape_cast %172 : vector<8x32xf32> to vector<1x8x32xf32>
    %177 = vector.shape_cast %173 : vector<8x32xf32> to vector<1x8x32xf32>
    %178 = vector.shape_cast %174 : vector<8x32xf32> to vector<1x8x32xf32>
    %179 = tpu.concatenate %175, %176, %177, %178 in 0 : vector<1x8x32xf32>, vector<1x8x32xf32>, vector<1x8x32xf32>, vector<1x8x32xf32> -> vector<4x8x32xf32>
    %180 = arith.truncf %179 : vector<4x8x32xf32> to vector<4x8x32xbf16>
    "tpu.trace_start"() <{level = 10 : i32, message = "bqd,bkd->bqk"}> : () -> ()
    %cst_69 = arith.constant dense<0.000000e+00> : vector<4x8x8xf32>
    %181 = tpu.matmul %160, %170, %cst_69 {dimension_numbers = #tpu.dot_dimension_numbers<[2], [2], [1], [1], [0, 0, 0, 1, 1, 1], [0], [0]>} : vector<4x8x32xbf16>, vector<4x8x32xbf16>, vector<4x8x8xf32> -> vector<4x8x8xf32>
    "tpu.trace_stop"() : () -> ()
    %cst_70 = arith.constant dense<0xFF800000> : vector<4x8xf32>
    %182 = vector.multi_reduction <maximumf>, %181, %cst_70 [2] : vector<4x8x8xf32> to vector<4x8xf32>
    %183 = vector.shape_cast %182 : vector<4x8xf32> to vector<4x8x1xf32>
    %184 = vector.broadcast %183 : vector<4x8x1xf32> to vector<4x8x8xf32>
    %185 = arith.subf %181, %184 : vector<4x8x8xf32>
    %186 = math.exp %185 : vector<4x8x8xf32>
    %cst_71 = arith.constant dense<0.000000e+00> : vector<4x8xf32>
    %187 = vector.multi_reduction <add>, %186, %cst_71 [2] : vector<4x8x8xf32> to vector<4x8xf32>
    %188 = vector.shape_cast %187 : vector<4x8xf32> to vector<4x8x1xf32>
    %189 = tpu.reciprocal %188 {approx = true} : vector<4x8x1xf32> -> vector<4x8x1xf32>
    %190 = vector.broadcast %189 : vector<4x8x1xf32> to vector<4x8x8xf32>
    %191 = arith.mulf %186, %190 : vector<4x8x8xf32>
    %192 = arith.truncf %191 : vector<4x8x8xf32> to vector<4x8x8xbf16>
    "tpu.trace_start"() <{level = 10 : i32, message = "bqk,bkd->bqd"}> : () -> ()
    %cst_72 = arith.constant dense<0.000000e+00> : vector<4x8x32xf32>
    %193 = tpu.matmul %192, %180, %cst_72 {dimension_numbers = #tpu.dot_dimension_numbers<[2], [1], [1], [2], [0, 0, 0, 1, 1, 2], [0], [0]>} : vector<4x8x8xbf16>, vector<4x8x32xbf16>, vector<4x8x32xf32> -> vector<4x8x32xf32>
    "tpu.trace_stop"() : () -> ()
    %194 = tpu.concatenate %148, %148 in 0 : vector<2x32x64xbf16>, vector<2x32x64xbf16> -> vector<4x32x64xbf16>
    %195 = arith.truncf %193 : vector<4x8x32xf32> to vector<4x8x32xbf16>
    "tpu.trace_start"() <{level = 10 : i32, message = "bqd,bdm->bqm"}> : () -> ()
    %cst_73 = arith.constant dense<0.000000e+00> : vector<4x8x64xf32>
    %196 = tpu.matmul %195, %194, %cst_73 {dimension_numbers = #tpu.dot_dimension_numbers<[2], [1], [1], [2], [0, 0, 0, 1, 1, 2], [0], [0]>} : vector<4x8x32xbf16>, vector<4x32x64xbf16>, vector<4x8x64xf32> -> vector<4x8x64xf32>
    "tpu.trace_stop"() : () -> ()
    %197 = vector.shape_cast %196 : vector<4x8x64xf32> to vector<2x2x8x64xf32>
    %cst_74 = arith.constant dense<0.000000e+00> : vector<2x8x64xf32>
    %198 = vector.multi_reduction <add>, %197, %cst_74 [1] : vector<2x2x8x64xf32> to vector<2x8x64xf32>
    %199 = vector.shape_cast %198 : vector<2x8x64xf32> to vector<16x64xf32>
    %200 = vector.broadcast %150 : vector<1x64xf32> to vector<16x64xf32>
    %201 = arith.addf %199, %200 : vector<16x64xf32>
    %202 = arith.addf %98, %201 : vector<16x64xf32>
    %c0_75 = arith.constant 0 : index
    %c0_76 = arith.constant 0 : index
    %c0_77 = arith.constant 0 : index
    %203 = vector.load %arg20[%c0_75, %c0_76, %c0_77] : memref<1x1x64xf32, #tpu.memory_space<vmem>>, vector<1x1x64xf32>
    %204 = vector.shape_cast %203 : vector<1x1x64xf32> to vector<1x64xf32>
    %c0_78 = arith.constant 0 : index
    %c0_79 = arith.constant 0 : index
    %c0_80 = arith.constant 0 : index
    %205 = vector.load %arg21[%c0_78, %c0_79, %c0_80] : memref<1x1x64xf32, #tpu.memory_space<vmem>>, vector<1x1x64xf32>
    %206 = vector.shape_cast %205 : vector<1x1x64xf32> to vector<1x64xf32>
    %cst_81 = arith.constant dense<0.000000e+00> : vector<16xf32>
    %207 = vector.multi_reduction <add>, %202, %cst_81 [1] : vector<16x64xf32> to vector<16xf32>
    %208 = vector.shape_cast %207 : vector<16xf32> to vector<16x1xf32>
    %cst_82 = arith.constant 6.400000e+01 : f32
    %209 = vector.broadcast %cst_82 : f32 to vector<16x1xf32>
    %210 = arith.divf %208, %209 : vector<16x1xf32>
    %211 = vector.broadcast %210 : vector<16x1xf32> to vector<16x64xf32>
    %212 = arith.subf %202, %211 : vector<16x64xf32>
    %213 = arith.mulf %212, %212 : vector<16x64xf32>
    %cst_83 = arith.constant dense<0.000000e+00> : vector<16xf32>
    %214 = vector.multi_reduction <add>, %213, %cst_83 [1] : vector<16x64xf32> to vector<16xf32>
    %215 = vector.shape_cast %214 : vector<16xf32> to vector<16x1xf32>
    %cst_84 = arith.constant 0.0158730168 : f32
    %216 = vector.broadcast %cst_84 : f32 to vector<16x1xf32>
    %217 = arith.mulf %215, %216 : vector<16x1xf32>
    %218 = vector.broadcast %210 : vector<16x1xf32> to vector<16x64xf32>
    %219 = arith.subf %202, %218 : vector<16x64xf32>
    %220 = math.sqrt %217 : vector<16x1xf32>
    %cst_85 = arith.constant 9.99999997E-7 : f32
    %221 = vector.broadcast %cst_85 : f32 to vector<16x1xf32>
    %222 = arith.addf %220, %221 : vector<16x1xf32>
    %223 = vector.broadcast %222 : vector<16x1xf32> to vector<16x64xf32>
    %224 = arith.divf %219, %223 : vector<16x64xf32>
    %225 = vector.broadcast %204 : vector<1x64xf32> to vector<16x64xf32>
    %226 = arith.mulf %224, %225 : vector<16x64xf32>
    %227 = vector.broadcast %206 : vector<1x64xf32> to vector<16x64xf32>
    %228 = arith.addf %226, %227 : vector<16x64xf32>
    %229 = arith.truncf %228 : vector<16x64xf32> to vector<16x64xbf16>
    %c0_86 = arith.constant 0 : index
    %c0_87 = arith.constant 0 : index
    %c0_88 = arith.constant 0 : index
    %230 = vector.load %arg22[%c0_86, %c0_87, %c0_88] : memref<1x64x2048xbf16, #tpu.memory_space<vmem>>, vector<1x64x2048xbf16>
    %231 = vector.shape_cast %230 : vector<1x64x2048xbf16> to vector<64x2048xbf16>
    %cst_89 = arith.constant dense<0.000000e+00> : vector<16x2048xf32>
    %232 = tpu.matmul %229, %231, %cst_89 {dimension_numbers = #tpu.dot_dimension_numbers<[1], [0], [0], [1], [0, 0, 1, 1], [], []>} : vector<16x64xbf16>, vector<64x2048xbf16>, vector<16x2048xf32> -> vector<16x2048xf32>
    %c0_90 = arith.constant 0 : index
    %c0_91 = arith.constant 0 : index
    %c0_92 = arith.constant 0 : index
    %233 = vector.load %arg23[%c0_90, %c0_91, %c0_92] : memref<1x1x2048xf32, #tpu.memory_space<vmem>>, vector<1x1x2048xf32>
    %234 = vector.shape_cast %233 : vector<1x1x2048xf32> to vector<1x2048xf32>
    %235 = vector.broadcast %234 : vector<1x2048xf32> to vector<16x2048xf32>
    %236 = arith.addf %232, %235 : vector<16x2048xf32>
    %cst_93 = arith.constant 0.000000e+00 : f32
    %237 = vector.broadcast %cst_93 : f32 to vector<16x2048xf32>
    %238 = arith.maximumf %236, %237 : vector<16x2048xf32>
    %239 = arith.truncf %238 : vector<16x2048xf32> to vector<16x2048xbf16>
    %c0_94 = arith.constant 0 : index
    %c0_95 = arith.constant 0 : index
    %c0_96 = arith.constant 0 : index
    %240 = vector.load %arg24[%c0_94, %c0_95, %c0_96] : memref<1x2048x64xbf16, #tpu.memory_space<vmem>>, vector<1x2048x64xbf16>
    %241 = vector.shape_cast %240 : vector<1x2048x64xbf16> to vector<2048x64xbf16>
    %cst_97 = arith.constant dense<0.000000e+00> : vector<16x64xf32>
    %242 = tpu.matmul %239, %241, %cst_97 {dimension_numbers = #tpu.dot_dimension_numbers<[1], [0], [0], [1], [0, 0, 1, 1], [], []>} : vector<16x2048xbf16>, vector<2048x64xbf16>, vector<16x64xf32> -> vector<16x64xf32>
    %243 = arith.addf %202, %242 : vector<16x64xf32>
    %c0_98 = arith.constant 0 : index
    %c0_99 = arith.constant 0 : index
    %c0_100 = arith.constant 0 : index
    %244 = vector.load %arg25[%c0_98, %c0_99, %c0_100] : memref<1x1x64xf32, #tpu.memory_space<vmem>>, vector<1x1x64xf32>
    %245 = vector.shape_cast %244 : vector<1x1x64xf32> to vector<1x64xf32>
    %246 = vector.broadcast %245 : vector<1x64xf32> to vector<16x64xf32>
    %247 = arith.addf %243, %246 : vector<16x64xf32>
    %c0_101 = arith.constant 0 : index
    %c0_102 = arith.constant 0 : index
    %248 = vector.load %arg29[%c0_101, %c0_102] : memref<16x64xf32, #tpu.memory_space<vmem>>, vector<16x64xf32>
    tpu.vector_store %arg29[%c0_101, %c0_102], %247 {strides = array<i32>} : memref<16x64xf32, #tpu.memory_space<vmem>>, vector<16x64xf32>,
    %c1_i32 = arith.constant 1 : i32
    %249 = arith.cmpi eq, %arg0, %c1_i32 : i32
    %250 = arith.extui %249 : i1 to i32
    %c0_i32_103 = arith.constant 0 : i32
    %251 = arith.cmpi ne, %250, %c0_i32_103 : i32
    scf.if %251 {
      %c0_104 = arith.constant 0 : index
      %c0_105 = arith.constant 0 : index
      %252 = vector.load %arg26[%c0_104, %c0_105] : memref<1x64xf32, #tpu.memory_space<vmem>>, vector<1x64xf32>
      %c0_106 = arith.constant 0 : index
      %c0_107 = arith.constant 0 : index
      %253 = vector.load %arg27[%c0_106, %c0_107] : memref<1x64xf32, #tpu.memory_space<vmem>>, vector<1x64xf32>
      %cst_108 = arith.constant dense<0.000000e+00> : vector<16xf32>
      %254 = vector.multi_reduction <add>, %247, %cst_108 [1] : vector<16x64xf32> to vector<16xf32>
      %255 = vector.shape_cast %254 : vector<16xf32> to vector<16x1xf32>
      %cst_109 = arith.constant 6.400000e+01 : f32
      %256 = vector.broadcast %cst_109 : f32 to vector<16x1xf32>
      %257 = arith.divf %255, %256 : vector<16x1xf32>
      %258 = vector.broadcast %257 : vector<16x1xf32> to vector<16x64xf32>
      %259 = arith.subf %247, %258 : vector<16x64xf32>
      %260 = arith.mulf %259, %259 : vector<16x64xf32>
      %cst_110 = arith.constant dense<0.000000e+00> : vector<16xf32>
      %261 = vector.multi_reduction <add>, %260, %cst_110 [1] : vector<16x64xf32> to vector<16xf32>
      %262 = vector.shape_cast %261 : vector<16xf32> to vector<16x1xf32>
      %cst_111 = arith.constant 0.0158730168 : f32
      %263 = vector.broadcast %cst_111 : f32 to vector<16x1xf32>
      %264 = arith.mulf %262, %263 : vector<16x1xf32>
      %265 = vector.broadcast %257 : vector<16x1xf32> to vector<16x64xf32>
      %266 = arith.subf %247, %265 : vector<16x64xf32>
      %267 = math.sqrt %264 : vector<16x1xf32>
      %cst_112 = arith.constant 9.99999997E-7 : f32
      %268 = vector.broadcast %cst_112 : f32 to vector<16x1xf32>
      %269 = arith.addf %267, %268 : vector<16x1xf32>
      %270 = vector.broadcast %269 : vector<16x1xf32> to vector<16x64xf32>
      %271 = arith.divf %266, %270 : vector<16x64xf32>
      %272 = vector.broadcast %252 : vector<1x64xf32> to vector<16x64xf32>
      %273 = arith.mulf %271, %272 : vector<16x64xf32>
      %274 = vector.broadcast %253 : vector<1x64xf32> to vector<16x64xf32>
      %275 = arith.addf %273, %274 : vector<16x64xf32>
      %c0_113 = arith.constant 0 : index
      %c0_114 = arith.constant 0 : index
      %276 = vector.load %arg28[%c0_113, %c0_114] : memref<16x64xf32, #tpu.memory_space<vmem>>, vector<16x64xf32>
      tpu.vector_store %arg28[%c0_113, %c0_114], %275 {strides = array<i32>} : memref<16x64xf32, #tpu.memory_space<vmem>>, vector<16x64xf32>,
    } else {
    }
    return
  }
  func.func @transform_0(%arg0: i32) -> (i32, i32, i32) {
    %c0_i32 = arith.constant 0 : i32
    %c0_i32_0 = arith.constant 0 : i32
    %c0_i32_1 = arith.constant 0 : i32
    %c0_i32_2 = arith.constant 0 : i32
    return %c0_i32, %c0_i32_0, %c0_i32_1 : i32, i32, i32
  }
  func.func @transform_1(%arg0: i32) -> (i32, i32) {
    %c0_i32 = arith.constant 0 : i32
    %c0_i32_0 = arith.constant 0 : i32
    %c0_i32_1 = arith.constant 0 : i32
    return %c0_i32, %c0_i32_0 : i32, i32
  }
  func.func @transform_2(%arg0: i32) -> (i32, i32) {
    %c0_i32 = arith.constant 0 : i32
    %c0_i32_0 = arith.constant 0 : i32
    %c0_i32_1 = arith.constant 0 : i32
    return %c0_i32, %c0_i32_0 : i32, i32
  }
  func.func @transform_3(%arg0: i32) -> (i32, i32) {
    %c0_i32 = arith.constant 0 : i32
    %c0_i32_0 = arith.constant 0 : i32
    %c0_i32_1 = arith.constant 0 : i32
    return %c0_i32, %c0_i32_0 : i32, i32
  }
  func.func @transform_4(%arg0: i32) -> (i32, i32, i32) {
    %c0_i32 = arith.constant 0 : i32
    %c0_i32_0 = arith.constant 0 : i32
    %c0_i32_1 = arith.constant 0 : i32
    %c0_i32_2 = arith.constant 0 : i32
    return %c0_i32, %c0_i32_0, %c0_i32_1 : i32, i32, i32
  }
  func.func @transform_5(%arg0: i32) -> (i32, i32, i32) {
    %c0_i32 = arith.constant 0 : i32
    %c0_i32_0 = arith.constant 0 : i32
    %c0_i32_1 = arith.constant 0 : i32
    return %arg0, %c0_i32, %c0_i32_0 : i32, i32, i32
  }
  func.func @transform_6(%arg0: i32) -> (i32, i32, i32) {
    %c0_i32 = arith.constant 0 : i32
    %c0_i32_0 = arith.constant 0 : i32
    %c0_i32_1 = arith.constant 0 : i32
    return %arg0, %c0_i32, %c0_i32_0 : i32, i32, i32
  }
  func.func @transform_7(%arg0: i32) -> (i32, i32, i32) {
    %c0_i32 = arith.constant 0 : i32
    %c0_i32_0 = arith.constant 0 : i32
    %c0_i32_1 = arith.constant 0 : i32
    return %arg0, %c0_i32, %c0_i32_0 : i32, i32, i32
  }
  func.func @transform_8(%arg0: i32) -> (i32, i32, i32) {
    %c0_i32 = arith.constant 0 : i32
    %c0_i32_0 = arith.constant 0 : i32
    %c0_i32_1 = arith.constant 0 : i32
    return %arg0, %c0_i32, %c0_i32_0 : i32, i32, i32
  }
  func.func @transform_9(%arg0: i32) -> (i32, i32, i32, i32) {
    %c0_i32 = arith.constant 0 : i32
    %c0_i32_0 = arith.constant 0 : i32
    %c0_i32_1 = arith.constant 0 : i32
    %c0_i32_2 = arith.constant 0 : i32
    return %arg0, %c0_i32, %c0_i32_0, %c0_i32_1 : i32, i32, i32, i32
  }
  func.func @transform_10(%arg0: i32) -> (i32, i32, i32) {
    %c0_i32 = arith.constant 0 : i32
    %c0_i32_0 = arith.constant 0 : i32
    %c0_i32_1 = arith.constant 0 : i32
    return %arg0, %c0_i32, %c0_i32_0 : i32, i32, i32
  }
  func.func @transform_11(%arg0: i32) -> (i32, i32, i32) {
    %c0_i32 = arith.constant 0 : i32
    %c0_i32_0 = arith.constant 0 : i32
    %c0_i32_1 = arith.constant 0 : i32
    return %arg0, %c0_i32, %c0_i32_0 : i32, i32, i32
  }
  func.func @transform_12(%arg0: i32) -> (i32, i32, i32) {
    %c0_i32 = arith.constant 0 : i32
    %c0_i32_0 = arith.constant 0 : i32
    %c0_i32_1 = arith.constant 0 : i32
    return %arg0, %c0_i32, %c0_i32_0 : i32, i32, i32
  }
  func.func @transform_13(%arg0: i32) -> (i32, i32, i32) {
    %c0_i32 = arith.constant 0 : i32
    %c0_i32_0 = arith.constant 0 : i32
    %c0_i32_1 = arith.constant 0 : i32
    return %arg0, %c0_i32, %c0_i32_0 : i32, i32, i32
  }
  func.func @transform_14(%arg0: i32) -> (i32, i32, i32) {
    %c0_i32 = arith.constant 0 : i32
    %c0_i32_0 = arith.constant 0 : i32
    %c0_i32_1 = arith.constant 0 : i32
    return %arg0, %c0_i32, %c0_i32_0 : i32, i32, i32
  }
  func.func @transform_15(%arg0: i32) -> (i32, i32, i32) {
    %c0_i32 = arith.constant 0 : i32
    %c0_i32_0 = arith.constant 0 : i32
    %c0_i32_1 = arith.constant 0 : i32
    return %arg0, %c0_i32, %c0_i32_0 : i32, i32, i32
  }
  func.func @transform_16(%arg0: i32) -> (i32, i32, i32) {
    %c0_i32 = arith.constant 0 : i32
    %c0_i32_0 = arith.constant 0 : i32
    %c0_i32_1 = arith.constant 0 : i32
    return %arg0, %c0_i32, %c0_i32_0 : i32, i32, i32
  }
  func.func @transform_17(%arg0: i32) -> (i32, i32, i32, i32) {
    %c0_i32 = arith.constant 0 : i32
    %c0_i32_0 = arith.constant 0 : i32
    %c0_i32_1 = arith.constant 0 : i32
    %c0_i32_2 = arith.constant 0 : i32
    return %arg0, %c0_i32, %c0_i32_0, %c0_i32_1 : i32, i32, i32, i32
  }
  func.func @transform_18(%arg0: i32) -> (i32, i32, i32) {
    %c0_i32 = arith.constant 0 : i32
    %c0_i32_0 = arith.constant 0 : i32
    %c0_i32_1 = arith.constant 0 : i32
    return %arg0, %c0_i32, %c0_i32_0 : i32, i32, i32
  }
  func.func @transform_19(%arg0: i32) -> (i32, i32, i32) {
    %c0_i32 = arith.constant 0 : i32
    %c0_i32_0 = arith.constant 0 : i32
    %c0_i32_1 = arith.constant 0 : i32
    return %arg0, %c0_i32, %c0_i32_0 : i32, i32, i32
  }
  func.func @transform_20(%arg0: i32) -> (i32, i32, i32) {
    %c0_i32 = arith.constant 0 : i32
    %c0_i32_0 = arith.constant 0 : i32
    %c0_i32_1 = arith.constant 0 : i32
    return %arg0, %c0_i32, %c0_i32_0 : i32, i32, i32
  }
  func.func @transform_21(%arg0: i32) -> (i32, i32, i32) {
    %c0_i32 = arith.constant 0 : i32
    %c0_i32_0 = arith.constant 0 : i32
    %c0_i32_1 = arith.constant 0 : i32
    return %arg0, %c0_i32, %c0_i32_0 : i32, i32, i32
  }
  func.func @transform_22(%arg0: i32) -> (i32, i32, i32) {
    %c0_i32 = arith.constant 0 : i32
    %c0_i32_0 = arith.constant 0 : i32
    %c0_i32_1 = arith.constant 0 : i32
    return %arg0, %c0_i32, %c0_i32_0 : i32, i32, i32
  }
  func.func @transform_23(%arg0: i32) -> (i32, i32, i32) {
    %c0_i32 = arith.constant 0 : i32
    %c0_i32_0 = arith.constant 0 : i32
    %c0_i32_1 = arith.constant 0 : i32
    return %arg0, %c0_i32, %c0_i32_0 : i32, i32, i32
  }
  func.func @transform_24(%arg0: i32) -> (i32, i32, i32) {
    %c0_i32 = arith.constant 0 : i32
    %c0_i32_0 = arith.constant 0 : i32
    %c0_i32_1 = arith.constant 0 : i32
    return %arg0, %c0_i32, %c0_i32_0 : i32, i32, i32
  }
  func.func @transform_25(%arg0: i32) -> (i32, i32) {
    %c0_i32 = arith.constant 0 : i32
    %c0_i32_0 = arith.constant 0 : i32
    %c0_i32_1 = arith.constant 0 : i32
    return %c0_i32, %c0_i32_0 : i32, i32
  }
  func.func @transform_26(%arg0: i32) -> (i32, i32) {
    %c0_i32 = arith.constant 0 : i32
    %c0_i32_0 = arith.constant 0 : i32
    %c0_i32_1 = arith.constant 0 : i32
    return %c0_i32, %c0_i32_0 : i32, i32
  }
  func.func @transform_27(%arg0: i32) -> (i32, i32) {
    %c0_i32 = arith.constant 0 : i32
    %c0_i32_0 = arith.constant 0 : i32
    %c0_i32_1 = arith.constant 0 : i32
    return %c0_i32, %c0_i32_0 : i32, i32
  }
}

</mosaic_0001>

<bundles_post_ra>
// kernel: decoder_forward.1
= control target key start
LH: loop header
LB: loop body
LE: loop exit
PB: predicated region body
PF: predicated region fallthrough
CT: control target
= control target key end

     0   :  { %s7695_s0 = inlined_call_operand.vmem [shape: f32[2,8,204], index: 0, kind: input, shape index: {}]   ;;  %s7696_s1 = inlined_call_operand.vmem [shape: f32[8,64], index: 1, kind: input, shape index: {}]   ;;  %s7697_s2 = inlined_call_operand.vmem [shape: bf16[204,64], index: 2, kind: input, shape index: {}]   ;;  %s7698_s3 = inlined_call_operand.vmem [shape: f32[1,64], index: 3, kind: input, shape index: {}]   ;;  %s7699_s4 = inlined_call_operand.vmem [shape: f32[2,8,64], index: 4, kind: input, shape index: {}]   ;;  %s7700_s5 = inlined_call_operand.vmem [shape: f32[2,1,64], index: 5, kind: input, shape index: {}]   ;;  %s7701_s6 = inlined_call_operand.vmem [shape: f32[2,1,64], index: 6, kind: input, shape index: {}]   ;;  %s7702_s7 = inlined_call_operand.vmem [shape: bf16[2,64,192], index: 7, kind: input, shape index: {}]   ;;  %s7703_s8 = inlined_call_operand.vmem [shape: f32[2,1,192], index: 8, kind: input, shape index: {}]   ;;  %s7704_s9 = inlined_call_operand.vmem [shape: bf16[2,2,32,64], index: 9, kind: input, shape index: {}]   ;;  %s7705_s10 = inlined_call_operand.vmem [shape: f32[2,1,64], index: 10, kind: input, shape index: {}]   ;;  %s7706_s11 = inlined_call_operand.vmem [shape: f32[2,1,64], index: 11, kind: input, shape index: {}]   ;;  %s7707_s12 = inlined_call_operand.vmem [shape: f32[2,1,64], index: 12, kind: input, shape index: {}]   ;;  %s7708_s13 = inlined_call_operand.vmem [shape: bf16[2,64,64], index: 13, kind: input, shape index: {}]   ;;  %s7709_s14 = inlined_call_operand.vmem [shape: f32[2,1,64], index: 14, kind: input, shape index: {}]   ;;  %s7710_s15 = inlined_call_operand.vmem [shape: bf16[2,64,128], index: 15, kind: input, shape index: {}]   ;;  %s7711_s16 = inlined_call_operand.vmem [shape: f32[2,1,128], index: 16, kind: input, shape index: {}]   ;;  %s7712_s17 = inlined_call_operand.vmem [shape: bf16[2,2,32,64], index: 17, kind: input, shape index: {}]   ;;  %s7713_s18 = inlined_call_operand.vmem [shape: f32[2,1,64], index: 18, kind: input, shape index: {}]   ;;  %s7714_s19 = inlined_call_operand.vmem [shape: f32[2,1,64], index: 19, kind: input, shape index: {}]   ;;  %s7715_s20 = inlined_call_operand.vmem [shape: f32[2,1,64], index: 20, kind: input, shape index: {}]   ;;  %s7716_s21 = inlined_call_operand.vmem [shape: bf16[2,64,2048], index: 21, kind: input, shape index: {}]   ;;  %s7717_s22 = inlined_call_operand.vmem [shape: f32[2,1,2048], index: 22, kind: input, shape index: {}]   ;;  %s7718_s23 = inlined_call_operand.vmem [shape: bf16[2,2048,64], index: 23, kind: input, shape index: {}]   ;;  %s7719_s24 = inlined_call_operand.vmem [shape: f32[2,1,64], index: 24, kind: input, shape index: {}]   ;;  %s7720_s25 = inlined_call_operand.vmem [shape: f32[1,64], index: 25, kind: input, shape index: {}]   ;;  %s7721_s26 = inlined_call_operand.vmem [shape: f32[1,64], index: 26, kind: input, shape index: {}]   ;;  %s7722_s27 = inlined_call_operand.hbm [shape: f32[16,64], index: 27, kind: output, shape index: {}]  }
   0x1   :  { %7730 = sst [smem:[#allocation9_spill]] %s7695_s0 }
   0x2   :  { %7731 = sst [smem:[#allocation10_spill]] %s7696_s1 }
   0x3   :  { %7732 = sst [smem:[#allocation11_spill]] %s7697_s2 }
   0x4   :  { %7733 = sst [smem:[#allocation12_spill]] %s7698_s3 }
   0x5   :  { %7734 = sst [smem:[#allocation13_spill]] %s7699_s4 }
   0x6   :  { %7735 = sst [smem:[#allocation14_spill]] %s7700_s5 }
   0x7   :  { %7736 = sst [smem:[#allocation15_spill]] %s7701_s6 }
   0x8   :  { %7737 = sst [smem:[#allocation16_spill]] %s7702_s7 }
   0x9   :  { %7738 = sst [smem:[#allocation17_spill]] %s7703_s8 }
   0xa   :  { %7739 = sst [smem:[#allocation18_spill]] %s7704_s9 }
   0xb   :  { %7740 = sst [smem:[#allocation19_spill]] %s7705_s10 }
   0xc   :  { %7741 = sst [smem:[#allocation20_spill]] %s7706_s11 }
   0xd   :  { %7742 = sst [smem:[#allocation21_spill]] %s7708_s13 }
   0xe   :  { %7743 = sst [smem:[#allocation22_spill]] %s7710_s15 }
   0xf   :  { %7744 = sst [smem:[#allocation23_spill]] %s7712_s17 }
  0x10   :  { %7745 = sst [smem:[#allocation24_spill]] %s7715_s20 }
  0x11   :  { %7746 = sst [smem:[#allocation25_spill]] %s7718_s23 }
  0x12   :  { %7747 = sst [smem:[#allocation26_spill]] %s7719_s24 }
  0x13   :  { %7748 = sst [smem:[#allocation27_spill]] %s7720_s25 }
  0x14   :  { %7749 = sst [smem:[#allocation28_spill]] %s7721_s26 }
  0x15   :  { %7750 = sst [smem:[#allocation29_spill]] %s7722_s27 }
  0x16   :  { %32 = vsyncpa [#allocation4], 0  ;;  %s6841_s7 = smov 0  }
  0x17 LB: > { %7751 = sst [smem:[#allocation6_spill]] %s6690_s7  ;;  %s6847_s4 = sadd.s32 4294967295, %s6690_s7   ;;  %s6690_s7 = sphi %s6841_s7, %s38_s7  }
  0x18   : > { %7752 = sst [smem:[#allocation7_spill]] %s6847_s4  ;;  %p5658_p0 = scmp.ge.s32.totalorder %s6690_s7, 1 }
  0x19   : > { %p899_p1 = scmp.lt.s32.totalorder %s6690_s7, 3 }
  0x1b   : > { %p900_p2 = pnand %p5658_p0, %p899_p1 }
  0x1d   : > { %903 = sbr.rel (%p900_p2) target bundleno = 4746 (0x128a), region = 128 }
  0x22   : > { %p1037_p3 = scmp.lt.s32.totalorder %s6847_s4, 1  ;;  %s7755_s30 = sld [smem:[#allocation16_spill]] }
  0x23   : > { %s7757_s26 = sld [smem:[#allocation17_spill]] }
  0x24   : > { %s6853_s8 = scalar_select %p1037_p3, %s6847_s4, 1 }
  0x25   : > { %s7759_s24 = sld [smem:[#allocation18_spill]] }
  0x26   : > { %s5960_s6 = sshll.u32 %s6853_s8, 6  ;;  %s5661_s11 = sshll.u32 %s6853_s8, 1 }
  0x27   : > { %s5961_s5 = sshll.u32 %s6853_s8, 5  ;;  %s7761_s13 = sld [smem:[#allocation21_spill]] }
  0x28   : > { %s6868_s9 = scalar_lea.vmem %s7755_s30, %s5960_s6  ;;  %s7762_s15 = sld [smem:[#allocation22_spill]] }
  0x29   : > { %7756 = sst [smem:[#allocation8_spill]] %s6868_s9  ;;  %s6873_s25 = scalar_lea.vmem %s7757_s26, %s5661_s11 }
  0x2a   : > { %s7763_s17 = sld [smem:[#allocation23_spill]]  ;;  %s5966_s11 = sshll.u32 %s6853_s8, 10 }
  0x2b   : > { %s6883_s23 = scalar_lea.vmem %s7759_s24, %s5961_s5  ;;  %s7765_s29 = sld [smem:[#allocation25_spill]] }
  0x2c   : > { %s7767_s20 = sld [smem:[#allocation7_spill]] }
  0x2d   : > { %s6896_s0 = scalar_lea.vmem %s7761_s13, %s5961_s5  ;;  %s7766_s13 = sld [smem:[#allocation26_spill]] }
  0x2e   : > { %s6905_s1 = scalar_lea.vmem %s7762_s15, %s5961_s5  ;;  %s5965_s15 = sshll.u32 %s6853_s8, 9 }
  0x2f   : > { %s6932_s9 = scalar_lea.vmem %s7716_s21, %s5965_s15 }
  0x30   : > { %s6914_s26 = scalar_lea.vmem %s7763_s17, %s5961_s5  ;;  %s5672_s5 = sshll.u32 %s6853_s8, 4 }
  0x31   : > { %s6938_s7 = scalar_lea.vmem %s7717_s22, %s5672_s5  ;;  %s6944_s4 = scalar_lea.vmem %s7765_s29, %s5966_s11 }
  0x32   : > { %p5675_p4 = scmp.ne.s32.totalorder %s7767_s20, 0 }
  0x33   : > { %s1112_s17 = scalar_lea.vmem %s7766_s13, %s6853_s8  ;;  %s7768_s6 = sld [smem:[#allocation11_spill]] (!%p5675_p4) }
  0x34   : > { %1117 = sbr.rel (%p5675_p4) target bundleno = 314 (0x13a), region = 132  ;;  %s7769_s29 = sld [smem:[#allocation9_spill]] (!%p5675_p4) }
  0x35   : > { %s7770_s15 = sld [smem:[#allocation12_spill]] (!%p5675_p4) }
  0x36   : > { %s7771_s3 = sld [smem:[#allocation10_spill]] (!%p5675_p4) }
  0x39   : > { %v6416_v0 = vld [vmem:[%s7768_s6 + $0x38] sm:$0xff]   ;;  %v6692_v1 = vmov 0   ;;  %v6417_v2 = vld [vmem:[%s7768_s6 + $0x30] sm:$0xff]   ;;  %v6418_v3 = vld [vmem:[%s7768_s6 + $0x28] sm:$0xff]   ;;  %vm1234_vm0 = vcmask 621568   ;;  %vm1238_vm1 = vcmask 1045504  }
  0x3a   : > { %1242 = vmatprep.subr.bf16.mxu0 %v6692_v1  ;;  %v6419_v4 = vld [vmem:[%s7768_s6 + $0x20] sm:$0xff]   ;;  %v1119_v5 = vld [vmem:[%s7769_s29 + $0x8] sm:$0xff]  ;;  %v1121_v6 = vld [vmem:[%s7769_s29 + $0x18] sm:$0xff]  ;;  %vm1288_vm2 = vcmask 523264  }
  0x3b   : > { %1243 = vmatpush1.bf16.msra.mxu0 %v6416_v0  ;;  %v6420_v7 = vld [vmem:[%s7768_s6 + $0x18] sm:$0xff]   ;;  %v1123_v8 = vpack.c.bf16 %v1121_v6, %v1119_v5  ;;  %v6421_v9 = vld [vmem:[%s7768_s6 + $0x10] sm:$0xff]   ;;  %v6422_v10 = vld [vmem:[%s7768_s6 + $0x8] sm:$0xff]  }
  0x3c   : > { %1244 = vmatprep.subr.bf16.mxu0 %v6692_v1  ;;  %v6423_v11 = vld [vmem:[%s7768_s6] sm:$0xff]   ;;  %v6425_v14 = vld [vmem:[%s7768_s6 + $0x58] sm:$0xff]   ;;  %v6426_v15 = vld [vmem:[%s7768_s6 + $0x50] sm:$0xff]  }
  0x3d   : > { %5690 = vmatprep.mubr.msk.bf16.mxu0 %vm1234_vm0, %v1123_v8  ;;  %v6424_v12 = vld [vmem:[%s7768_s6 + $0x60] sm:$0x3f]   ;;  %v6427_v16 = vld [vmem:[%s7768_s6 + $0x48] sm:$0xff]   ;;  %v1120_v19 = vld [vmem:[%s7769_s29 + $0x10] sm:$0xff] }
  0x3e   : > { %v1240_v13 = vsel %vm1238_vm1, %v6424_v12, 0  ;;  %v6428_v17 = vld [vmem:[%s7768_s6 + $0x40] sm:$0xff]  }
  0x3f   : > { %1245 = vmatpush1.bf16.msra.mxu0 %v6417_v2  ;;  %v1118_v18 = vld [vmem:[%s7769_s29] sm:$0xff] }
  0x40   : > { %1246 = vmatprep.subr.bf16.mxu0 %v6692_v1  ;;  %v1122_v20 = vpack.c.bf16 %v1120_v19, %v1118_v18  ;;  %v5676_v21 = vld [vmem:[%s7770_s15] ss:$0 sm:$0xff] }
  0x41   : > { %v1283_v24 = vld [vmem:[%s7771_s3] sm:$0xff] }
  0x43   : > { %1247 = vmatpush1.bf16.msra.mxu0 %v6418_v3 }
  0x44   : > { %1248 = vmatprep.subr.bf16.mxu0 %v6692_v1 }
  0x47   : > { %1249 = vmatpush1.bf16.msra.mxu0 %v6419_v4 }
  0x48   : > { %1250 = vmatprep.subr.bf16.mxu0 %v6692_v1 }
  0x4b   : > { %1251 = vmatpush1.bf16.msra.mxu0 %v6420_v7 }
  0x4c   : > { %1252 = vmatprep.subr.bf16.mxu0 %v6692_v1 }
  0x4f   : > { %1253 = vmatpush1.bf16.msra.mxu0 %v6421_v9 }
  0x50   : > { %1254 = vmatprep.subr.bf16.mxu0 %v6692_v1 }
  0x53   : > { %1255 = vmatpush1.bf16.msra.mxu0 %v6422_v10 }
  0x54   : > { %1256 = vmatprep.subr.bf16.mxu0 %v6692_v1 }
  0x57   : > { %1257 = vmatpush1.bf16.msra.mxu0 %v6423_v11 }
  0x58   : > { %1264 = vmatprep.subr.bf16.mxu0 %v6692_v1 }
  0x5b   : > { %1265 = vmatpush2.bf16.msra.mxu0 %v1240_v13 }
  0x5c   : > { %1266 = vmatprep.subr.bf16.mxu0 %v6692_v1 }
  0x5f   : > { %1267 = vmatpush2.bf16.msra.mxu0 %v6425_v14 }
  0x60   : > { %1268 = vmatprep.subr.bf16.mxu0 %v6692_v1 }
  0x63   : > { %1269 = vmatpush2.bf16.msra.mxu0 %v6426_v15 }
  0x64   : > { %1270 = vmatprep.subr.bf16.mxu0 %v6692_v1 }
  0x67   : > { %1271 = vmatpush2.bf16.msra.mxu0 %v6427_v16 }
  0x68   : > { %1272 = vmatprep.subr.bf16.mxu0 %v6692_v1 }
  0x6b   : > { %1273 = vmatpush2.bf16.msra.mxu0 %v6428_v17 }
  0x6e   : > { %1275 = vmatmul.mubr.bf16.vlgmr.msra.gmra.mxu0 %v1122_v20 }
 0x12e   : > { %v1276_v22 = vpop.f32.mrf.mxu0 }
 0x12f   : > { %v1277_v23 = vadd.f32 %v5676_v21, %v1276_v22 }
 0x130   : > { %v1278_v25 = vpop.f32.mrf.mxu0 }
 0x131   : > { %v1284_v26 = vmul.f32 8.0, %v1277_v23 }
 0x132   : > { %v1279_v27 = vpop.f32.mrf.mxu0 }
 0x133   : > { %v1286_v28 = vadd.f32 %v1284_v26, %v1283_v24  ;;  %v1280_v29 = vadd.f32 %v5676_v21, %v1279_v27 }
 0x134   : > { %v1281_v30 = vpop.f32.mrf.mxu0 }
 0x135   : > { %1289 = vst.msk [vmem:[#allocation2] sm:$0xff] %vm1288_vm2, %v1286_v28  ;;  %v1285_v31 = vmul.f32 8.0, %v1280_v29 }
 0x137   : > { %v1287_v32 = vadd.f32 %v1285_v31, %v1283_v24 }
 0x139   : > { %1290 = vst.msk [vmem:[#allocation2 + $0x8] sm:$0xff] %vm1288_vm2, %v1287_v32 }
 0x13a PF: > { %vm1295_vm3 = vcmask 523264   ;;  %s7772_s30 = sld [smem:[#allocation8_spill]]  ;;  %v6693_v51 = vmov 0   ;;  %v1364_v19 = vlaneseq  ;;  %v1362_v22 = vld [vmem:[%s6873_s25] sm:$0x3]  ;;  %v6694_v24 = vmov 0.0   ;;  %s7782_s5 = scalar_lea.vmem %s7707_s12, %s6853_s8 }
 0x13b   : > { %1449 = vmatprep.mubr.bf16.mxu0 %v6693_v51  ;;  %s7773_s20 = sld [smem:[#allocation14_spill]]  ;;  %6209 = vmatprep.subr.bf16.mxu1 %v6694_v24  ;;  %vm6695_vm8 = vmmov 0   ;;  %s6696_s2 = smov 96   ;;  %vm1510_vm9 = vcmask 261120   ;;  %vm1756_vm10 = vcmask 1043456   ;;  %vm1704_vm11 = vcmask 64512  }
 0x13c   : > { %v1291_v33 = vld [vmem:[#allocation2] sm:$0xff]  ;;  %s7775_s28 = sld [smem:[#allocation15_spill]]  ;;  %v7032_v20 = vshrl.u32 %v1364_v19, 7  ;;  %6211 = vmatprep.mubr.msk.bf16.mxu1 %vm6695_vm8, %v6694_v24  ;;  %s6697_s25 = smov 64  }
 0x13d   : > { %v1296_v35 = vsel %vm1295_vm3, %v1291_v33, 0.0  ;;  %s7777_s3 = sld [smem:[#allocation19_spill]]  ;;  %s7783_s27 = scalar_lea.vmem %s7711_s16, %s6853_s8 }
 0x13e   : > { %1297 = vadd.xlane.f32.xlu0 %v1296_v35  ;;  %v7035_v21 = vsub.s32 0, %v7032_v20  ;;  %s7780_s24 = sld [smem:[#allocation20_spill]]  ;;  %s7784_s10 = scalar_lea.vmem %s7709_s14, %s6853_s8 }
 0x140   : > { %v1292_v34 = vld [vmem:[#allocation2 + $0x8] sm:$0xff]  ;;  %v6434_v47 = vld [vmem:[%s7772_s30 + $0x34] ss:$8 sps:$4 sm:$0xff]   ;;  %v6436_v48 = vld [vmem:[%s7772_s30 + $0x30] ss:$8 sps:$4 sm:$0xff]   ;;  %v1367_v23 = vrot.slane %v1362_v22, %v7035_v21 }
 0x141   : > { %v1299_v36 = vsel %vm1295_vm3, %v1292_v34, 0.0  ;;  %v6437_v49 = vld [vmem:[%s7772_s30 + $0x24] ss:$8 sps:$4 sm:$0xff]   ;;  %1425 = vmatprep.subr.bf16.mxu0 %v6434_v47  ;;  %v6439_v50 = vld [vmem:[%s7772_s30 + $0x20] ss:$8 sps:$4 sm:$0xff]   ;;  %s7774_s11 = scalar_lea.vmem %s7773_s20, %s6853_s8  ;;  %s7779_s20 = sld [smem:[#allocation13_spill]] }
 0x142   : > { %1300 = vadd.xlane.f32.xlu0 %v1299_v36  ;;  %1426 = vmatpush1.bf16.msra.mxu0 %v6436_v48  ;;  %v6440_v52 = vld [vmem:[%s7772_s30 + $0x14] ss:$8 sps:$4 sm:$0xff]   ;;  %v6442_v53 = vld [vmem:[%s7772_s30 + $0x10] ss:$8 sps:$4 sm:$0xff]   ;;  %v6443_v54 = vld [vmem:[%s7772_s30 + $0x4] ss:$8 sps:$4 sm:$0xff]   ;;  %s7776_s15 = scalar_lea.vmem %s7775_s28, %s6853_s8 }
 0x143   : > { %1427 = vmatprep.subr.bf16.mxu0 %v6437_v49  ;;  %v6445_v55 = vld [vmem:[%s7772_s30] ss:$8 sps:$4 sm:$0xff]   ;;  %s7778_s30 = scalar_lea.vmem %s7777_s3, %s6853_s8  ;;  %s7790_s3 = sld [smem:[#allocation7_spill]] }
 0x144   : > { %v5691_v10 = vld [vmem:[%s7774_s11] ss:$0 sm:$0xff]  ;;  %s7781_s28 = scalar_lea.vmem %s7780_s24, %s6853_s8  ;;  %s7786_s24 = scalar_lea.vmem %s7714_s19, %s6853_s8 }
 0x145   : > { %v5692_v14 = vld [vmem:[%s7776_s15] ss:$0 sm:$0xff] }
 0x146   : > { %1428 = vmatpush1.bf16.msra.mxu0 %v6439_v50 }
 0x147   : > { %1429 = vmatprep.subr.bf16.mxu0 %v6440_v52 }
 0x149   : > { %p5953_p5 = scmp.ne.s32.totalorder %s7790_s3, 1 }
 0x14a   : > { %1430 = vmatpush1.bf16.msra.mxu0 %v6442_v53  ;;  %s7792_s11 = sld [smem:[#allocation28_spill]] (!%p5953_p5) }
 0x14b   : > { %1431 = vmatprep.subr.bf16.mxu0 %v6443_v54 }
 0x14e   : > { %1432 = vmatpush1.bf16.msra.mxu0 %v6445_v55 }
 0x14f   : > { %6221 = vmatprep.subr.bf16.mxu0 %v6694_v24 }
 0x1c7   : > { %v1298_v37 = vpop.xlane.xlu0 %1297 }
 0x1c8   : > { %v1303_v38 = vmul.f32 0.015625, %v1298_v37 }
 0x1ca   : > { %v1305_v39 = vsub.f32 %v1291_v33, %v1303_v38 }
 0x1cb   : > { %v1301_v40 = vpop.xlane.xlu0 %1300 }
 0x1cc   : > { %v1304_v41 = vmul.f32 0.015625, %v1301_v40  ;;  %v1307_v42 = vmul.f32 %v1305_v39, %v1305_v39 }
 0x1ce   : > { %v1306_v43 = vsub.f32 %v1292_v34, %v1304_v41  ;;  %v1309_v44 = vsel %vm1295_vm3, %v1307_v42, 0.0  ;;  %v7059_v41 = vsub.s32 1, %v7032_v20 }
 0x1cf   : > { %1310 = vadd.xlane.f32.xlu1 %v1309_v44 }
 0x1d0   : > { %v1308_v45 = vmul.f32 %v1306_v43, %v1306_v43 }
 0x1d2   : > { %v1312_v46 = vsel %vm1295_vm3, %v1308_v45, 0.0 }
 0x1d3   : > { %1313 = vadd.xlane.f32.xlu1 %v1312_v46 }
 0x258   : > { %v1311_v56 = vpop.xlane.xlu1 %1310 }
 0x259   : > { %v1315_v57 = vmul.f32 0.015873017, %v1311_v56 }
 0x25b   : > { %6590 = vrsqrt.f32 %v1315_v57  ;;  %vm1319_vm4 = vcmp.eq.f32.partialorder %v1315_v57, inf  ;;  %v1322_v62 = vand.u32 2147483648, %v1315_v57  ;;  %vm1321_vm5 = vcmp.eq.f32.partialorder %v1315_v57, 0.0 }
 0x25c   : > { %v1314_v58 = vpop.xlane.xlu1 %1313 }
 0x25d   : > { %v1316_v59 = vmul.f32 0.015873017, %v1314_v58 }
 0x25f   : > { %6592 = vrsqrt.f32 %v1316_v59  ;;  %vm1326_vm6 = vcmp.eq.f32.partialorder %v1316_v59, inf  ;;  %v1329_v4 = vand.u32 2147483648, %v1316_v59  ;;  %vm1328_vm7 = vcmp.eq.f32.partialorder %v1316_v59, 0.0 }
 0x268   : > { %v6591_v60 = vpop.eup %6590 }
 0x269   : > { %v1318_v61 = vmul.f32 %v6591_v60, %v1315_v57 }
 0x26b   : > { %v1320_v63 = vsel %vm1319_vm4, %v1315_v57, %v1318_v61 }
 0x26c   : > { %v6593_v0 = vpop.eup %6592  ;;  %v1323_v1 = vsel %vm1321_vm5, %v1322_v62, %v1320_v63 }
 0x26d   : > { %v1331_v2 = vadd.f32 1e-06, %v1323_v1  ;;  %v1325_v3 = vmul.f32 %v6593_v0, %v1316_v59 }
 0x26f   : > { %6594 = vrcp.f32 %v1331_v2  ;;  %v1327_v5 = vsel %vm1326_vm6, %v1316_v59, %v1325_v3 }
 0x270   : > { %v1330_v6 = vsel %vm1328_vm7, %v1329_v4, %v1327_v5 }
 0x271   : > { %v1332_v7 = vadd.f32 1e-06, %v1330_v6 }
 0x273   : > { %6596 = vrcp.f32 %v1332_v7 }
 0x27c   : > { %v6595_v8 = vpop.eup %6594 }
 0x27d   : > { %v1334_v9 = vmul.f32 %v6595_v8, %v1305_v39 }
 0x27f   : > { %v1343_v13 = vmul.f32 %v5691_v10, %v1334_v9 }
 0x280   : > { %v6597_v11 = vpop.eup %6596 }
 0x281   : > { %v1336_v12 = vmul.f32 %v6597_v11, %v1306_v43  ;;  %v1351_v16 = vadd.f32 %v5692_v14, %v1343_v13  ;;  %v7062_v43 = vrot.slane %v1362_v22, %v7059_v41 }
 0x283   : > { %v1344_v15 = vmul.f32 %v5691_v10, %v1336_v12 }
 0x285   : > { %v1352_v17 = vadd.f32 %v5692_v14, %v1344_v15 }
 0x287   : > { %v1353_v18 = vpack.c.bf16 %v1352_v17, %v1351_v16 }
 0x289   : > { %5701 = vmatmul.mubr.msk.bf16.vlgmr.msra.gmra.mxu0 %vm1295_vm3, %v1353_v18 }
 0x28a   : > { %6223 = vmatprep.mubr.msk.bf16.mxu0 %vm6695_vm8, %v6694_v24 }
 0x349   : > { %v1451_v25 = vpop.f32.mrf.mxu0 }
 0x34a   : > { %v1452_v26 = vadd.f32 %v1451_v25, %v1367_v23 }
 0x34b   : > { %v1453_v27 = vpop.f32.mrf.mxu0 }
 0x34c   : > { %1484 = vrot.lane.b32.xlu0 %v1452_v26, %s6696_s2  ;;  %v1460_v30 = vmul.f32 0.17677669, %v1452_v26  ;;  %v1491_v31 = vpack.c.bf16 %v1452_v26, %v1452_v26  ;;  %v7067_v47 = vadd.f32 %v1453_v27, %v7062_v43 }
 0x34d   : > { %v1455_v28 = vpop.f32.mrf.mxu0 }
 0x34e   : > { %v1456_v29 = vadd.f32 %v1455_v28, %v1367_v23  ;;  %v1479_v40 = vpack.c.bf16 %v1460_v30, %v1460_v30  ;;  %v1503_v52 = vpack.c.bf16 %v7067_v47, %v7067_v47 }
 0x34f   : > { %v1457_v1 = vpop.f32.mrf.mxu0 }
 0x350   : > { %1488 = vrot.lane.b32.xlu1 %v1456_v29, %s6696_s2  ;;  %1472 = vrot.lane.b32.xlu0 %v1460_v30, %s6696_s2  ;;  %v1493_v36 = vpack.c.bf16 %v1456_v29, %v1456_v29  ;;  %v1461_v39 = vmul.f32 0.17677669, %v1456_v29  ;;  %v1758_v56 = vsel %vm1756_vm10, %v1503_v52, 0 }
 0x352   : > { %v1481_v54 = vpack.c.bf16 %v1461_v39, %v1461_v39 }
 0x354   : > { %1508 = vrot.lane.b32.xlu1 %v1491_v31, %s6697_s25 }
 0x3be   : > { %v1485_v32 = vpop.permute.xlu0 %1484 }
 0x3bf   : > { %v1492_v33 = vpack.c.bf16 %v1485_v32, %v1485_v32 }
 0x3c1   : > { %1558 = vrot.lane.b32.xlu1 %v1492_v33, %s6697_s25 }
 0x3c2   : > { %v1489_v34 = vpop.permute.xlu1 %1488  ;;  %v1473_v45 = vpop.permute.xlu0 %1472 }
 0x3c3   : > { %v1494_v35 = vpack.c.bf16 %v1489_v34, %v1489_v34  ;;  %v1480_v50 = vpack.c.bf16 %v1473_v45, %v1473_v45 }
 0x3c5   : > { %1607 = vrot.lane.b32.xlu1 %v1493_v36, %s6697_s25  ;;  %1656 = vrot.lane.b32.xlu0 %v1494_v35, %s6697_s25 }
 0x3c6   : > { %v1509_v37 = vpop.permute.xlu1 %1508 }
 0x3c7   : > { %v1515_v38 = vsel %vm1510_vm9, %v1509_v37, 0 }
 0x3c8   : > { %6210 = vmatpush3.bf16.xpose.msra.mxu1 %v1515_v38  ;;  %v1458_v38 = vadd.f32 %v1457_v1, %v7062_v43  ;;  %v6447_v1 = vld [vmem:[%s6883_s23] sm:$0xff]  }
 0x3c9   : > { %1476 = vrot.lane.b32.xlu1 %v1461_v39, %s6696_s2  ;;  %6215 = vmatprep.subr.bf16.mxu1 %v6694_v24 }
 0x3cf   : > { %6212 = vmatmul.mubr.msk.bf16.vlgmr.msra.gmra.mxu1 %vm1510_vm9, %v1479_v40 }
 0x3d0   : > { %6217 = vmatprep.mubr.msk.bf16.mxu1 %vm6695_vm8, %v6694_v24 }
 0x433   : > { %v1559_v42 = vpop.permute.xlu1 %1558 }
 0x434   : > { %v1564_v44 = vsel %vm1510_vm9, %v1559_v42, 0  ;;  %v1505_v42 = vpack.c.bf16 %v1458_v38, %v1458_v38 }
 0x435   : > { %6216 = vmatpush3.bf16.xpose.msra.mxu1 %v1564_v44 }
 0x436   : > { %6227 = vmatprep.subr.bf16.mxu1 %v6694_v24 }
 0x437   : > { %v1608_v46 = vpop.permute.xlu1 %1607  ;;  %v1657_v49 = vpop.permute.xlu0 %1656 }
 0x438   : > { %v1613_v48 = vsel %vm1510_vm9, %v1608_v46, 0  ;;  %v1662_v53 = vsel %vm1510_vm9, %v1657_v49, 0  ;;  %v1850_v46 = vsel %vm1756_vm10, %v1505_v42, 0 }
 0x439   : > { %6222 = vmatpush3.bf16.xpose.msra.mxu0 %v1613_v48 }
 0x43a   : > { %6233 = vmatprep.subr.bf16.mxu0 %v6694_v24 }
 0x43b   : > { %v1477_v55 = vpop.permute.xlu1 %1476 }
 0x43c   : > { %6218 = vmatmul.mubr.msk.bf16.vlgmr.msra.gmra.mxu1 %vm1510_vm9, %v1480_v50  ;;  %v1482_v57 = vpack.c.bf16 %v1477_v55, %v1477_v55 }
 0x43d   : > { %6228 = vmatpush3.bf16.xpose.msra.mxu1 %v1662_v53  ;;  %6229 = vmatprep.mubr.msk.bf16.mxu1 %vm6695_vm8, %v6694_v24 }
 0x43e   : > { %6239 = vmatprep.subr.bf16.mxu1 %v6694_v24 }
 0x440   : > { %6224 = vmatmul.mubr.msk.bf16.vlgmr.msra.gmra.mxu0 %vm1510_vm9, %v1481_v54 }
 0x441   : > { %6234 = vmatpush3.bf16.msra.mxu0 %v1758_v56  ;;  %6235 = vmatprep.mubr.msk.bf16.mxu0 %vm6695_vm8, %v6694_v24 }
 0x442   : > { %6245 = vmatprep.subr.bf16.mxu0 %v6694_v24 }
 0x444   : > { %6230 = vmatmul.mubr.msk.bf16.vlgmr.msra.gmra.mxu1 %vm1510_vm9, %v1482_v57 }
 0x445   : > { %6241 = vmatprep.mubr.msk.bf16.mxu1 %vm6695_vm8, %v6694_v24 }
 0x48f   : > { %v1551_v58 = vpop.f32.mrf.mxu1 }
 0x490   : > { %v1705_v59 = vsel %vm1704_vm11, %v1551_v58, -inf }
 0x491   : > { %1706 = vmax.xlane.f32.xlu0 %v1705_v59  ;;  %v6213_v60 = vpop.f32.mrf.mxu1 }
 0x493   : > { %v1554_v61 = vpop.f32.mrf.mxu1 }
 0x494   : > { %v6446_v61 = vld [vmem:[%s6883_s23 + $0x8] sm:$0xff]  }
 0x495   : > { %v6214_v62 = vpop.f32.mrf.mxu1 }
 0x4fc   : > { %v1600_v63 = vpop.f32.mrf.mxu1 }
 0x4fd   : > { %v1708_v0 = vsel %vm1704_vm11, %v1600_v63, -inf }
 0x4fe   : > { %1709 = vmax.xlane.f32.xlu1 %v1708_v0  ;;  %v6219_v2 = vpop.f32.mrf.mxu1 }
 0x4ff   : > { %v6448_v2 = vld [vmem:[%s6883_s23 + $0x18] sm:$0xff]  }
 0x500   : > { %v1603_v3 = vpop.f32.mrf.mxu1  ;;  %v1649_v4 = vpop.f32.mrf.mxu0 }
 0x501   : > { %v1711_v5 = vsel %vm1704_vm11, %v1649_v4, -inf }
 0x502   : > { %v6225_v6 = vpop.f32.mrf.mxu0  ;;  %1712 = vmax.xlane.f32.xlu0 %v1711_v5  ;;  %v6220_v7 = vpop.f32.mrf.mxu1 }
 0x504   : > { %v1652_v8 = vpop.f32.mrf.mxu0  ;;  %v1698_v9 = vpop.f32.mrf.mxu1 }
 0x505   : > { %v1714_v10 = vsel %vm1704_vm11, %v1698_v9, -inf }
 0x506   : > { %v6226_v11 = vpop.f32.mrf.mxu0  ;;  %1715 = vmax.xlane.f32.xlu0 %v1714_v10  ;;  %v6231_v12 = vpop.f32.mrf.mxu1 }
 0x508   : > { %v1701_v13 = vpop.f32.mrf.mxu1 }
 0x50a   : > { %v6232_v14 = vpop.f32.mrf.mxu1 }
 0x51a   : > { %v1707_v15 = vpop.xlane.xlu0 %1706 }
 0x51b   : > { %v1717_v16 = vsub.f32 %v1551_v58, %v1707_v15 }
 0x51d   : > { %v1721_v17 = vmul.f32 1.442695, %v1717_v16 }
 0x51f   : > { %6598 = vpow2.f32 %v1721_v17 }
 0x52c   : > { %v6599_v18 = vpop.eup %6598 }
 0x52d   : > { %v1729_v19 = vsel %vm1704_vm11, %v6599_v18, 0.0 }
 0x52e   : > { %1730 = vadd.xlane.f32.xlu0 %v1729_v19 }
 0x587   : > { %v1710_v22 = vpop.xlane.xlu1 %1709 }
 0x588   : > { %v1718_v23 = vsub.f32 %v1600_v63, %v1710_v22 }
 0x58a   : > { %v1723_v25 = vmul.f32 1.442695, %v1718_v23 }
 0x58b   : > { %v1713_v26 = vpop.xlane.xlu0 %1712 }
 0x58c   : > { %6600 = vpow2.f32 %v1723_v25  ;;  %v1719_v27 = vsub.f32 %v1649_v4, %v1713_v26  ;;  %v6449_v4 = vld [vmem:[%s6883_s23 + $0x10] sm:$0xff]   ;;  %s7787_s23 = sld [smem:[#allocation24_spill]] }
 0x58e   : > { %v1725_v28 = vmul.f32 1.442695, %v1719_v27 }
 0x58f   : > { %v1716_v29 = vpop.xlane.xlu0 %1715 }
 0x590   : > { %6602 = vpow2.f32 %v1725_v28  ;;  %v1720_v30 = vsub.f32 %v1698_v9, %v1716_v29 }
 0x592   : > { %v1727_v31 = vmul.f32 1.442695, %v1720_v30 }
 0x594   : > { %6604 = vpow2.f32 %v1727_v31 }
 0x599   : > { %v6601_v32 = vpop.eup %6600 }
 0x59a   : > { %v1732_v33 = vsel %vm1704_vm11, %v6601_v32, 0.0 }
 0x59b   : > { %1733 = vadd.xlane.f32.xlu1 %v1732_v33 }
 0x59d   : > { %v6603_v34 = vpop.eup %6602 }
 0x59e   : > { %v1735_v35 = vsel %vm1704_vm11, %v6603_v34, 0.0 }
 0x59f   : > { %1736 = vadd.xlane.f32.xlu0 %v1735_v35 }
 0x5a1   : > { %v6605_v36 = vpop.eup %6604 }
 0x5a2   : > { %v1738_v37 = vsel %vm1704_vm11, %v6605_v36, 0.0 }
 0x5a3   : > { %1739 = vadd.xlane.f32.xlu1 %v1738_v37 }
 0x5b4   : > { %1500 = vrot.lane.b32.xlu1 %v1458_v38, %s6696_s2 }
 0x5b5   : > { %1496 = vrot.lane.b32.xlu0 %v7067_v47, %s6696_s2 }
 0x5b7   : > { %v1731_v39 = vpop.xlane.xlu0 %1730 }
 0x5b8   : > { %6606 = vrcp.f32 %v1731_v39 }
 0x5c5   : > { %v6607_v40 = vpop.eup %6606 }
 0x5c6   : > { %v1745_v44 = vmul.f32 %v6607_v40, %v6599_v18 }
 0x5c8   : > { %v1749_v45 = vpack.c.bf16 %v1745_v44, %v1745_v44 }
 0x5ca   : > { %6236 = vmatmul.mubr.msk.bf16.vlgmr.msra.gmra.mxu0 %vm1704_vm11, %v1749_v45  ;;  %v6646_v45 = vld [vmem:[#allocation2] sm:$0xff] }
 0x5cb   : > { %6246 = vmatpush3.bf16.msra.mxu0 %v1850_v46  ;;  %6247 = vmatprep.mubr.msk.bf16.mxu0 %vm6695_vm8, %v6694_v24 }
 0x5cc   : > { %6257 = vmatprep.subr.bf16.mxu0 %v6694_v24 }
 0x624   : > { %v1734_v43 = vpop.xlane.xlu1 %1733 }
 0x625   : > { %6608 = vrcp.f32 %v1734_v43 }
 0x628   : > { %v1737_v48 = vpop.xlane.xlu0 %1736 }
 0x629   : > { %6610 = vrcp.f32 %v1737_v48 }
 0x62c   : > { %v1740_v47 = vpop.xlane.xlu1 %1739  ;;  %v1497_v49 = vpop.permute.xlu0 %1496 }
 0x62d   : > { %6612 = vrcp.f32 %v1740_v47  ;;  %v1504_v50 = vpack.c.bf16 %v1497_v49, %v1497_v49 }
 0x62f   : > { %v1804_v52 = vsel %vm1756_vm10, %v1504_v50, 0 }
 0x630   : > { %v1501_v53 = vpop.permute.xlu1 %1500  ;;  %6240 = vmatpush3.bf16.msra.mxu1 %v1804_v52 }
 0x631   : > { %6251 = vmatprep.subr.bf16.mxu1 %v6694_v24  ;;  %v1506_v55 = vpack.c.bf16 %v1501_v53, %v1501_v53 }
 0x632   : > { %v6609_v54 = vpop.eup %6608 }
 0x633   : > { %v1746_v56 = vmul.f32 %v6609_v54, %v6601_v32  ;;  %v1896_v59 = vsel %vm1756_vm10, %v1506_v55, 0 }
 0x635   : > { %v1750_v57 = vpack.c.bf16 %v1746_v56, %v1746_v56 }
 0x636   : > { %v6611_v58 = vpop.eup %6610 }
 0x637   : > { %6242 = vmatmul.mubr.msk.bf16.vlgmr.msra.gmra.mxu1 %vm1704_vm11, %v1750_v57  ;;  %v1747_v60 = vmul.f32 %v6611_v58, %v6603_v34  ;;  %v5718_v34 = vld [vmem:[%s7778_s30] ss:$0 sm:$0xff]  ;;  %v6647_v58 = vld [vmem:[#allocation2 + $0x8] sm:$0xff]  ;;  %s7791_s30 = sld [smem:[#allocation27_spill]] (!%p5953_p5) }
 0x638   : > { %6252 = vmatpush3.bf16.msra.mxu1 %v1896_v59  ;;  %6253 = vmatprep.mubr.msk.bf16.mxu1 %vm6695_vm8, %v6694_v24 }
 0x639   : > { %v1751_v62 = vpack.c.bf16 %v1747_v60, %v1747_v60  ;;  %6265 = vmatprep.subr.bf16.mxu1 %v6694_v24 }
 0x63a   : > { %v6613_v63 = vpop.eup %6612 }
 0x63b   : > { %6248 = vmatmul.mubr.msk.bf16.vlgmr.msra.gmra.mxu0 %vm1704_vm11, %v1751_v62  ;;  %v1748_v0 = vmul.f32 %v6613_v63, %v6605_v36 }
 0x63c   : > { %6258 = vmatpush3.bf16.msra.mxu0 %v6446_v61  ;;  %6261 = vmatprep.mubr.msk.bf16.mxu0 %vm6695_vm8, %v6694_v24 }
 0x63d   : > { %v1752_v3 = vpack.c.bf16 %v1748_v0, %v1748_v0  ;;  %6259 = vmatprep.subr.bf16.mxu0 %v6694_v24 }
 0x63f   : > { %6254 = vmatmul.mubr.msk.bf16.vlgmr.msra.gmra.mxu1 %vm1704_vm11, %v1752_v3 }
 0x640   : > { %6260 = vmatpush3.bf16.msra.mxu0 %v6447_v1  ;;  %6266 = vmatpush3.bf16.msra.mxu1 %v6448_v2 }
 0x641   : > { %6267 = vmatprep.subr.bf16.mxu1 %v6694_v24  ;;  %6273 = vmatprep.subr.bf16.mxu0 %v6694_v24 }
 0x642   : > { %6269 = vmatprep.mubr.msk.bf16.mxu1 %vm6695_vm8, %v6694_v24 }
 0x644   : > { %6268 = vmatpush3.bf16.msra.mxu1 %v6449_v4 }
 0x645   : > { %6281 = vmatprep.subr.bf16.mxu1 %v6694_v24 }
 0x68a   : > { %v1794_v5 = vpop.f32.mrf.mxu0 }
 0x68b   : > { %v1938_v6 = vpack.c.bf16 %v1794_v5, %v1794_v5 }
 0x68c   : > { %v6237_v7 = vpop.f32.mrf.mxu0 }
 0x68d   : > { %6262 = vmatmul.mubr.msk.bf16.vlgmr.msra.gmra.mxu0 %vm1510_vm9, %v1938_v6  ;;  %v6450_v7 = vld [vmem:[%s6905_s1 + $0x18] sm:$0xff]  }
 0x68e   : > { %v1797_v8 = vpop.f32.mrf.mxu0  ;;  %6274 = vmatpush3.bf16.msra.mxu0 %v6446_v61  ;;  %6277 = vmatprep.mubr.msk.bf16.mxu0 %vm6695_vm8, %v6694_v24 }
 0x68f   : > { %6275 = vmatprep.subr.bf16.mxu0 %v6694_v24  ;;  %v6451_v8 = vld [vmem:[%s6905_s1 + $0x10] sm:$0xff]  }
 0x690   : > { %v6238_v9 = vpop.f32.mrf.mxu0 }
 0x691   : > { %v6452_v9 = vld [vmem:[%s6896_s0 + $0x18] sm:$0xff]  }
 0x692   : > { %6276 = vmatpush3.bf16.msra.mxu0 %v6447_v1 }
 0x693   : > { %6289 = vmatprep.subr.bf16.mxu0 %v6694_v24 }
 0x6f7   : > { %v1840_v10 = vpop.f32.mrf.mxu1 }
 0x6f8   : > { %v1939_v11 = vpack.c.bf16 %v1840_v10, %v1840_v10  ;;  %v6454_v10 = vld [vmem:[%s6896_s0 + $0x10] sm:$0xff]  }
 0x6f9   : > { %v6243_v12 = vpop.f32.mrf.mxu1 }
 0x6fa   : > { %6270 = vmatmul.mubr.msk.bf16.vlgmr.msra.gmra.mxu1 %vm1510_vm9, %v1939_v11  ;;  %v6453_v11 = vld [vmem:[%s6905_s1 + $0x8] sm:$0xff]  }
 0x6fb   : > { %v1843_v13 = vpop.f32.mrf.mxu1  ;;  %v1886_v14 = vpop.f32.mrf.mxu0  ;;  %6282 = vmatpush3.bf16.msra.mxu1 %v6448_v2  ;;  %6285 = vmatprep.mubr.msk.bf16.mxu1 %vm6695_vm8, %v6694_v24  ;;  %v6456_v12 = vld [vmem:[%s6896_s0 + $0x8] sm:$0xff]  }
 0x6fc   : > { %v1940_v15 = vpack.c.bf16 %v1886_v14, %v1886_v14  ;;  %6283 = vmatprep.subr.bf16.mxu1 %v6694_v24  ;;  %v6455_v13 = vld [vmem:[%s6905_s1] sm:$0xff]  }
 0x6fd   : > { %v6244_v16 = vpop.f32.mrf.mxu1  ;;  %v6249_v17 = vpop.f32.mrf.mxu0  ;;  %v2212_v14 = vld [vmem:[%s7779_s20] sm:$0xff] }
 0x6fe   : > { %6278 = vmatmul.mubr.msk.bf16.vlgmr.msra.gmra.mxu0 %vm1510_vm9, %v1940_v15  ;;  %v2213_v15 = vld [vmem:[%s7779_s20 + $0x8] sm:$0xff]  ;;  %v6457_v16 = vld [vmem:[%s6896_s0] sm:$0xff]  }
 0x6ff   : > { %v1889_v18 = vpop.f32.mrf.mxu0  ;;  %v1932_v19 = vpop.f32.mrf.mxu1  ;;  %6284 = vmatpush3.bf16.msra.mxu1 %v6449_v4  ;;  %6297 = vmatprep.mubr.msk.bf16.mxu0 %vm6695_vm8, %v6694_v24  ;;  %v2300_v17 = vpack.c.bf16 %v2213_v15, %v2212_v14 }
 0x700   : > { %v1941_v22 = vpack.c.bf16 %v1932_v19, %v1932_v19  ;;  %6301 = vmatprep.subr.bf16.mxu1 %v6694_v24  ;;  %6290 = vmatpush3.bf16.msra.mxu0 %v6452_v9 }
 0x701   : > { %v6250_v23 = vpop.f32.mrf.mxu0  ;;  %v6255_v25 = vpop.f32.mrf.mxu1  ;;  %6291 = vmatprep.subr.bf16.mxu0 %v6694_v24 }
 0x702   : > { %6286 = vmatmul.mubr.msk.bf16.vlgmr.msra.gmra.mxu1 %vm1510_vm9, %v1941_v22 }
 0x703   : > { %v1935_v26 = vpop.f32.mrf.mxu1  ;;  %6309 = vmatprep.mubr.msk.bf16.mxu1 %vm6695_vm8, %v6694_v24  ;;  %6302 = vmatpush3.bf16.msra.mxu1 %v6450_v7 }
 0x704   : > { %6303 = vmatprep.subr.bf16.mxu1 %v6694_v24  ;;  %6292 = vmatpush3.bf16.msra.mxu0 %v6454_v10 }
 0x705   : > { %v6256_v27 = vpop.f32.mrf.mxu1  ;;  %6293 = vmatprep.subr.bf16.mxu0 %v6694_v24 }
 0x707   : > { %6304 = vmatpush3.bf16.msra.mxu1 %v6451_v8 }
 0x708   : > { %6305 = vmatprep.subr.bf16.mxu1 %v6694_v24  ;;  %6294 = vmatpush3.bf16.msra.mxu0 %v6456_v12 }
 0x709   : > { %6295 = vmatprep.subr.bf16.mxu0 %v6694_v24 }
 0x70b   : > { %6306 = vmatpush3.bf16.msra.mxu1 %v6453_v11 }
 0x70c   : > { %6307 = vmatprep.subr.bf16.mxu1 %v6694_v24  ;;  %6296 = vmatpush3.bf16.msra.mxu0 %v6457_v16 }
 0x70d   : > { %6313 = vmatprep.subr.bf16.mxu0 %v6694_v24 }
 0x70f   : > { %6308 = vmatpush3.bf16.msra.mxu1 %v6455_v13 }
 0x710   : > { %6319 = vmatprep.subr.bf16.mxu1 %v6694_v24 }
 0x712   : > { %6310 = vmatmul.mubr.msk.bf16.vlgmr.msra.gmra.mxu1 %vm1295_vm3, %v2300_v17 }
 0x713   : > { %6321 = vmatprep.mubr.msk.bf16.mxu1 %vm6695_vm8, %v6694_v24 }
 0x74d   : > { %v1991_v28 = vpop.f32.mrf.mxu0 }
 0x74e   : > { %v2138_v33 = vsel %vm1295_vm3, %v1991_v28, 0.0 }
 0x74f   : > { %v6263_v29 = vpop.f32.mrf.mxu0 }
 0x751   : > { %v1994_v30 = vpop.f32.mrf.mxu0 }
 0x753   : > { %v6264_v31 = vpop.f32.mrf.mxu0 }
 0x7ba   : > { %v2046_v32 = vpop.f32.mrf.mxu1 }
 0x7bb   : > { %v2139_v35 = vsel %vm1295_vm3, %v2046_v32, 0.0 }
 0x7bc   : > { %v2140_v36 = vadd.f32 %v2139_v35, %v2138_v33  ;;  %v6271_v37 = vpop.f32.mrf.mxu1 }
 0x7be   : > { %v2150_v38 = vadd.f32 %v5718_v34, %v2140_v36  ;;  %v2049_v39 = vpop.f32.mrf.mxu1  ;;  %v2089_v40 = vpop.f32.mrf.mxu0 }
 0x7bf   : > { %v2141_v49 = vsel %vm1295_vm3, %v2089_v40, 0.0  ;;  %v5719_v39 = vld [vmem:[%s7781_s28] ss:$0 sm:$0xff] }
 0x7c0   : > { %v6272_v42 = vpop.f32.mrf.mxu1  ;;  %v6279_v44 = vpop.f32.mrf.mxu0  ;;  %v7147_v46 = vadd.f32 %v6646_v45, %v2150_v38  ;;  %v5720_v45 = vld [vmem:[%s7782_s5] ss:$0 sm:$0xff]  ;;  %s7788_s5 = scalar_lea.vmem %s7787_s23, %s6853_s8 }
 0x7c2   : > { %v2092_v43 = vpop.f32.mrf.mxu0  ;;  %v2132_v48 = vpop.f32.mrf.mxu1  ;;  %v2156_v47 = vsel %vm1295_vm3, %v7147_v46, 0.0 }
 0x7c3   : > { %v2142_v50 = vsel %vm1295_vm3, %v2132_v48, 0.0  ;;  %2157 = vadd.xlane.f32.xlu1 %v2156_v47 }
 0x7c4   : > { %v2143_v52 = vadd.f32 %v2142_v50, %v2141_v49  ;;  %v6280_v53 = vpop.f32.mrf.mxu0  ;;  %v6287_v54 = vpop.f32.mrf.mxu1  ;;  %v5727_v50 = vld [vmem:[%s7783_s27] ss:$0 sm:$0xff] }
 0x7c6   : > { %v2151_v55 = vadd.f32 %v5718_v34, %v2143_v52  ;;  %v2135_v56 = vpop.f32.mrf.mxu1 }
 0x7c8   : > { %v6288_v57 = vpop.f32.mrf.mxu1  ;;  %v7153_v59 = vadd.f32 %v6647_v58, %v2151_v55 }
 0x7ca   : > { %v2159_v60 = vsel %vm1295_vm3, %v7153_v59, 0.0 }
 0x7cb   : > { %2160 = vadd.xlane.f32.xlu0 %v2159_v60 }
 0x7d2   : > { %v2377_v52 = vpop.f32.mrf.mxu1 }
 0x7d3   : > { %v2378_v53 = vadd.f32 %v5727_v50, %v2377_v52 }
 0x7d4   : > { %v6311_v54 = vpop.f32.mrf.mxu1 }
 0x7d5   : > { %v2413_v55 = vpack.c.bf16 %v2378_v53, %v2378_v53 }
 0x7d6   : > { %v2380_v56 = vpop.f32.mrf.mxu1 }
 0x7d7   : > { %v2381_v57 = vadd.f32 %v5727_v50, %v2380_v56  ;;  %v2421_v58 = vsel %vm1510_vm9, %v2413_v55, 0 }
 0x7d8   : > { %v6312_v60 = vpop.f32.mrf.mxu1 }
 0x84c   : > { %v2158_v61 = vpop.xlane.xlu1 %2157 }
 0x84d   : > { %v2162_v62 = vmul.f32 0.015625, %v2158_v61 }
 0x84f   : > { %v7158_v63 = vsub.f32 %v7147_v46, %v2162_v62 }
 0x851   : > { %v2166_v0 = vmul.f32 %v7158_v63, %v7158_v63 }
 0x853   : > { %v2168_v1 = vsel %vm1295_vm3, %v2166_v0, 0.0  ;;  %v5721_v0 = vld [vmem:[%s7784_s10] ss:$0 sm:$0xff] }
 0x854   : > { %2169 = vadd.xlane.f32.xlu0 %v2168_v1  ;;  %v2161_v2 = vpop.xlane.xlu0 %2160 }
 0x855   : > { %v2163_v3 = vmul.f32 0.015625, %v2161_v2 }
 0x857   : > { %v2165_v4 = vsub.f32 %v7153_v59, %v2163_v3 }
 0x859   : > { %v2167_v5 = vmul.f32 %v2165_v4, %v2165_v4 }
 0x85b   : > { %v2171_v6 = vsel %vm1295_vm3, %v2167_v5, 0.0 }
 0x85c   : > { %2172 = vadd.xlane.f32.xlu1 %v2171_v6 }
 0x86a   : > { %2406 = vrot.lane.b32.xlu0 %v2378_v53, %s6696_s2 }
 0x8dd   : > { %v2170_v18 = vpop.xlane.xlu0 %2169 }
 0x8de   : > { %v2174_v19 = vmul.f32 0.015873017, %v2170_v18 }
 0x8e0   : > { %6614 = vrsqrt.f32 %v2174_v19  ;;  %vm2178_vm12 = vcmp.eq.f32.partialorder %v2174_v19, inf  ;;  %v2181_v27 = vand.u32 2147483648, %v2174_v19  ;;  %vm2180_vm13 = vcmp.eq.f32.partialorder %v2174_v19, 0.0 }
 0x8e1   : > { %v2407_v61 = vpop.permute.xlu0 %2406 }
 0x8e2   : > { %v7212_v62 = vpack.c.bf16 %v2407_v61, %v2407_v61 }
 0x8e5   : > { %v2173_v22 = vpop.xlane.xlu1 %2172 }
 0x8e6   : > { %v2175_v23 = vmul.f32 0.015873017, %v2173_v22 }
 0x8e8   : > { %6616 = vrsqrt.f32 %v2175_v23  ;;  %vm2185_vm14 = vcmp.eq.f32.partialorder %v2175_v23, inf  ;;  %v2188_v33 = vand.u32 2147483648, %v2175_v23  ;;  %vm2187_vm15 = vcmp.eq.f32.partialorder %v2175_v23, 0.0 }
 0x8ed   : > { %v6615_v25 = vpop.eup %6614 }
 0x8ee   : > { %v2177_v26 = vmul.f32 %v6615_v25, %v2174_v19 }
 0x8f0   : > { %v2179_v28 = vsel %vm2178_vm12, %v2174_v19, %v2177_v26 }
 0x8f1   : > { %v2182_v29 = vsel %vm2180_vm13, %v2181_v27, %v2179_v28 }
 0x8f2   : > { %v2190_v30 = vadd.f32 1e-06, %v2182_v29 }
 0x8f4   : > { %6618 = vrcp.f32 %v2190_v30 }
 0x8f5   : > { %v6617_v31 = vpop.eup %6616 }
 0x8f6   : > { %v2184_v32 = vmul.f32 %v6617_v31, %v2175_v23 }
 0x8f8   : > { %v2186_v34 = vsel %vm2185_vm14, %v2175_v23, %v2184_v32 }
 0x8f9   : > { %v2189_v35 = vsel %vm2187_vm15, %v2188_v33, %v2186_v34 }
 0x8fa   : > { %v2191_v36 = vadd.f32 1e-06, %v2189_v35 }
 0x8fc   : > { %6620 = vrcp.f32 %v2191_v36 }
 0x901   : > { %v6619_v37 = vpop.eup %6618 }
 0x902   : > { %v2193_v38 = vmul.f32 %v6619_v37, %v7158_v63  ;;  %v2467_v63 = vsel %vm1510_vm9, %v7212_v62, 0 }
 0x903   : > { %6320 = vmatpush3.bf16.xpose.msra.mxu1 %v2467_v63 }
 0x904   : > { %v2202_v44 = vmul.f32 %v5719_v39, %v2193_v38  ;;  %6331 = vmatprep.subr.bf16.mxu1 %v6694_v24 }
 0x906   : > { %v2210_v48 = vadd.f32 %v5720_v45, %v2202_v44 }
 0x909   : > { %v6621_v40 = vpop.eup %6620 }
 0x90a   : > { %v2195_v42 = vmul.f32 %v6621_v40, %v2165_v4  ;;  %v7222_v4 = vpack.c.bf16 %v2381_v57, %v2381_v57 }
 0x90c   : > { %v2203_v43 = vmul.f32 %v5719_v39, %v2195_v42  ;;  %v2513_v11 = vsel %vm1510_vm9, %v7222_v4, 0 }
 0x90e   : > { %v2211_v47 = vadd.f32 %v5720_v45, %v2203_v43 }
 0x910   : > { %v2214_v49 = vpack.c.bf16 %v2211_v47, %v2210_v48 }
 0x912   : > { %6298 = vmatmul.mubr.msk.bf16.vlgmr.msra.gmra.mxu0 %vm1295_vm3, %v2214_v49 }
 0x913   : > { %6315 = vmatprep.mubr.msk.bf16.mxu0 %vm6695_vm8, %v6694_v24  ;;  %6314 = vmatpush3.bf16.xpose.msra.mxu0 %v2421_v58 }
 0x914   : > { %6325 = vmatprep.subr.bf16.mxu0 %v6694_v24 }
 0x9d2   : > { %v2291_v1 = vpop.f32.mrf.mxu0 }
 0x9d3   : > { %v2292_v2 = vadd.f32 %v5721_v0, %v2291_v1 }
 0x9d4   : > { %v6299_v3 = vpop.f32.mrf.mxu0 }
 0x9d5   : > { %v2298_v5 = vmul.f32 0.17677669, %v2292_v2 }
 0x9d6   : > { %v2294_v6 = vpop.f32.mrf.mxu0 }
 0x9d7   : > { %v2401_v7 = vpack.c.bf16 %v2298_v5, %v2298_v5  ;;  %v6429_v8 = vpack.i.bf16 %v2381_v57, %v2298_v5  ;;  %v2295_v9 = vadd.f32 %v5721_v0, %v2294_v6 }
 0x9d8   : > { %v6300_v10 = vpop.f32.mrf.mxu0 }
 0x9d9   : > { %6316 = vmatmul.mubr.msk.bf16.vlgmr.msra.gmra.mxu0 %vm1510_vm9, %v2401_v7  ;;  %6430 = vrot.lane.b32.xlu1 %v6429_v8, %s6696_s2  ;;  %v2299_v12 = vmul.f32 0.17677669, %v2295_v9 }
 0x9da   : > { %6326 = vmatpush3.bf16.xpose.msra.mxu0 %v2513_v11  ;;  %6327 = vmatprep.mubr.msk.bf16.mxu0 %vm6695_vm8, %v6694_v24 }
 0x9db   : > { %6337 = vmatprep.subr.bf16.mxu0 %v6694_v24  ;;  %v2403_v13 = vpack.c.bf16 %v2299_v12, %v2299_v12 }
 0x9dd   : > { %2398 = vrot.lane.b32.xlu1 %v2299_v12, %s6696_s2 }
 0x9e1   : > { %6328 = vmatmul.mubr.msk.bf16.vlgmr.msra.gmra.mxu0 %vm1510_vm9, %v2403_v13 }
 0x9e2   : > { %6339 = vmatprep.mubr.msk.bf16.mxu0 %vm6695_vm8, %v6694_v24 }
 0xa4b   : > { %v6431_v14 = vpop.permute.xlu1 %6430 }
 0xa4c   : > { %v6433_v15 = vunpack.i.h.bf16 %v6431_v14  ;;  %v6432_v16 = vunpack.i.l.bf16 %v6431_v14 }
 0xa4e   : > { %v7235_v17 = vpack.c.bf16 %v6433_v15, %v6433_v15  ;;  %v2402_v18 = vpack.c.bf16 %v6432_v16, %v6432_v16 }
 0xa4f   : > { %v2399_v22 = vpop.permute.xlu1 %2398 }
 0xa50   : > { %6322 = vmatmul.mubr.msk.bf16.vlgmr.msra.gmra.mxu1 %vm1510_vm9, %v2402_v18  ;;  %v2559_v19 = vsel %vm1510_vm9, %v7235_v17, 0  ;;  %v2404_v23 = vpack.c.bf16 %v2399_v22, %v2399_v22 }
 0xa51   : > { %6332 = vmatpush3.bf16.xpose.msra.mxu1 %v2559_v19  ;;  %6333 = vmatprep.mubr.msk.bf16.mxu1 %vm6695_vm8, %v6694_v24 }
 0xa52   : > { %6343 = vmatprep.subr.bf16.mxu1 %v6694_v24 }
 0xa58   : > { %6334 = vmatmul.mubr.msk.bf16.vlgmr.msra.gmra.mxu1 %vm1510_vm9, %v2404_v23 }
 0xa59   : > { %6345 = vmatprep.mubr.msk.bf16.mxu1 %vm6695_vm8, %v6694_v24 }
 0xa99   : > { %v2457_v25 = vpop.f32.mrf.mxu0 }
 0xa9a   : > { %v2601_v26 = vsel %vm1704_vm11, %v2457_v25, -inf }
 0xa9b   : > { %v6317_v27 = vpop.f32.mrf.mxu0  ;;  %2602 = vmax.xlane.f32.xlu1 %v2601_v26 }
 0xa9d   : > { %v2460_v28 = vpop.f32.mrf.mxu0 }
 0xa9e   : > { %v6458_v28 = vld [vmem:[%s6914_s26 + $0x8] sm:$0xff]  }
 0xa9f   : > { %v6318_v29 = vpop.f32.mrf.mxu0 }
 0xaa1   : > { %v2549_v30 = vpop.f32.mrf.mxu0 }
 0xaa2   : > { %v2607_v38 = vsel %vm1704_vm11, %v2549_v30, -inf }
 0xaa3   : > { %v6329_v31 = vpop.f32.mrf.mxu0 }
 0xaa5   : > { %v2552_v32 = vpop.f32.mrf.mxu0 }
 0xaa6   : > { %v6459_v32 = vld [vmem:[%s6914_s26] sm:$0xff]  }
 0xaa7   : > { %v6330_v33 = vpop.f32.mrf.mxu0 }
 0xaa8   : > { %v6460_v33 = vld [vmem:[%s6914_s26 + $0x18] sm:$0xff]  }
 0xaac   : > { %2650 = vrot.lane.b32.xlu1 %v2413_v55, %s6697_s25 }
 0xb10   : > { %v2503_v34 = vpop.f32.mrf.mxu1 }
 0xb11   : > { %v2604_v35 = vsel %vm1704_vm11, %v2503_v34, -inf }
 0xb12   : > { %2605 = vmax.xlane.f32.xlu0 %v2604_v35  ;;  %v6323_v36 = vpop.f32.mrf.mxu1  ;;  %v6461_v35 = vld [vmem:[%s6914_s26 + $0x10] sm:$0xff]  }
 0xb14   : > { %v2506_v37 = vpop.f32.mrf.mxu1 }
 0xb16   : > { %2608 = vmax.xlane.f32.xlu0 %v2607_v38  ;;  %v6324_v39 = vpop.f32.mrf.mxu1 }
 0xb18   : > { %v2595_v40 = vpop.f32.mrf.mxu1 }
 0xb19   : > { %v2610_v42 = vsel %vm1704_vm11, %v2595_v40, -inf }
 0xb1a   : > { %2611 = vmax.xlane.f32.xlu0 %v2610_v42  ;;  %v6335_v44 = vpop.f32.mrf.mxu1 }
 0xb1c   : > { %v2598_v45 = vpop.f32.mrf.mxu1 }
 0xb1e   : > { %v6336_v43 = vpop.f32.mrf.mxu1 }
 0xb24   : > { %v2603_v48 = vpop.xlane.xlu1 %2602 }
 0xb25   : > { %v2613_v47 = vsub.f32 %v2457_v25, %v2603_v48 }
 0xb27   : > { %v2617_v49 = vmul.f32 1.442695, %v2613_v47 }
 0xb28   : > { %v2651_v50 = vpop.permute.xlu1 %2650 }
 0xb29   : > { %6622 = vpow2.f32 %v2617_v49  ;;  %v2656_v52 = vsel %vm1756_vm10, %v2651_v50, 0 }
 0xb2a   : > { %6338 = vmatpush3.bf16.msra.mxu0 %v2656_v52 }
 0xb2b   : > { %6349 = vmatprep.subr.bf16.mxu0 %v6694_v24 }
 0xb36   : > { %v6623_v53 = vpop.eup %6622 }
 0xb37   : > { %v2625_v54 = vsel %vm1704_vm11, %v6623_v53, 0.0 }
 0xb38   : > { %2626 = vadd.xlane.f32.xlu1 %v2625_v54 }
 0xb9b   : > { %v2606_v55 = vpop.xlane.xlu0 %2605 }
 0xb9c   : > { %v2614_v56 = vsub.f32 %v2503_v34, %v2606_v55 }
 0xb9e   : > { %v2619_v57 = vmul.f32 1.442695, %v2614_v56 }
 0xb9f   : > { %v2609_v58 = vpop.xlane.xlu0 %2608 }
 0xba0   : > { %6624 = vpow2.f32 %v2619_v57  ;;  %v2615_v60 = vsub.f32 %v2549_v30, %v2609_v58 }
 0xba2   : > { %v2621_v61 = vmul.f32 1.442695, %v2615_v60 }
 0xba3   : > { %v2612_v63 = vpop.xlane.xlu0 %2611 }
 0xba4   : > { %6626 = vpow2.f32 %v2621_v61  ;;  %v2616_v0 = vsub.f32 %v2595_v40, %v2612_v63 }
 0xba6   : > { %v2623_v1 = vmul.f32 1.442695, %v2616_v0 }
 0xba8   : > { %6628 = vpow2.f32 %v2623_v1 }
 0xbad   : > { %v6625_v2 = vpop.eup %6624 }
 0xbae   : > { %v2628_v3 = vsel %vm1704_vm11, %v6625_v2, 0.0 }
 0xbaf   : > { %2629 = vadd.xlane.f32.xlu0 %v2628_v3 }
 0xbb1   : > { %v6627_v5 = vpop.eup %6626 }
 0xbb2   : > { %v2631_v6 = vsel %vm1704_vm11, %v6627_v5, 0.0 }
 0xbb3   : > { %2632 = vadd.xlane.f32.xlu1 %v2631_v6 }
 0xbb5   : > { %v6629_v7 = vpop.eup %6628 }
 0xbb6   : > { %v2634_v8 = vsel %vm1704_vm11, %v6629_v7, 0.0 }
 0xbb7   : > { %2635 = vadd.xlane.f32.xlu0 %v2634_v8 }
 0xbc1   : > { %v2627_v9 = vpop.xlane.xlu1 %2626 }
 0xbc2   : > { %6630 = vrcp.f32 %v2627_v9 }
 0xbc4   : > { %2748 = vrot.lane.b32.xlu1 %v7222_v4, %s6697_s25 }
 0xbc8   : > { %2797 = vrot.lane.b32.xlu1 %v7235_v17, %s6697_s25 }
 0xbcd   : > { %2699 = vrot.lane.b32.xlu0 %v7212_v62, %s6697_s25  ;;  %s7785_s25 = scalar_lea.vmem %s7713_s18, %s6853_s8 }
 0xbcf   : > { %v6631_v10 = vpop.eup %6630 }
 0xbd0   : > { %v2641_v11 = vmul.f32 %v6631_v10, %v6623_v53 }
 0xbd2   : > { %v2645_v12 = vpack.c.bf16 %v2641_v11, %v2641_v11 }
 0xbd4   : > { %6340 = vmatmul.mubr.msk.bf16.vlgmr.msra.gmra.mxu0 %vm1704_vm11, %v2645_v12 }
 0xbd5   : > { %6351 = vmatprep.mubr.msk.bf16.mxu0 %vm6695_vm8, %v6694_v24 }
 0xc38   : > { %v2630_v13 = vpop.xlane.xlu0 %2629 }
 0xc39   : > { %6632 = vrcp.f32 %v2630_v13 }
 0xc3c   : > { %v2633_v14 = vpop.xlane.xlu1 %2632 }
 0xc3d   : > { %6634 = vrcp.f32 %v2633_v14 }
 0xc40   : > { %v2749_v15 = vpop.permute.xlu1 %2748  ;;  %v2636_v4 = vpop.xlane.xlu0 %2635 }
 0xc41   : > { %v2754_v16 = vsel %vm1756_vm10, %v2749_v15, 0  ;;  %6636 = vrcp.f32 %v2636_v4 }
 0xc42   : > { %6350 = vmatpush3.bf16.msra.mxu0 %v2754_v16 }
 0xc43   : > { %6361 = vmatprep.subr.bf16.mxu0 %v6694_v24 }
 0xc44   : > { %v2700_v62 = vpop.permute.xlu0 %2699  ;;  %v2798_v22 = vpop.permute.xlu1 %2797 }
 0xc45   : > { %v2705_v17 = vsel %vm1756_vm10, %v2700_v62, 0  ;;  %v2803_v26 = vsel %vm1756_vm10, %v2798_v22, 0 }
 0xc46   : > { %v6633_v18 = vpop.eup %6632  ;;  %6344 = vmatpush3.bf16.msra.mxu1 %v2705_v17 }
 0xc47   : > { %6355 = vmatprep.subr.bf16.mxu1 %v6694_v24  ;;  %v2642_v19 = vmul.f32 %v6633_v18, %v6625_v2  ;;  %v5749_v2 = vld [vmem:[%s7785_s25] ss:$0 sm:$0xff] }
 0xc49   : > { %v2646_v23 = vpack.c.bf16 %v2642_v19, %v2642_v19 }
 0xc4a   : > { %v6635_v25 = vpop.eup %6634 }
 0xc4b   : > { %6346 = vmatmul.mubr.msk.bf16.vlgmr.msra.gmra.mxu1 %vm1704_vm11, %v2646_v23  ;;  %v2643_v27 = vmul.f32 %v6635_v25, %v6627_v5 }
 0xc4c   : > { %6356 = vmatpush3.bf16.msra.mxu1 %v2803_v26  ;;  %6357 = vmatprep.mubr.msk.bf16.mxu1 %vm6695_vm8, %v6694_v24 }
 0xc4d   : > { %v2647_v29 = vpack.c.bf16 %v2643_v27, %v2643_v27  ;;  %6369 = vmatprep.subr.bf16.mxu1 %v6694_v24 }
 0xc4e   : > { %v6637_v30 = vpop.eup %6636 }
 0xc4f   : > { %6352 = vmatmul.mubr.msk.bf16.vlgmr.msra.gmra.mxu0 %vm1704_vm11, %v2647_v29  ;;  %v2644_v31 = vmul.f32 %v6637_v30, %v6629_v7 }
 0xc50   : > { %6362 = vmatpush3.bf16.msra.mxu0 %v6458_v28  ;;  %6365 = vmatprep.mubr.msk.bf16.mxu0 %vm6695_vm8, %v6694_v24 }
 0xc51   : > { %v2648_v34 = vpack.c.bf16 %v2644_v31, %v2644_v31  ;;  %6363 = vmatprep.subr.bf16.mxu0 %v6694_v24 }
 0xc53   : > { %6358 = vmatmul.mubr.msk.bf16.vlgmr.msra.gmra.mxu1 %vm1704_vm11, %v2648_v34 }
 0xc54   : > { %6364 = vmatpush3.bf16.msra.mxu0 %v6459_v32  ;;  %6370 = vmatpush3.bf16.msra.mxu1 %v6460_v33 }
 0xc55   : > { %6371 = vmatprep.subr.bf16.mxu1 %v6694_v24  ;;  %6377 = vmatprep.subr.bf16.mxu0 %v6694_v24 }
 0xc56   : > { %6373 = vmatprep.mubr.msk.bf16.mxu1 %vm6695_vm8, %v6694_v24 }
 0xc58   : > { %6372 = vmatpush3.bf16.msra.mxu1 %v6461_v35 }
 0xc59   : > { %6385 = vmatprep.subr.bf16.mxu1 %v6694_v24 }
 0xc94   : > { %v2692_v36 = vpop.f32.mrf.mxu0 }
 0xc95   : > { %v2845_v37 = vpack.c.bf16 %v2692_v36, %v2692_v36  ;;  %v3176_v36 = vld [vmem:[%s6932_s9 + $0x1c0] sm:$0xff] }
 0xc96   : > { %v6341_v38 = vpop.f32.mrf.mxu0 }
 0xc97   : > { %6366 = vmatmul.mubr.msk.bf16.vlgmr.msra.gmra.mxu0 %vm1510_vm9, %v2845_v37  ;;  %v3169_v37 = vld [vmem:[%s6932_s9 + $0x188] sm:$0xff] }
 0xc98   : > { %v2695_v39 = vpop.f32.mrf.mxu0  ;;  %6378 = vmatpush3.bf16.msra.mxu0 %v6458_v28  ;;  %6381 = vmatprep.mubr.msk.bf16.mxu0 %vm6695_vm8, %v6694_v24 }
 0xc99   : > { %6379 = vmatprep.subr.bf16.mxu0 %v6694_v24  ;;  %v3177_v39 = vld [vmem:[%s6932_s9 + $0x1c8] sm:$0xff] }
 0xc9a   : > { %v6342_v40 = vpop.f32.mrf.mxu0 }
 0xc9c   : > { %6380 = vmatpush3.bf16.msra.mxu0 %v6459_v32 }
 0xd0b   : > { %v2741_v42 = vpop.f32.mrf.mxu1 }
 0xd0c   : > { %v2846_v44 = vpack.c.bf16 %v2741_v42, %v2741_v42  ;;  %v5802_v42 = vcombine.low %v3169_v37, %v3177_v39 }
 0xd0d   : > { %v6347_v45 = vpop.f32.mrf.mxu1 }
 0xd0e   : > { %6374 = vmatmul.mubr.msk.bf16.vlgmr.msra.gmra.mxu1 %vm1510_vm9, %v2846_v44  ;;  %v5803_v44 = vcombine.high %v3169_v37, %v3177_v39  ;;  %v3152_v45 = vld [vmem:[%s6932_s9 + $0x100] sm:$0xff] }
 0xd0f   : > { %v2744_v43 = vpop.f32.mrf.mxu1  ;;  %v2790_v48 = vpop.f32.mrf.mxu0  ;;  %6386 = vmatpush3.bf16.msra.mxu1 %v6460_v33  ;;  %6389 = vmatprep.mubr.msk.bf16.mxu1 %vm6695_vm8, %v6694_v24  ;;  %v5750_v37 = vld [vmem:[%s7786_s24] ss:$0 sm:$0xff] }
 0xd10   : > { %v2847_v47 = vpack.c.bf16 %v2790_v48, %v2790_v48  ;;  %6387 = vmatprep.subr.bf16.mxu1 %v6694_v24  ;;  %v3160_v43 = vld [vmem:[%s6932_s9 + $0x140] sm:$0xff]  ;;  %v3153_v48 = vld [vmem:[%s6932_s9 + $0x108] sm:$0xff] }
 0xd11   : > { %v6348_v49 = vpop.f32.mrf.mxu1  ;;  %v6353_v50 = vpop.f32.mrf.mxu0 }
 0xd12   : > { %6382 = vmatmul.mubr.msk.bf16.vlgmr.msra.gmra.mxu0 %vm1510_vm9, %v2847_v47  ;;  %v5785_v47 = vcombine.high %v3152_v45, %v3160_v43  ;;  %v3161_v49 = vld [vmem:[%s6932_s9 + $0x148] sm:$0xff]  ;;  %v5784_v50 = vcombine.low %v3152_v45, %v3160_v43  ;;  %v3162_v45 = vld [vmem:[%s6932_s9 + $0x150] sm:$0xff]  ;;  %v3155_v43 = vld [vmem:[%s6932_s9 + $0x118] sm:$0xff] }
 0xd13   : > { %v2793_v52 = vpop.f32.mrf.mxu0  ;;  %v2839_v53 = vpop.f32.mrf.mxu1  ;;  %6388 = vmatpush3.bf16.msra.mxu1 %v6461_v35  ;;  %3623 = vmatprep.mubr.bf16.mxu0 %v6693_v51  ;;  %v3168_v35 = vld [vmem:[%s6932_s9 + $0x180] sm:$0xff] }
 0xd14   : > { %v2848_v54 = vpack.c.bf16 %v2839_v53, %v2839_v53  ;;  %v5801_v38 = vcombine.high %v3168_v35, %v3176_v36  ;;  %v5800_v40 = vcombine.low %v3168_v35, %v3176_v36  ;;  %3642 = vmatprep.subr.bf16.mxu1 %v5803_v44  ;;  %v5786_v52 = vcombine.low %v3153_v48, %v3161_v49 }
 0xd15   : > { %v6354_v55 = vpop.f32.mrf.mxu0  ;;  %v6359_v56 = vpop.f32.mrf.mxu1  ;;  %v5787_v53 = vcombine.high %v3153_v48, %v3161_v49  ;;  %v3163_v48 = vld [vmem:[%s6932_s9 + $0x158] sm:$0xff] }
 0xd16   : > { %6390 = vmatmul.mubr.msk.bf16.vlgmr.msra.gmra.mxu1 %vm1510_vm9, %v2848_v54  ;;  %3599 = vmatprep.subr.bf16.mxu0 %v5801_v38  ;;  %v3136_v54 = vld [vmem:[%s6932_s9 + $0x80] sm:$0xff]  ;;  %v3137_v56 = vld [vmem:[%s6932_s9 + $0x88] sm:$0xff] }
 0xd17   : > { %v2842_v57 = vpop.f32.mrf.mxu1  ;;  %3666 = vmatprep.mubr.bf16.mxu1 %v6693_v51  ;;  %3600 = vmatpush1.bf16.msra.mxu0 %v5800_v40  ;;  %v3144_v55 = vld [vmem:[%s6932_s9 + $0xc0] sm:$0xff] }
 0xd18   : > { %3643 = vmatpush1.bf16.msra.mxu1 %v5802_v42  ;;  %3601 = vmatprep.subr.bf16.mxu0 %v5785_v47  ;;  %v5769_v57 = vcombine.high %v3136_v54, %v3144_v55  ;;  %v5751_v42 = vld [vmem:[%s7788_s5] ss:$0 sm:$0xff] }
 0xd19   : > { %v6360_v58 = vpop.f32.mrf.mxu1  ;;  %3644 = vmatprep.subr.bf16.mxu1 %v5787_v53  ;;  %v5791_v53 = vcombine.high %v3155_v43, %v3163_v48 }
 0xd1a   : > { %v3145_v58 = vld [vmem:[%s6932_s9 + $0xc8] sm:$0xff] }
 0xd1b   : > { %3602 = vmatpush1.bf16.msra.mxu0 %v5784_v50 }
 0xd1c   : > { %3645 = vmatpush1.bf16.msra.mxu1 %v5786_v52  ;;  %3603 = vmatprep.subr.bf16.mxu0 %v5769_v57 }
 0xd57   : > { %v2898_v24 = vpop.f32.mrf.mxu0 }
 0xd58   : > { %v3045_v1 = vsel %vm1295_vm3, %v2898_v24, 0.0  ;;  %v5768_v24 = vcombine.low %v3136_v54, %v3144_v55  ;;  %v3146_v54 = vld [vmem:[%s6932_s9 + $0xd0] sm:$0xff]  ;;  %v3139_v55 = vld [vmem:[%s6932_s9 + $0x98] sm:$0xff] }
 0xd59   : > { %v6367_v60 = vpop.f32.mrf.mxu0 }
 0xd5a   : > { %v5770_v60 = vcombine.low %v3137_v56, %v3145_v58  ;;  %3604 = vmatpush1.bf16.msra.mxu0 %v5768_v24 }
 0xd5b   : > { %v2901_v61 = vpop.f32.mrf.mxu0 }
 0xd5c   : > { %v5771_v61 = vcombine.high %v3137_v56, %v3145_v58  ;;  %v3147_v56 = vld [vmem:[%s6932_s9 + $0xd8] sm:$0xff]  ;;  %v5790_v58 = vcombine.low %v3155_v43, %v3163_v48 }
 0xd5d   : > { %v6368_v63 = vpop.f32.mrf.mxu0  ;;  %v3183_v43 = vld [vmem:[%s6932_s9 + $0x1f8] sm:$0xff] }
 0xd5e   : > { %v3120_v63 = vld [vmem:[%s6932_s9] sm:$0xff]  ;;  %3646 = vmatprep.subr.bf16.mxu1 %v5771_v61  ;;  %v3122_v61 = vld [vmem:[%s6932_s9 + $0x10] sm:$0xff] }
 0xd5f   : > { %3647 = vmatpush1.bf16.msra.mxu1 %v5770_v60  ;;  %v5775_v60 = vcombine.high %v3139_v55, %v3147_v56 }
 0xdce   : > { %v2953_v0 = vpop.f32.mrf.mxu1 }
 0xdcf   : > { %v3046_v3 = vsel %vm1295_vm3, %v2953_v0, 0.0  ;;  %v3128_v0 = vld [vmem:[%s6932_s9 + $0x40] sm:$0xff] }
 0xdd0   : > { %v3047_v5 = vadd.f32 %v3046_v3, %v3045_v1  ;;  %v6375_v6 = vpop.f32.mrf.mxu1  ;;  %v3121_v1 = vld [vmem:[%s6932_s9 + $0x8] sm:$0xff]  ;;  %v5753_v3 = vcombine.high %v3120_v63, %v3128_v0 }
 0xdd1   : > { %v7349_v6 = vld [vmem:[%s6932_s9 + $0x190] sm:$0xff] }
 0xdd2   : > { %v3057_v7 = vadd.f32 %v5749_v2, %v3047_v5  ;;  %v2956_v8 = vpop.f32.mrf.mxu1  ;;  %v2996_v9 = vpop.f32.mrf.mxu0  ;;  %v3129_v5 = vld [vmem:[%s6932_s9 + $0x48] sm:$0xff]  ;;  %3605 = vmatprep.subr.bf16.mxu0 %v5753_v3  ;;  %v5774_v3 = vcombine.low %v3139_v55, %v3147_v56  ;;  %v3167_v55 = vld [vmem:[%s6932_s9 + $0x178] sm:$0xff] }
 0xdd3   : > { %v3048_v4 = vsel %vm1295_vm3, %v2996_v9, 0.0  ;;  %v5754_v8 = vcombine.low %v3121_v1, %v3129_v5  ;;  %v5755_v9 = vcombine.high %v3121_v1, %v3129_v5  ;;  %v3131_v1 = vld [vmem:[%s6932_s9 + $0x58] sm:$0xff] }
 0xdd4   : > { %v6376_v10 = vpop.f32.mrf.mxu1  ;;  %v6383_v11 = vpop.f32.mrf.mxu0  ;;  %v7309_v12 = vadd.f32 %v3057_v7, %v7147_v46  ;;  %v7352_v7 = vld [vmem:[%s6932_s9 + $0x1d0] sm:$0xff] }
 0xdd5   : > { %v5804_v10 = vcombine.low %v7349_v6, %v7352_v7  ;;  %v5805_v11 = vcombine.high %v7349_v6, %v7352_v7  ;;  %3648 = vmatprep.subr.bf16.mxu1 %v5755_v9  ;;  %v3172_v7 = vld [vmem:[%s6932_s9 + $0x1a0] sm:$0xff]  ;;  %v3173_v9 = vld [vmem:[%s6932_s9 + $0x1a8] sm:$0xff] }
 0xdd6   : > { %v2999_v13 = vpop.f32.mrf.mxu0  ;;  %v3039_v14 = vpop.f32.mrf.mxu1  ;;  %v3063_v15 = vsel %vm1295_vm3, %v7309_v12, 0.0  ;;  %3649 = vmatpush1.bf16.msra.mxu1 %v5754_v8  ;;  %v3180_v8 = vld [vmem:[%s6932_s9 + $0x1e0] sm:$0xff] }
 0xdd7   : > { %v3049_v16 = vsel %vm1295_vm3, %v3039_v14, 0.0  ;;  %3064 = vadd.xlane.f32.xlu1 %v3063_v15  ;;  %v3171_v13 = vld [vmem:[%s6932_s9 + $0x198] sm:$0xff] }
 0xdd8   : > { %v3050_v62 = vadd.f32 %v3049_v16, %v3048_v4  ;;  %v6384_v17 = vpop.f32.mrf.mxu0  ;;  %v6391_v18 = vpop.f32.mrf.mxu1  ;;  %v3179_v14 = vld [vmem:[%s6932_s9 + $0x1d8] sm:$0xff] }
 0xdd9   : > { %v5806_v15 = vcombine.low %v3171_v13, %v3179_v14  ;;  %v5807_v4 = vcombine.high %v3171_v13, %v3179_v14  ;;  %v5809_v14 = vcombine.high %v3172_v7, %v3180_v8 }
 0xdda   : > { %v3058_v19 = vadd.f32 %v5749_v2, %v3050_v62  ;;  %v3042_v22 = vpop.f32.mrf.mxu1  ;;  %v5752_v2 = vcombine.low %v3120_v63, %v3128_v0  ;;  %v3130_v63 = vld [vmem:[%s6932_s9 + $0x50] sm:$0xff]  ;;  %v3123_v0 = vld [vmem:[%s6932_s9 + $0x18] sm:$0xff] }
 0xddb   : > { %3728 = vmatprep.subr.bf16.mxu1 %v5807_v4  ;;  %v5757_v5 = vcombine.high %v3122_v61, %v3130_v63  ;;  %v5759_v6 = vcombine.high %v3123_v0, %v3131_v1  ;;  %v5758_v13 = vcombine.low %v3123_v0, %v3131_v1  ;;  %v3156_v4 = vld [vmem:[%s6932_s9 + $0x120] sm:$0xff]  ;;  %v3151_v0 = vld [vmem:[%s6932_s9 + $0xf8] sm:$0xff] }
 0xddc   : > { %v6392_v23 = vpop.f32.mrf.mxu1  ;;  %v7316_v46 = vadd.f32 %v3058_v19, %v7153_v59  ;;  %3606 = vmatpush1.bf16.msra.mxu0 %v5752_v2 }
 0xddd   : > { %3685 = vmatprep.subr.bf16.mxu0 %v5805_v11  ;;  %v5756_v11 = vcombine.low %v3122_v61, %v3130_v63  ;;  %v3150_v61 = vld [vmem:[%s6932_s9 + $0xf0] sm:$0xff]  ;;  %v3143_v63 = vld [vmem:[%s6932_s9 + $0xb8] sm:$0xff] }
 0xdde   : > { %v3066_v25 = vsel %vm1295_vm3, %v7316_v46, 0.0 }
 0xddf   : > { %3067 = vadd.xlane.f32.xlu0 %v3066_v25 }
 0xe60   : > { %v3065_v26 = vpop.xlane.xlu1 %3064 }
 0xe61   : > { %v3069_v27 = vmul.f32 0.015625, %v3065_v26 }
 0xe63   : > { %v7321_v28 = vsub.f32 %v7309_v12, %v3069_v27 }
 0xe65   : > { %v3073_v29 = vmul.f32 %v7321_v28, %v7321_v28 }
 0xe67   : > { %v3075_v30 = vsel %vm1295_vm3, %v3073_v29, 0.0 }
 0xe68   : > { %3076 = vadd.xlane.f32.xlu0 %v3075_v30  ;;  %v3068_v59 = vpop.xlane.xlu0 %3067 }
 0xe69   : > { %v3070_v31 = vmul.f32 0.015625, %v3068_v59 }
 0xe6b   : > { %v7327_v32 = vsub.f32 %v7316_v46, %v3070_v31 }
 0xe6d   : > { %v3074_v33 = vmul.f32 %v7327_v32, %v7327_v32 }
 0xe6f   : > { %v3078_v34 = vsel %vm1295_vm3, %v3074_v33, 0.0 }
 0xe70   : > { %3079 = vadd.xlane.f32.xlu0 %v3078_v34 }
 0xef1   : > { %v3077_v16 = vpop.xlane.xlu0 %3076 }
 0xef2   : > { %v3081_v62 = vmul.f32 0.015873017, %v3077_v16  ;;  %v3164_v16 = vld [vmem:[%s6932_s9 + $0x160] sm:$0xff] }
 0xef4   : > { %6638 = vrsqrt.f32 %v3081_v62  ;;  %vm3085_vm0 = vcmp.eq.f32.partialorder %v3081_v62, inf  ;;  %v3088_v23 = vand.u32 2147483648, %v3081_v62  ;;  %vm3087_vm1 = vcmp.eq.f32.partialorder %v3081_v62, 0.0 }
 0xef9   : > { %v3080_v17 = vpop.xlane.xlu0 %3079 }
 0xefa   : > { %v3082_v18 = vmul.f32 0.015873017, %v3080_v17  ;;  %v3165_v17 = vld [vmem:[%s6932_s9 + $0x168] sm:$0xff] }
 0xefc   : > { %6640 = vrsqrt.f32 %v3082_v18  ;;  %vm3092_vm2 = vcmp.eq.f32.partialorder %v3082_v18, inf  ;;  %v3095_v59 = vand.u32 2147483648, %v3082_v18  ;;  %vm3094_vm4 = vcmp.eq.f32.partialorder %v3082_v18, 0.0 }
 0xf01   : > { %v6639_v19 = vpop.eup %6638 }
 0xf02   : > { %v3084_v22 = vmul.f32 %v6639_v19, %v3081_v62 }
 0xf04   : > { %v3086_v25 = vsel %vm3085_vm0, %v3081_v62, %v3084_v22  ;;  %v3157_v62 = vld [vmem:[%s6932_s9 + $0x128] sm:$0xff]  ;;  %v5793_v22 = vcombine.high %v3156_v4, %v3164_v16 }
 0xf05   : > { %v3089_v26 = vsel %vm3087_vm1, %v3088_v23, %v3086_v25  ;;  %v5795_v23 = vcombine.high %v3157_v62, %v3165_v17  ;;  %v3140_v25 = vld [vmem:[%s6932_s9 + $0xa0] sm:$0xff] }
 0xf06   : > { %v3097_v27 = vadd.f32 1e-06, %v3089_v26  ;;  %v3148_v26 = vld [vmem:[%s6932_s9 + $0xe0] sm:$0xff] }
 0xf08   : > { %6642 = vrcp.f32 %v3097_v27  ;;  %v3141_v27 = vld [vmem:[%s6932_s9 + $0xa8] sm:$0xff] }
 0xf09   : > { %v6641_v29 = vpop.eup %6640 }
 0xf0a   : > { %v3091_v30 = vmul.f32 %v6641_v29, %v3082_v18  ;;  %v3149_v29 = vld [vmem:[%s6932_s9 + $0xe8] sm:$0xff] }
 0xf0c   : > { %v3093_v31 = vsel %vm3092_vm2, %v3082_v18, %v3091_v30  ;;  %v5808_v18 = vcombine.low %v3172_v7, %v3180_v8  ;;  %v5792_v30 = vcombine.low %v3156_v4, %v3164_v16  ;;  %v3134_v7 = vld [vmem:[%s6932_s9 + $0x70] sm:$0xff]  ;;  %v3127_v8 = vld [vmem:[%s6932_s9 + $0x38] sm:$0xff] }
 0xf0d   : > { %v3096_v33 = vsel %vm3094_vm4, %v3095_v59, %v3093_v31  ;;  %v5794_v59 = vcombine.low %v3157_v62, %v3165_v17  ;;  %v5777_v31 = vcombine.high %v3140_v25, %v3148_v26  ;;  %v6463_v16 = vld [vmem:[%s6944_s4 + $0xf8] sm:$0xff]  }
 0xf0e   : > { %v3098_v34 = vadd.f32 1e-06, %v3096_v33  ;;  %v5779_v33 = vcombine.high %v3141_v27, %v3149_v29  ;;  %v6464_v62 = vld [vmem:[%s6944_s4 + $0x38] sm:$0xff]  }
 0xf0f   : > { %v6465_v17 = vld [vmem:[%s6944_s4 + $0xb8] sm:$0xff]  }
 0xf10   : > { %6644 = vrcp.f32 %v3098_v34  ;;  %v3124_v34 = vld [vmem:[%s6932_s9 + $0x20] sm:$0xff] }
 0xf15   : > { %v6643_v35 = vpop.eup %6642 }
 0xf16   : > { %v3100_v36 = vmul.f32 %v6643_v35, %v7321_v28  ;;  %v3154_v28 = vld [vmem:[%s6932_s9 + $0x110] sm:$0xff]  ;;  %v3132_v35 = vld [vmem:[%s6932_s9 + $0x60] sm:$0xff] }
 0xf17   : > { %v5789_v52 = vcombine.high %v3154_v28, %v3162_v45  ;;  %v5788_v57 = vcombine.low %v3154_v28, %v3162_v45  ;;  %v3182_v28 = vld [vmem:[%s6932_s9 + $0x1f0] sm:$0xff]  ;;  %v3175_v45 = vld [vmem:[%s6932_s9 + $0x1b8] sm:$0xff]  ;;  %v5760_v48 = vcombine.low %v3124_v34, %v3132_v35 }
 0xf18   : > { %v3109_v40 = vmul.f32 %v5750_v37, %v3100_v36  ;;  %v3125_v36 = vld [vmem:[%s6932_s9 + $0x28] sm:$0xff] }
 0xf1a   : > { %v3117_v47 = vadd.f32 %v5751_v42, %v3109_v40  ;;  %v5761_v40 = vcombine.high %v3124_v34, %v3132_v35  ;;  %v6479_v34 = vld [vmem:[%s6944_s4 + $0xd8] sm:$0xff]  }
 0xf1b   : > { %v6480_v35 = vld [vmem:[%s6944_s4 + $0x18] sm:$0xff]  }
 0xf1d   : > { %v6645_v38 = vpop.eup %6644 }
 0xf1e   : > { %v3102_v39 = vmul.f32 %v6645_v38, %v7327_v32  ;;  %v3138_v32 = vld [vmem:[%s6932_s9 + $0x90] sm:$0xff]  ;;  %v5776_v38 = vcombine.low %v3140_v25, %v3148_v26  ;;  %v6470_v25 = vld [vmem:[%s6944_s4 + $0x68] sm:$0xff]  }
 0xf1f   : > { %v5773_v24 = vcombine.high %v3138_v32, %v3146_v54  ;;  %v5772_v2 = vcombine.low %v3138_v32, %v3146_v54  ;;  %v3166_v32 = vld [vmem:[%s6932_s9 + $0x170] sm:$0xff]  ;;  %v3159_v54 = vld [vmem:[%s6932_s9 + $0x138] sm:$0xff]  ;;  %v6471_v26 = vld [vmem:[%s6944_s4 + $0xe8] sm:$0xff]  }
 0xf20   : > { %v3110_v44 = vmul.f32 %v5750_v37, %v3102_v39  ;;  %v3133_v37 = vld [vmem:[%s6932_s9 + $0x68] sm:$0xff]  ;;  %v5778_v39 = vcombine.low %v3141_v27, %v3149_v29 }
 0xf21   : > { %v6472_v27 = vld [vmem:[%s6944_s4 + $0x28] sm:$0xff]  }
 0xf22   : > { %v3118_v49 = vadd.f32 %v5751_v42, %v3110_v44  ;;  %v5763_v42 = vcombine.high %v3125_v36, %v3133_v37  ;;  %v3174_v44 = vld [vmem:[%s6932_s9 + $0x1b0] sm:$0xff]  ;;  %v6473_v29 = vld [vmem:[%s6944_s4 + $0xa8] sm:$0xff]  }
 0xf23   : > { %v5812_v56 = vcombine.low %v3174_v44, %v3182_v28 }
 0xf24   : > { %v7376_v50 = vpack.c.bf16 %v3118_v49, %v3117_v47  ;;  %v5762_v47 = vcombine.low %v3125_v36, %v3133_v37  ;;  %v5813_v49 = vcombine.high %v3174_v44, %v3182_v28  ;;  %v6481_v36 = vld [vmem:[%s6944_s4 + $0x98] sm:$0xff]   ;;  %v6482_v37 = vld [vmem:[%s6944_s4 + $0x50] sm:$0xff]   ;;  %v6487_v44 = vld [vmem:[%s6944_s4 + $0xc8] sm:$0xff]  }
 0xf25   : > { %v6488_v28 = vld [vmem:[%s6944_s4 + $0x8] sm:$0xff]  }
 0xf26   : > { %5816 = vmatmul.mubr.msk.bf16.vlgmr.msra.gmra.mxu0 %vm1295_vm3, %v7376_v50  ;;  %5817 = vmatmul.mubr.msk.bf16.vlgmr.msra.gmra.mxu1 %vm1295_vm3, %v7376_v50 }
 0xf27   : > { %3686 = vmatpush1.bf16.msra.mxu0 %v5804_v10  ;;  %3729 = vmatpush1.bf16.msra.mxu1 %v5806_v15  ;;  %v3181_v10 = vld [vmem:[%s6932_s9 + $0x1e8] sm:$0xff] }
 0xf28   : > { %3687 = vmatprep.subr.bf16.mxu0 %v5789_v52  ;;  %3730 = vmatprep.subr.bf16.mxu1 %v5791_v53  ;;  %v5811_v15 = vcombine.high %v3173_v9, %v3181_v10  ;;  %v5810_v19 = vcombine.low %v3173_v9, %v3181_v10  ;;  %v5815_v52 = vcombine.high %v3175_v45, %v3183_v43  ;;  %v3158_v53 = vld [vmem:[%s6932_s9 + $0x130] sm:$0xff]  ;;  %v3135_v9 = vld [vmem:[%s6932_s9 + $0x78] sm:$0xff] }
 0xf29   : > { %3709 = vmatprep.mubr.bf16.mxu0 %v6693_v51  ;;  %3752 = vmatprep.mubr.bf16.mxu1 %v6693_v51  ;;  %v5796_v1 = vcombine.low %v3158_v53, %v3166_v32  ;;  %v5766_v4 = vcombine.low %v3127_v8, %v3135_v9 }
 0xf2b   : > { %3688 = vmatpush1.bf16.msra.mxu0 %v5788_v57  ;;  %3731 = vmatpush1.bf16.msra.mxu1 %v5790_v58  ;;  %v5814_v57 = vcombine.low %v3175_v45, %v3183_v43  ;;  %v5797_v58 = vcombine.high %v3158_v53, %v3166_v32  ;;  %v6489_v45 = vld [vmem:[%s6944_s4 + $0x88] sm:$0xff]   ;;  %v6490_v43 = vld [vmem:[%s6944_s4 + $0x40] sm:$0xff]   ;;  %v6495_v53 = vld [vmem:[%s6944_s4 + $0x1f8] sm:$0xff]   ;;  %v3214_v32 = vsub.s32 6, %v7032_v20 }
 0xf2c   : > { %3689 = vmatprep.subr.bf16.mxu0 %v5773_v24  ;;  %3732 = vmatprep.subr.bf16.mxu1 %v5775_v60  ;;  %v5799_v24 = vcombine.high %v3159_v54, %v3167_v55  ;;  %v3142_v60 = vld [vmem:[%s6932_s9 + $0xb0] sm:$0xff] }
 0xf2d   : > { %v5780_v10 = vcombine.low %v3142_v60, %v3150_v61 }
 0xf2f   : > { %3690 = vmatpush1.bf16.msra.mxu0 %v5772_v2  ;;  %3733 = vmatpush1.bf16.msra.mxu1 %v5774_v3  ;;  %v5798_v2 = vcombine.low %v3159_v54, %v3167_v55  ;;  %v5781_v3 = vcombine.high %v3142_v60, %v3150_v61  ;;  %v7476_v54 = vld [vmem:[%s6938_s7 + $0x8] sm:$0xff] }
 0xf30   : > { %3691 = vmatprep.subr.bf16.mxu0 %v5757_v5  ;;  %3734 = vmatprep.subr.bf16.mxu1 %v5759_v6  ;;  %v5783_v5 = vcombine.high %v3143_v63, %v3151_v0  ;;  %v3126_v6 = vld [vmem:[%s6932_s9 + $0x30] sm:$0xff]  ;;  %v7481_v55 = vrot.slane %v7476_v54, %v3214_v32 }
 0xf33   : > { %3692 = vmatpush1.bf16.msra.mxu0 %v5756_v11  ;;  %3735 = vmatpush1.bf16.msra.mxu1 %v5758_v13  ;;  %v5782_v11 = vcombine.low %v3143_v63, %v3151_v0  ;;  %v5765_v13 = vcombine.high %v3126_v6, %v3134_v7 }
 0xf34   : > { %3771 = vmatprep.subr.bf16.mxu0 %v5809_v14  ;;  %3814 = vmatprep.subr.bf16.mxu1 %v5811_v15  ;;  %v5767_v14 = vcombine.high %v3127_v8, %v3135_v9  ;;  %v5764_v15 = vcombine.low %v3126_v6, %v3134_v7 }
 0xf36   : > { %5818 = vmatmul.mubr.msk.bf16.vlgmr.msra.gmra.mxu0 %vm1295_vm3, %v7376_v50  ;;  %5819 = vmatmul.mubr.msk.bf16.vlgmr.msra.gmra.mxu1 %vm1295_vm3, %v7376_v50 }
 0xf37   : > { %3772 = vmatpush1.bf16.msra.mxu0 %v5808_v18  ;;  %3815 = vmatpush1.bf16.msra.mxu1 %v5810_v19  ;;  %v6466_v18 = vld [vmem:[%s6944_s4 + $0x70] sm:$0xff]  }
 0xf38   : > { %3773 = vmatprep.subr.bf16.mxu0 %v5793_v22  ;;  %3816 = vmatprep.subr.bf16.mxu1 %v5795_v23  ;;  %v6467_v19 = vld [vmem:[%s6944_s4 + $0xf0] sm:$0xff]  }
 0xf39   : > { %3795 = vmatprep.mubr.bf16.mxu0 %v6693_v51  ;;  %3838 = vmatprep.mubr.bf16.mxu1 %v6693_v51  ;;  %v6468_v22 = vld [vmem:[%s6944_s4 + $0x30] sm:$0xff]  }
 0xf3a   : > { %v6469_v23 = vld [vmem:[%s6944_s4 + $0xb0] sm:$0xff]  }
 0xf3b   : > { %3774 = vmatpush1.bf16.msra.mxu0 %v5792_v30  ;;  %3817 = vmatpush1.bf16.msra.mxu1 %v5794_v59  ;;  %v6475_v30 = vld [vmem:[%s6944_s4 + $0xe0] sm:$0xff]  }
 0xf3c   : > { %3775 = vmatprep.subr.bf16.mxu0 %v5777_v31  ;;  %3818 = vmatprep.subr.bf16.mxu1 %v5779_v33  ;;  %v6476_v59 = vld [vmem:[%s6944_s4 + $0x20] sm:$0xff]   ;;  %v6478_v33 = vld [vmem:[%s6944_s4 + $0x58] sm:$0xff]  }
 0xf3d   : > { %v6477_v31 = vld [vmem:[%s6944_s4 + $0xa0] sm:$0xff]  }
 0xf3f   : > { %3776 = vmatpush1.bf16.msra.mxu0 %v5776_v38  ;;  %3819 = vmatpush1.bf16.msra.mxu1 %v5778_v39  ;;  %v6483_v38 = vld [vmem:[%s6944_s4 + $0xd0] sm:$0xff]  }
 0xf40   : > { %3777 = vmatprep.subr.bf16.mxu0 %v5761_v40  ;;  %3820 = vmatprep.subr.bf16.mxu1 %v5763_v42  ;;  %v6484_v39 = vld [vmem:[%s6944_s4 + $0x10] sm:$0xff]   ;;  %v6486_v42 = vld [vmem:[%s6944_s4 + $0x48] sm:$0xff]  }
 0xf41   : > { %v6485_v40 = vld [vmem:[%s6944_s4 + $0x90] sm:$0xff]  }
 0xf43   : > { %3778 = vmatpush1.bf16.msra.mxu0 %v5760_v48  ;;  %3821 = vmatpush1.bf16.msra.mxu1 %v5762_v47  ;;  %v6491_v48 = vld [vmem:[%s6944_s4 + $0xc0] sm:$0xff]  }
 0xf44   : > { %3857 = vmatprep.subr.bf16.mxu0 %v5813_v49  ;;  %3900 = vmatprep.subr.bf16.mxu1 %v5815_v52  ;;  %v6492_v47 = vld [vmem:[%s6944_s4] sm:$0xff]   ;;  %v6494_v52 = vld [vmem:[%s6944_s4 + $0x178] sm:$0xff]  }
 0xf45   : > { %v6493_v49 = vld [vmem:[%s6944_s4 + $0x80] sm:$0xff]  }
 0xf46   : > { %5820 = vmatmul.mubr.msk.bf16.vlgmr.msra.gmra.mxu0 %vm1295_vm3, %v7376_v50  ;;  %5821 = vmatmul.mubr.msk.bf16.vlgmr.msra.gmra.mxu1 %vm1295_vm3, %v7376_v50 }
 0xf47   : > { %3858 = vmatpush1.bf16.msra.mxu0 %v5812_v56  ;;  %3901 = vmatpush1.bf16.msra.mxu1 %v5814_v57  ;;  %v3202_v56 = vsub.s32 3, %v7032_v20  ;;  %v3198_v57 = vsub.s32 2, %v7032_v20 }
 0xf48   : > { %3859 = vmatprep.subr.bf16.mxu0 %v5797_v58  ;;  %3902 = vmatprep.subr.bf16.mxu1 %v5799_v24  ;;  %v7486_v58 = vld [vmem:[%s6938_s7] sm:$0xff] }
 0xf49   : > { %3881 = vmatprep.mubr.bf16.mxu0 %v6693_v51  ;;  %3924 = vmatprep.mubr.bf16.mxu1 %v6693_v51  ;;  %v6462_v51 = vld [vmem:[%s6944_s4 + $0x78] sm:$0xff]   ;;  %v3195_v61 = vrot.slane %v7486_v58, %v7059_v41  ;;  %v3203_v63 = vrot.slane %v7486_v58, %v3202_v56  ;;  %v3191_v0 = vrot.slane %v7486_v58, %v7035_v21 }
 0xf4b   : > { %3860 = vmatpush1.bf16.msra.mxu0 %v5796_v1  ;;  %3903 = vmatpush1.bf16.msra.mxu1 %v5798_v2  ;;  %v3199_v1 = vrot.slane %v7486_v58, %v3198_v57 }
 0xf4c   : > { %3861 = vmatprep.subr.bf16.mxu0 %v5781_v3  ;;  %3904 = vmatprep.subr.bf16.mxu1 %v5783_v5 }
 0xf4f   : > { %3862 = vmatpush1.bf16.msra.mxu0 %v5780_v10  ;;  %3905 = vmatpush1.bf16.msra.mxu1 %v5782_v11 }
 0xf50   : > { %3863 = vmatprep.subr.bf16.mxu0 %v5765_v13  ;;  %3906 = vmatprep.subr.bf16.mxu1 %v5767_v14 }
 0xf53   : > { %3864 = vmatpush1.bf16.msra.mxu0 %v5764_v15  ;;  %3907 = vmatpush1.bf16.msra.mxu1 %v5766_v4 }
 0xf54   : > { %6033 = vmatprep.subr.bf16.mxu0 %v6462_v51  ;;  %6055 = vmatprep.subr.bf16.mxu1 %v6463_v16 }
 0xf56   : > { %5822 = vmatmul.mubr.msk.bf16.vlgmr.msra.gmra.mxu0 %vm1295_vm3, %v7376_v50  ;;  %5823 = vmatmul.mubr.msk.bf16.vlgmr.msra.gmra.mxu1 %vm1295_vm3, %v7376_v50  ;;  %v6474_v50 = vld [vmem:[%s6944_s4 + $0x60] sm:$0xff]  }
 0xf57   : > { %6034 = vmatpush3.bf16.msra.mxu0 %v6464_v62  ;;  %6056 = vmatpush3.bf16.msra.mxu1 %v6465_v17 }
 0xf58   : > { %6035 = vmatprep.subr.bf16.mxu0 %v6466_v18  ;;  %6057 = vmatprep.subr.bf16.mxu1 %v6467_v19 }
 0xf5b   : > { %6036 = vmatpush3.bf16.msra.mxu0 %v6468_v22  ;;  %6058 = vmatpush3.bf16.msra.mxu1 %v6469_v23 }
 0xf5c   : > { %6037 = vmatprep.subr.bf16.mxu0 %v6470_v25  ;;  %6059 = vmatprep.subr.bf16.mxu1 %v6471_v26 }
 0xf5f   : > { %6038 = vmatpush3.bf16.msra.mxu0 %v6472_v27  ;;  %6060 = vmatpush3.bf16.msra.mxu1 %v6473_v29  ;;  %v6496_v29 = vld [vmem:[%s6944_s4 + $0x138] sm:$0xff]  }
 0xf60   : > { %6039 = vmatprep.subr.bf16.mxu0 %v6474_v50  ;;  %6061 = vmatprep.subr.bf16.mxu1 %v6475_v30  ;;  %v6497_v50 = vld [vmem:[%s6944_s4 + $0x1b8] sm:$0xff]  }
 0xf63   : > { %6040 = vmatpush3.bf16.msra.mxu0 %v6476_v59  ;;  %6062 = vmatpush3.bf16.msra.mxu1 %v6477_v31  ;;  %v6498_v31 = vld [vmem:[%s6944_s4 + $0x170] sm:$0xff]  }
 0xf64   : > { %6041 = vmatprep.subr.bf16.mxu0 %v6478_v33  ;;  %6063 = vmatprep.subr.bf16.mxu1 %v6479_v34  ;;  %v6499_v33 = vld [vmem:[%s6944_s4 + $0x1f0] sm:$0xff]   ;;  %v3210_v34 = vsub.s32 5, %v7032_v20 }
 0xf67   : > { %6042 = vmatpush3.bf16.msra.mxu0 %v6480_v35  ;;  %6064 = vmatpush3.bf16.msra.mxu1 %v6481_v36  ;;  %v3218_v35 = vsub.s32 7, %v7032_v20  ;;  %v6500_v36 = vld [vmem:[%s6944_s4 + $0x130] sm:$0xff]  }
 0xf68   : > { %6043 = vmatprep.subr.bf16.mxu0 %v6482_v37  ;;  %6065 = vmatprep.subr.bf16.mxu1 %v6483_v38  ;;  %v6501_v37 = vld [vmem:[%s6944_s4 + $0x1b0] sm:$0xff]  }
 0xf6b   : > { %6044 = vmatpush3.bf16.msra.mxu0 %v6484_v39  ;;  %6066 = vmatpush3.bf16.msra.mxu1 %v6485_v40  ;;  %v6502_v40 = vld [vmem:[%s6944_s4 + $0x168] sm:$0xff]  }
 0xf6c   : > { %6045 = vmatprep.subr.bf16.mxu0 %v6486_v42  ;;  %6067 = vmatprep.subr.bf16.mxu1 %v6487_v44  ;;  %v6503_v42 = vld [vmem:[%s6944_s4 + $0x1e8] sm:$0xff]   ;;  %v3211_v44 = vrot.slane %v7486_v58, %v3210_v34 }
 0xf6f   : > { %6046 = vmatpush3.bf16.msra.mxu0 %v6488_v28  ;;  %6068 = vmatpush3.bf16.msra.mxu1 %v6489_v45  ;;  %v3219_v28 = vrot.slane %v7486_v58, %v3218_v35 }
 0xf70   : > { %6047 = vmatprep.subr.bf16.mxu0 %v6490_v43  ;;  %6069 = vmatprep.subr.bf16.mxu1 %v6491_v48  ;;  %v6504_v48 = vld [vmem:[%s6944_s4 + $0x128] sm:$0xff]  }
 0xf73   : > { %6048 = vmatpush3.bf16.msra.mxu0 %v6492_v47  ;;  %6070 = vmatpush3.bf16.msra.mxu1 %v6493_v49  ;;  %v6505_v47 = vld [vmem:[%s6944_s4 + $0x1a8] sm:$0xff]  }
 0xf74   : > { %6077 = vmatprep.subr.bf16.mxu0 %v6494_v52  ;;  %6099 = vmatprep.subr.bf16.mxu1 %v6495_v53  ;;  %v6506_v53 = vld [vmem:[%s6944_s4 + $0x160] sm:$0xff]  }
 0xfe6   : > { %v3625_v24 = vpop.f32.mrf.mxu0  ;;  %v3668_v60 = vpop.f32.mrf.mxu1 }
 0xfe7   : > { %v3626_v11 = vadd.f32 %v3625_v24, %v3191_v0  ;;  %v3669_v13 = vadd.f32 %v3668_v60, %v3199_v1  ;;  %v6507_v24 = vld [vmem:[%s6944_s4 + $0x1e0] sm:$0xff]  }
 0xfe8   : > { %v3627_v2 = vpop.f32.mrf.mxu0  ;;  %v3670_v3 = vpop.f32.mrf.mxu1 }
 0xfe9   : > { %v3628_v7 = vadd.f32 %v3627_v2, %v3195_v61  ;;  %v3671_v8 = vadd.f32 %v3670_v3, %v3203_v63  ;;  %v3935_v23 = vmax.f32 %v3626_v11, 0.0  ;;  %v3937_v25 = vmax.f32 %v3669_v13, 0.0  ;;  %v6508_v3 = vld [vmem:[%s6944_s4 + $0x120] sm:$0xff]  }
 0xfea   : > { %v3629_v5 = vpop.f32.mrf.mxu0  ;;  %v3672_v6 = vpop.f32.mrf.mxu1 }
 0xfeb   : > { %v3630_v9 = vadd.f32 %v3629_v5, %v3191_v0  ;;  %v3673_v10 = vadd.f32 %v3672_v6, %v3199_v1  ;;  %v3936_v17 = vmax.f32 %v3628_v7, 0.0  ;;  %v3938_v18 = vmax.f32 %v3671_v8, 0.0  ;;  %v6509_v5 = vld [vmem:[%s6944_s4 + $0x1a0] sm:$0xff]   ;;  %v6510_v6 = vld [vmem:[%s6944_s4 + $0x158] sm:$0xff]  }
 0xfec   : > { %v3631_v14 = vpop.f32.mrf.mxu0  ;;  %v3674_v15 = vpop.f32.mrf.mxu1  ;;  %v6511_v7 = vld [vmem:[%s6944_s4 + $0x1d8] sm:$0xff]  }
 0xfed   : > { %v3632_v4 = vadd.f32 %v3631_v14, %v3195_v61  ;;  %v3675_v51 = vadd.f32 %v3674_v15, %v3203_v63  ;;  %v3951_v16 = vmax.f32 %v3630_v9, 0.0  ;;  %v3953_v62 = vmax.f32 %v3673_v10, 0.0  ;;  %v6512_v15 = vld [vmem:[%s6944_s4 + $0x118] sm:$0xff]  }
 0xfef   : > { %v3952_v19 = vmax.f32 %v3632_v4, 0.0  ;;  %v3954_v22 = vmax.f32 %v3675_v51, 0.0  ;;  %v3967_v30 = vpack.c.bf16 %v3951_v16, %v3935_v23  ;;  %v3969_v59 = vpack.c.bf16 %v3953_v62, %v3937_v25  ;;  %v6513_v4 = vld [vmem:[%s6944_s4 + $0x198] sm:$0xff]   ;;  %v6514_v51 = vld [vmem:[%s6944_s4 + $0x150] sm:$0xff]   ;;  %v6518_v23 = vld [vmem:[%s6944_s4 + $0x148] sm:$0xff]  }
 0xff0   : > { %v6515_v16 = vld [vmem:[%s6944_s4 + $0x1d0] sm:$0xff]   ;;  %v3206_v62 = vsub.s32 4, %v7032_v20  ;;  %v6519_v25 = vld [vmem:[%s6944_s4 + $0x1c8] sm:$0xff]  }
 0xff1   : > { %v3968_v26 = vpack.c.bf16 %v3952_v19, %v3936_v17  ;;  %v3970_v27 = vpack.c.bf16 %v3954_v22, %v3938_v18  ;;  %v6516_v17 = vld [vmem:[%s6944_s4 + $0x110] sm:$0xff]  }
 0xff2   : > { %v6517_v18 = vld [vmem:[%s6944_s4 + $0x190] sm:$0xff]  }
 0xff3   : > { %5039 = vmatprep.mubr.bf16.mxu0 %v3968_v26  ;;  %5080 = vmatprep.mubr.bf16.mxu1 %v3970_v27  ;;  %v3207_v26 = vrot.slane %v7486_v58, %v3206_v62  ;;  %v3215_v27 = vrot.slane %v7486_v58, %v3214_v32  ;;  %v6522_v58 = vld [vmem:[%s6944_s4 + $0x140] sm:$0xff]  }
 0xff4   : > { %5040 = vmatmul.mubr.bf16.vlgmr.msra.gmra.mxu0 %v3967_v30  ;;  %5081 = vmatmul.mubr.bf16.vlgmr.msra.gmra.mxu1 %v3969_v59  ;;  %v3227_v30 = vrot.slane %v7476_v54, %v7059_v41  ;;  %v6520_v59 = vld [vmem:[%s6944_s4 + $0x108] sm:$0xff]   ;;  %v6523_v41 = vld [vmem:[%s6944_s4 + $0x1c0] sm:$0xff]  }
 0xff5   : > { %6078 = vmatpush3.bf16.msra.mxu0 %v6496_v29  ;;  %6100 = vmatpush3.bf16.msra.mxu1 %v6497_v50 }
 0xff6   : > { %v7506_v38 = vpop.f32.mrf.mxu0  ;;  %v7508_v39 = vpop.f32.mrf.mxu1  ;;  %6079 = vmatprep.subr.bf16.mxu0 %v6498_v31  ;;  %6101 = vmatprep.subr.bf16.mxu1 %v6499_v33  ;;  %v6521_v31 = vld [vmem:[%s6944_s4 + $0x188] sm:$0xff]  }
 0xff8   : > { %v3713_v45 = vpop.f32.mrf.mxu0  ;;  %v3756_v43 = vpop.f32.mrf.mxu1 }
 0xff9   : > { %6080 = vmatpush3.bf16.msra.mxu0 %v6500_v36  ;;  %6102 = vmatpush3.bf16.msra.mxu1 %v6501_v37  ;;  %v3714_v60 = vadd.f32 %v3713_v45, %v3211_v44  ;;  %v3757_v61 = vadd.f32 %v3756_v43, %v3219_v28  ;;  %v3235_v37 = vrot.slane %v7476_v54, %v3202_v56 }
 0xffa   : > { %v3715_v49 = vpop.f32.mrf.mxu0  ;;  %v3758_v52 = vpop.f32.mrf.mxu1  ;;  %6081 = vmatprep.subr.bf16.mxu0 %v6502_v40  ;;  %6103 = vmatprep.subr.bf16.mxu1 %v6503_v42  ;;  %v3712_v42 = vadd.f32 %v7506_v38, %v3207_v26  ;;  %v6526_v38 = vld [vmem:[%s6944_s4 + $0x278] sm:$0xff]  }
 0xffb   : > { %v3940_v8 = vmax.f32 %v3714_v60, 0.0  ;;  %v3942_v9 = vmax.f32 %v3757_v61, 0.0  ;;  %v3716_v33 = vadd.f32 %v3715_v49, %v3207_v26  ;;  %v3759_v36 = vadd.f32 %v3758_v52, %v3215_v27  ;;  %v6525_v49 = vld [vmem:[%s6944_s4 + $0x180] sm:$0xff]   ;;  %v6527_v60 = vld [vmem:[%s6944_s4 + $0x2f8] sm:$0xff]  }
 0xffc   : > { %v3717_v63 = vpop.f32.mrf.mxu0  ;;  %v3760_v0 = vpop.f32.mrf.mxu1  ;;  %v3939_v61 = vmax.f32 %v3712_v42, 0.0 }
 0xffd   : > { %v3718_v1 = vadd.f32 %v3717_v63, %v3211_v44  ;;  %v3761_v2 = vadd.f32 %v3760_v0, %v3219_v28  ;;  %6082 = vmatpush3.bf16.msra.mxu0 %v6504_v48  ;;  %6104 = vmatpush3.bf16.msra.mxu1 %v6505_v47  ;;  %v3755_v44 = vadd.f32 %v7508_v39, %v3215_v27  ;;  %v6524_v47 = vld [vmem:[%s6944_s4 + $0x100] sm:$0xff]   ;;  %v3955_v52 = vmax.f32 %v3716_v33, 0.0  ;;  %v6545_v33 = vld [vmem:[%s6944_s4 + $0x298] sm:$0xff]  }
 0xffe   : > { %6083 = vmatprep.subr.bf16.mxu0 %v6506_v53  ;;  %6105 = vmatprep.subr.bf16.mxu1 %v6507_v24  ;;  %v3957_v53 = vmax.f32 %v3759_v36, 0.0  ;;  %v6541_v27 = vld [vmem:[%s6944_s4 + $0x2a0] sm:$0xff]   ;;  %v6546_v36 = vld [vmem:[%s6944_s4 + $0x250] sm:$0xff]  }
 0xfff   : > { %v3956_v10 = vmax.f32 %v3718_v1, 0.0  ;;  %v3958_v11 = vmax.f32 %v3761_v2, 0.0  ;;  %v3941_v63 = vmax.f32 %v3755_v44, 0.0  ;;  %v6528_v2 = vld [vmem:[%s6944_s4 + $0x238] sm:$0xff]   ;;  %v6549_v44 = vld [vmem:[%s6944_s4 + $0x290] sm:$0xff]  }
0x1001   : > { %v3972_v13 = vpack.c.bf16 %v3956_v10, %v3940_v8  ;;  %v3974_v14 = vpack.c.bf16 %v3958_v11, %v3942_v9  ;;  %6084 = vmatpush3.bf16.msra.mxu0 %v6508_v3  ;;  %6106 = vmatpush3.bf16.msra.mxu1 %v6509_v5  ;;  %v3971_v3 = vpack.c.bf16 %v3955_v52, %v3939_v61  ;;  %v6530_v9 = vld [vmem:[%s6944_s4 + $0x270] sm:$0xff]  }
0x1002   : > { %6085 = vmatprep.subr.bf16.mxu0 %v6510_v6  ;;  %6107 = vmatprep.subr.bf16.mxu1 %v6511_v7  ;;  %v3973_v5 = vpack.c.bf16 %v3957_v53, %v3941_v63  ;;  %v6529_v7 = vld [vmem:[%s6944_s4 + $0x2b8] sm:$0xff]   ;;  %v6531_v10 = vld [vmem:[%s6944_s4 + $0x2f0] sm:$0xff]   ;;  %v3243_v52 = vrot.slane %v7476_v54, %v3210_v34  ;;  %v6556_v63 = vld [vmem:[%s6944_s4 + $0x200] sm:$0xff]  }
0x1003   : > { %5121 = vmatprep.mubr.bf16.mxu0 %v3972_v13  ;;  %5162 = vmatprep.mubr.bf16.mxu1 %v3974_v14  ;;  %v6532_v13 = vld [vmem:[%s6944_s4 + $0x230] sm:$0xff]  }
0x1004   : > { %v6533_v14 = vld [vmem:[%s6944_s4 + $0x2b0] sm:$0xff]  }
0x1005   : > { %6086 = vmatpush3.bf16.msra.mxu0 %v6512_v15  ;;  %6108 = vmatpush3.bf16.msra.mxu1 %v6513_v4  ;;  %v6534_v15 = vld [vmem:[%s6944_s4 + $0x268] sm:$0xff]  }
0x1006   : > { %v7533_v19 = vpop.f32.mrf.mxu0  ;;  %v7535_v22 = vpop.f32.mrf.mxu1  ;;  %6087 = vmatprep.subr.bf16.mxu0 %v6514_v51  ;;  %6109 = vmatprep.subr.bf16.mxu1 %v6515_v16  ;;  %v6535_v4 = vld [vmem:[%s6944_s4 + $0x2e8] sm:$0xff]  }
0x1007   : > { %v6536_v51 = vld [vmem:[%s6944_s4 + $0x228] sm:$0xff]  }
0x1008   : > { %v3799_v29 = vpop.f32.mrf.mxu0  ;;  %v3842_v50 = vpop.f32.mrf.mxu1  ;;  %v6537_v16 = vld [vmem:[%s6944_s4 + $0x2a8] sm:$0xff]  }
0x1009   : > { %6088 = vmatpush3.bf16.msra.mxu0 %v6516_v17  ;;  %6110 = vmatpush3.bf16.msra.mxu1 %v6517_v18  ;;  %v3800_v43 = vadd.f32 %v3799_v29, %v3227_v30  ;;  %v3843_v24 = vadd.f32 %v3842_v50, %v3235_v37  ;;  %v6538_v17 = vld [vmem:[%s6944_s4 + $0x260] sm:$0xff]   ;;  %v6542_v29 = vld [vmem:[%s6944_s4 + $0x258] sm:$0xff]  }
0x100a   : > { %v7552_v40 = vpop.f32.mrf.mxu0  ;;  %v7554_v32 = vpop.f32.mrf.mxu1  ;;  %6089 = vmatprep.subr.bf16.mxu0 %v6518_v23  ;;  %6111 = vmatprep.subr.bf16.mxu1 %v6519_v25  ;;  %v6539_v18 = vld [vmem:[%s6944_s4 + $0x2e0] sm:$0xff]   ;;  %v6543_v50 = vld [vmem:[%s6944_s4 + $0x2d8] sm:$0xff]  }
0x100b   : > { %v3944_v1 = vmax.f32 %v3800_v43, 0.0  ;;  %v3946_v6 = vmax.f32 %v3843_v24, 0.0  ;;  %v6540_v25 = vld [vmem:[%s6944_s4 + $0x220] sm:$0xff]   ;;  %v3223_v43 = vrot.slane %v7476_v54, %v7035_v21  ;;  %v6553_v24 = vld [vmem:[%s6944_s4 + $0x288] sm:$0xff]  }
0x100c   : > { %v3803_v28 = vpop.f32.mrf.mxu0  ;;  %v3846_v45 = vpop.f32.mrf.mxu1  ;;  %v6554_v21 = vld [vmem:[%s6944_s4 + $0x240] sm:$0xff]  }
0x100d   : > { %v3804_v56 = vadd.f32 %v3803_v28, %v3227_v30  ;;  %v3847_v48 = vadd.f32 %v3846_v45, %v3235_v37  ;;  %6090 = vmatpush3.bf16.msra.mxu0 %v6520_v59  ;;  %6112 = vmatpush3.bf16.msra.mxu1 %v6521_v31  ;;  %v6544_v59 = vld [vmem:[%s6944_s4 + $0x218] sm:$0xff]   ;;  %v6547_v37 = vld [vmem:[%s6944_s4 + $0x2d0] sm:$0xff]   ;;  %v6550_v28 = vld [vmem:[%s6944_s4 + $0x248] sm:$0xff]  }
0x100e   : > { %6091 = vmatprep.subr.bf16.mxu0 %v6522_v58  ;;  %6113 = vmatprep.subr.bf16.mxu1 %v6523_v41  ;;  %v6548_v41 = vld [vmem:[%s6944_s4 + $0x210] sm:$0xff]   ;;  %v6551_v45 = vld [vmem:[%s6944_s4 + $0x2c8] sm:$0xff]  }
0x100f   : > { %v3960_v39 = vmax.f32 %v3804_v56, 0.0  ;;  %v3962_v0 = vmax.f32 %v3847_v48, 0.0  ;;  %v3231_v56 = vrot.slane %v7476_v54, %v3198_v57  ;;  %v3251_v57 = vrot.slane %v7476_v54, %v3218_v35 }
0x1011   : > { %6092 = vmatpush3.bf16.msra.mxu0 %v6524_v47  ;;  %6114 = vmatpush3.bf16.msra.mxu1 %v6525_v49  ;;  %v3976_v8 = vpack.c.bf16 %v3960_v39, %v3944_v1  ;;  %v3978_v11 = vpack.c.bf16 %v3962_v0, %v3946_v6  ;;  %v6552_v47 = vld [vmem:[%s6944_s4 + $0x208] sm:$0xff]   ;;  %v3802_v49 = vadd.f32 %v7552_v40, %v3223_v43  ;;  %v6555_v40 = vld [vmem:[%s6944_s4 + $0x2c0] sm:$0xff]  }
0x1012   : > { %6121 = vmatprep.subr.bf16.mxu0 %v6526_v38  ;;  %6143 = vmatprep.subr.bf16.mxu1 %v6527_v60  ;;  %v3845_v38 = vadd.f32 %v7554_v32, %v3231_v56  ;;  %v3798_v60 = vadd.f32 %v7533_v19, %v3223_v43  ;;  %v3841_v34 = vadd.f32 %v7535_v22, %v3231_v56  ;;  %v6557_v32 = vld [vmem:[%s6944_s4 + $0x280] sm:$0xff]   ;;  %v6580_v43 = vld [vmem:[%s6944_s4 + $0x310] sm:$0xff]  }
0x1013   : > { %v3959_v0 = vmax.f32 %v3802_v49, 0.0  ;;  %v6581_v56 = vld [vmem:[%s6944_s4 + $0x390] sm:$0xff]   ;;  %v3239_v49 = vrot.slane %v7476_v54, %v3206_v62  ;;  %v6588_v54 = vld [vmem:[%s6944_s4 + $0x300] sm:$0xff]  }
0x1014   : > { %5122 = vmatmul.mubr.bf16.vlgmr.msra.gmra.mxu0 %v3971_v3  ;;  %5163 = vmatmul.mubr.bf16.vlgmr.msra.gmra.mxu1 %v3973_v5  ;;  %v3961_v35 = vmax.f32 %v3845_v38, 0.0  ;;  %v6559_v5 = vld [vmem:[%s6944_s4 + $0x3f8] sm:$0xff]   ;;  %v3943_v19 = vmax.f32 %v3798_v60, 0.0  ;;  %v3945_v22 = vmax.f32 %v3841_v34, 0.0 }
0x1015   : > { %6122 = vmatpush3.bf16.msra.mxu0 %v6528_v2  ;;  %5203 = vmatprep.mubr.bf16.mxu0 %v3976_v8  ;;  %v6558_v2 = vld [vmem:[%s6944_s4 + $0x378] sm:$0xff]  }
0x1016   : > { %6144 = vmatpush3.bf16.msra.mxu1 %v6529_v7  ;;  %5244 = vmatprep.mubr.bf16.mxu1 %v3978_v11  ;;  %v7576_v23 = vpop.f32.mrf.mxu0  ;;  %v7579_v26 = vpop.f32.mrf.mxu1  ;;  %v6560_v8 = vld [vmem:[%s6944_s4 + $0x338] sm:$0xff]  }
0x1017   : > { %6123 = vmatprep.subr.bf16.mxu0 %v6530_v9  ;;  %6145 = vmatprep.subr.bf16.mxu1 %v6531_v10  ;;  %v3975_v9 = vpack.c.bf16 %v3959_v0, %v3943_v19  ;;  %v6561_v11 = vld [vmem:[%s6944_s4 + $0x3b8] sm:$0xff]   ;;  %v3927_v20 = vadd.f32 %v7579_v26, %v7481_v55 }
0x1018   : > { %v3885_v30 = vpop.f32.mrf.mxu0  ;;  %v3928_v31 = vpop.f32.mrf.mxu1 }
0x1019   : > { %6124 = vmatpush3.bf16.msra.mxu0 %v6532_v13  ;;  %v3886_v1 = vadd.f32 %v3885_v30, %v3243_v52  ;;  %v3929_v3 = vadd.f32 %v3928_v31, %v3251_v57  ;;  %v3977_v13 = vpack.c.bf16 %v3961_v35, %v3945_v22  ;;  %v6570_v30 = vld [vmem:[%s6944_s4 + $0x360] sm:$0xff]   ;;  %v3949_v34 = vmax.f32 %v3927_v20, 0.0 }
0x101a   : > { %6146 = vmatpush3.bf16.msra.mxu1 %v6533_v14  ;;  %6125 = vmatprep.subr.bf16.mxu0 %v6534_v15  ;;  %v7588_v58 = vpop.f32.mrf.mxu0  ;;  %v7591_v42 = vpop.f32.mrf.mxu1  ;;  %v6562_v15 = vld [vmem:[%s6944_s4 + $0x370] sm:$0xff]   ;;  %v6572_v31 = vld [vmem:[%s6944_s4 + $0x320] sm:$0xff]  }
0x101b   : > { %6147 = vmatprep.subr.bf16.mxu1 %v6535_v4  ;;  %v3948_v10 = vmax.f32 %v3886_v1, 0.0  ;;  %v3950_v14 = vmax.f32 %v3929_v3, 0.0  ;;  %v3931_v38 = vadd.f32 %v7591_v42, %v7481_v55 }
0x101c   : > { %v3889_v48 = vpop.f32.mrf.mxu0  ;;  %v3932_v53 = vpop.f32.mrf.mxu1 }
0x101d   : > { %6126 = vmatpush3.bf16.msra.mxu0 %v6536_v51  ;;  %v3890_v39 = vadd.f32 %v3889_v48, %v3243_v52  ;;  %v3933_v61 = vadd.f32 %v3932_v53, %v3251_v57  ;;  %v6563_v51 = vld [vmem:[%s6944_s4 + $0x3f0] sm:$0xff]   ;;  %v6582_v48 = vld [vmem:[%s6944_s4 + $0x348] sm:$0xff]   ;;  %v3888_v53 = vadd.f32 %v7588_v58, %v3239_v49  ;;  %v6587_v57 = vld [vmem:[%s6944_s4 + $0x3c0] sm:$0xff]   ;;  %v3965_v60 = vmax.f32 %v3931_v38, 0.0 }
0x101e   : > { %6148 = vmatpush3.bf16.msra.mxu1 %v6537_v16  ;;  %6127 = vmatprep.subr.bf16.mxu0 %v6538_v17  ;;  %v6564_v17 = vld [vmem:[%s6944_s4 + $0x330] sm:$0xff]   ;;  %v6584_v52 = vld [vmem:[%s6944_s4 + $0x308] sm:$0xff]   ;;  %v6589_v58 = vld [vmem:[%s6944_s4 + $0x380] sm:$0xff]  }
0x101f   : > { %6149 = vmatprep.subr.bf16.mxu1 %v6539_v18  ;;  %v3964_v6 = vmax.f32 %v3890_v39, 0.0  ;;  %v3966_v7 = vmax.f32 %v3933_v61, 0.0  ;;  %v6565_v18 = vld [vmem:[%s6944_s4 + $0x3b0] sm:$0xff]   ;;  %v3963_v62 = vmax.f32 %v3888_v53, 0.0  ;;  %v3981_v42 = vpack.c.bf16 %v3965_v60, %v3949_v34  ;;  %v5952_v34 = vld [vmem:[%s1112_s17] ss:$0 sm:$0xff] }
0x1021   : > { %6128 = vmatpush3.bf16.msra.mxu0 %v6540_v25  ;;  %v3980_v4 = vpack.c.bf16 %v3964_v6, %v3948_v10  ;;  %v3982_v16 = vpack.c.bf16 %v3966_v7, %v3950_v14  ;;  %v6566_v25 = vld [vmem:[%s6944_s4 + $0x368] sm:$0xff]  }
0x1022   : > { %6150 = vmatpush3.bf16.msra.mxu1 %v6541_v27  ;;  %6129 = vmatprep.subr.bf16.mxu0 %v6542_v29  ;;  %v6567_v27 = vld [vmem:[%s6944_s4 + $0x3e8] sm:$0xff]  }
0x1023   : > { %6151 = vmatprep.subr.bf16.mxu1 %v6543_v50  ;;  %v6568_v29 = vld [vmem:[%s6944_s4 + $0x328] sm:$0xff]  }
0x1024   : > { %v6569_v50 = vld [vmem:[%s6944_s4 + $0x3a8] sm:$0xff]  }
0x1025   : > { %6130 = vmatpush3.bf16.msra.mxu0 %v6544_v59  ;;  %v6571_v59 = vld [vmem:[%s6944_s4 + $0x3e0] sm:$0xff]  }
0x1026   : > { %6152 = vmatpush3.bf16.msra.mxu1 %v6545_v33  ;;  %6131 = vmatprep.subr.bf16.mxu0 %v6546_v36  ;;  %v6573_v33 = vld [vmem:[%s6944_s4 + $0x3a0] sm:$0xff]   ;;  %v6574_v36 = vld [vmem:[%s6944_s4 + $0x358] sm:$0xff]  }
0x1027   : > { %6153 = vmatprep.subr.bf16.mxu1 %v6547_v37  ;;  %v6575_v37 = vld [vmem:[%s6944_s4 + $0x3d8] sm:$0xff]  }
0x1029   : > { %6132 = vmatpush3.bf16.msra.mxu0 %v6548_v41  ;;  %v6576_v41 = vld [vmem:[%s6944_s4 + $0x318] sm:$0xff]  }
0x102a   : > { %6154 = vmatpush3.bf16.msra.mxu1 %v6549_v44  ;;  %6133 = vmatprep.subr.bf16.mxu0 %v6550_v28  ;;  %v6577_v44 = vld [vmem:[%s6944_s4 + $0x398] sm:$0xff]   ;;  %v6578_v28 = vld [vmem:[%s6944_s4 + $0x350] sm:$0xff]  }
0x102b   : > { %6155 = vmatprep.subr.bf16.mxu1 %v6551_v45  ;;  %v6579_v45 = vld [vmem:[%s6944_s4 + $0x3d0] sm:$0xff]  }
0x102d   : > { %6134 = vmatpush3.bf16.msra.mxu0 %v6552_v47  ;;  %v6583_v47 = vld [vmem:[%s6944_s4 + $0x3c8] sm:$0xff]  }
0x102e   : > { %6156 = vmatpush3.bf16.msra.mxu1 %v6553_v24  ;;  %6135 = vmatprep.subr.bf16.mxu0 %v6554_v21  ;;  %v6585_v24 = vld [vmem:[%s6944_s4 + $0x388] sm:$0xff]   ;;  %v6586_v21 = vld [vmem:[%s6944_s4 + $0x340] sm:$0xff]  }
0x102f   : > { %6157 = vmatprep.subr.bf16.mxu1 %v6555_v40  ;;  %v3884_v40 = vadd.f32 %v7576_v23, %v3239_v49 }
0x1031   : > { %6136 = vmatpush3.bf16.msra.mxu0 %v6556_v63  ;;  %v3947_v39 = vmax.f32 %v3884_v40, 0.0 }
0x1032   : > { %6158 = vmatpush3.bf16.msra.mxu1 %v6557_v32  ;;  %6165 = vmatprep.subr.bf16.mxu0 %v6558_v2 }
0x1033   : > { %6187 = vmatprep.subr.bf16.mxu1 %v6559_v5  ;;  %v3979_v61 = vpack.c.bf16 %v3963_v62, %v3947_v39 }
0x1034   : > { %5204 = vmatmul.mubr.bf16.vlgmr.msra.gmra.mxu0 %v3975_v9 }
0x1035   : > { %5245 = vmatmul.mubr.bf16.vlgmr.msra.gmra.mxu1 %v3977_v13  ;;  %6166 = vmatpush3.bf16.msra.mxu0 %v6560_v8 }
0x1036   : > { %5285 = vmatprep.mubr.bf16.mxu0 %v3980_v4  ;;  %6188 = vmatpush3.bf16.msra.mxu1 %v6561_v11 }
0x1037   : > { %5326 = vmatprep.mubr.bf16.mxu1 %v3982_v16  ;;  %6167 = vmatprep.subr.bf16.mxu0 %v6562_v15 }
0x1038   : > { %6189 = vmatprep.subr.bf16.mxu1 %v6563_v51 }
0x1039   : > { %6168 = vmatpush3.bf16.msra.mxu0 %v6564_v17 }
0x103a   : > { %6190 = vmatpush3.bf16.msra.mxu1 %v6565_v18  ;;  %6169 = vmatprep.subr.bf16.mxu0 %v6566_v25 }
0x103b   : > { %6191 = vmatprep.subr.bf16.mxu1 %v6567_v27 }
0x103d   : > { %6170 = vmatpush3.bf16.msra.mxu0 %v6568_v29 }
0x103e   : > { %6192 = vmatpush3.bf16.msra.mxu1 %v6569_v50  ;;  %6171 = vmatprep.subr.bf16.mxu0 %v6570_v30 }
0x103f   : > { %6193 = vmatprep.subr.bf16.mxu1 %v6571_v59 }
0x1041   : > { %6172 = vmatpush3.bf16.msra.mxu0 %v6572_v31 }
0x1042   : > { %6194 = vmatpush3.bf16.msra.mxu1 %v6573_v33  ;;  %6173 = vmatprep.subr.bf16.mxu0 %v6574_v36 }
0x1043   : > { %6195 = vmatprep.subr.bf16.mxu1 %v6575_v37 }
0x1045   : > { %6174 = vmatpush3.bf16.msra.mxu0 %v6576_v41 }
0x1046   : > { %6196 = vmatpush3.bf16.msra.mxu1 %v6577_v44  ;;  %6175 = vmatprep.subr.bf16.mxu0 %v6578_v28 }
0x1047   : > { %6197 = vmatprep.subr.bf16.mxu1 %v6579_v45 }
0x1049   : > { %6176 = vmatpush3.bf16.msra.mxu0 %v6580_v43 }
0x104a   : > { %6198 = vmatpush3.bf16.msra.mxu1 %v6581_v56  ;;  %6177 = vmatprep.subr.bf16.mxu0 %v6582_v48 }
0x104b   : > { %6199 = vmatprep.subr.bf16.mxu1 %v6583_v47 }
0x104d   : > { %6178 = vmatpush3.bf16.msra.mxu0 %v6584_v52 }
0x104e   : > { %6200 = vmatpush3.bf16.msra.mxu1 %v6585_v24  ;;  %6179 = vmatprep.subr.bf16.mxu0 %v6586_v21 }
0x104f   : > { %6201 = vmatprep.subr.bf16.mxu1 %v6587_v57 }
0x1051   : > { %6180 = vmatpush3.bf16.msra.mxu0 %v6588_v54 }
0x1052   : > { %6202 = vmatpush3.bf16.msra.mxu1 %v6589_v58 }
0x1054   : > { %5286 = vmatmul.mubr.bf16.vlgmr.msra.gmra.mxu0 %v3979_v61 }
0x1055   : > { %5327 = vmatmul.mubr.bf16.vlgmr.msra.gmra.mxu1 %v3981_v42 }
0x10b4   : > { %v6049_v23 = vpop.f32.mrf.mxu0  ;;  %v6071_v63 = vpop.f32.mrf.mxu1 }
0x10b6   : > { %v6050_v0 = vpop.f32.mrf.mxu0  ;;  %v6072_v55 = vpop.f32.mrf.mxu1 }
0x10b7   : > { %v6051_v10 = vadd.f32 %v6050_v0, %v6049_v23  ;;  %v6073_v11 = vadd.f32 %v6072_v55, %v6071_v63 }
0x10b8   : > { %v6052_v26 = vpop.f32.mrf.mxu0  ;;  %v6074_v1 = vpop.f32.mrf.mxu1 }
0x10b9   : > { %v5083_v4 = vadd.f32 %v6073_v11, %v6051_v10 }
0x10ba   : > { %v6053_v32 = vpop.f32.mrf.mxu0  ;;  %v6075_v35 = vpop.f32.mrf.mxu1 }
0x10bb   : > { %v6054_v51 = vadd.f32 %v6053_v32, %v6052_v26  ;;  %v6076_v16 = vadd.f32 %v6075_v35, %v6074_v1 }
0x10bd   : > { %v5086_v29 = vadd.f32 %v6076_v16, %v6054_v51 }
0x10d4   : > { %v6093_v2 = vpop.f32.mrf.mxu0  ;;  %v6115_v3 = vpop.f32.mrf.mxu1 }
0x10d6   : > { %v6094_v5 = vpop.f32.mrf.mxu0  ;;  %v6116_v19 = vpop.f32.mrf.mxu1 }
0x10d7   : > { %v6095_v15 = vadd.f32 %v6094_v5, %v6093_v2  ;;  %v6117_v50 = vadd.f32 %v6116_v19, %v6115_v3 }
0x10d8   : > { %v6096_v6 = vpop.f32.mrf.mxu0  ;;  %v6118_v22 = vpop.f32.mrf.mxu1 }
0x10d9   : > { %v5124_v25 = vadd.f32 %v6095_v15, %v5083_v4 }
0x10da   : > { %v6097_v7 = vpop.f32.mrf.mxu0  ;;  %v6119_v9 = vpop.f32.mrf.mxu1 }
0x10db   : > { %v6098_v27 = vadd.f32 %v6097_v7, %v6096_v6  ;;  %v5165_v33 = vadd.f32 %v6117_v50, %v5124_v25  ;;  %v6120_v37 = vadd.f32 %v6119_v9, %v6118_v22 }
0x10dd   : > { %v5127_v36 = vadd.f32 %v6098_v27, %v5086_v29 }
0x10df   : > { %v5168_v43 = vadd.f32 %v6120_v37, %v5127_v36 }
0x10f4   : > { %v6137_v8 = vpop.f32.mrf.mxu0 }
0x10f5   : > { %v6159_v13 = vpop.f32.mrf.mxu1 }
0x10f6   : > { %v6138_v14 = vpop.f32.mrf.mxu0 }
0x10f7   : > { %v6160_v17 = vpop.f32.mrf.mxu1  ;;  %v6139_v30 = vadd.f32 %v6138_v14, %v6137_v8 }
0x10f8   : > { %v6140_v18 = vpop.f32.mrf.mxu0  ;;  %v6161_v56 = vadd.f32 %v6160_v17, %v6159_v13 }
0x10f9   : > { %v6162_v59 = vpop.f32.mrf.mxu1  ;;  %v5206_v41 = vadd.f32 %v6139_v30, %v5165_v33 }
0x10fa   : > { %v6141_v31 = vpop.f32.mrf.mxu0 }
0x10fb   : > { %v6142_v44 = vadd.f32 %v6141_v31, %v6140_v18  ;;  %v6163_v28 = vpop.f32.mrf.mxu1  ;;  %v5247_v49 = vadd.f32 %v6161_v56, %v5206_v41 }
0x10fc   : > { %v6164_v38 = vadd.f32 %v6163_v28, %v6162_v59 }
0x10fd   : > { %v5209_v52 = vadd.f32 %v6142_v44, %v5168_v43 }
0x10ff   : > { %v5250_v62 = vadd.f32 %v6164_v38, %v5209_v52 }
0x1114   : > { %v6181_v45 = vpop.f32.mrf.mxu0 }
0x1115   : > { %v6203_v48 = vpop.f32.mrf.mxu1 }
0x1116   : > { %v6182_v47 = vpop.f32.mrf.mxu0 }
0x1117   : > { %v6183_v53 = vadd.f32 %v6182_v47, %v6181_v45  ;;  %v6204_v24 = vpop.f32.mrf.mxu1 }
0x1118   : > { %v6184_v21 = vpop.f32.mrf.mxu0  ;;  %v6205_v40 = vadd.f32 %v6204_v24, %v6203_v48 }
0x1119   : > { %v5288_v57 = vadd.f32 %v6183_v53, %v5247_v49  ;;  %v6206_v20 = vpop.f32.mrf.mxu1 }
0x111a   : > { %v6185_v54 = vpop.f32.mrf.mxu0 }
0x111b   : > { %v5329_v58 = vadd.f32 %v6205_v40, %v5288_v57  ;;  %v6186_v60 = vadd.f32 %v6185_v54, %v6184_v21  ;;  %v6207_v39 = vpop.f32.mrf.mxu1 }
0x111c   : > { %v6208_v23 = vadd.f32 %v6207_v39, %v6206_v20 }
0x111d   : > { %v5335_v61 = vadd.f32 %v5329_v58, %v7309_v12  ;;  %v5291_v42 = vadd.f32 %v6186_v60, %v5250_v62 }
0x111f   : > { %v5344_v63 = vadd.f32 %v5952_v34, %v5335_v61  ;;  %v5332_v0 = vadd.f32 %v6208_v23, %v5291_v42 }
0x1121   : > { %5346 = vst.msk [vmem:[#allocation2] sm:$0xff] %vm1295_vm3, %v5344_v63  ;;  %v5336_v55 = vadd.f32 %v5332_v0, %v7316_v46  ;;  %5351 = sbr.rel (%p5953_p5) target bundleno = 4721 (0x1271), region = 136 }
0x1123   : > { %v5345_v26 = vadd.f32 %v5952_v34, %v5336_v55 }
0x1125   : > { %5347 = vst.msk [vmem:[#allocation2 + $0x8] sm:$0xff] %vm1295_vm3, %v5345_v26 }
0x1126   : > { %v5354_v1 = vsel %vm1295_vm3, %v5344_v63, 0.0  ;;  %v5357_v32 = vsel %vm1295_vm3, %v5345_v26, 0.0  ;;  %v5954_v59 = vld [vmem:[%s7791_s30] ss:$0 sm:$0xff] }
0x1127   : > { %5355 = vadd.xlane.f32.xlu0 %v5354_v1  ;;  %v5955_v33 = vld [vmem:[%s7792_s11] ss:$0 sm:$0xff] }
0x112b   : > { %5358 = vadd.xlane.f32.xlu0 %v5357_v32 }
0x11b0   : > { %v5356_v12 = vpop.xlane.xlu0 %5355 }
0x11b1   : > { %v5360_v2 = vmul.f32 0.015625, %v5356_v12 }
0x11b3   : > { %v5362_v35 = vsub.f32 %v5344_v63, %v5360_v2 }
0x11b4   : > { %v5359_v3 = vpop.xlane.xlu0 %5358 }
0x11b5   : > { %v5361_v5 = vmul.f32 0.015625, %v5359_v3  ;;  %v5364_v19 = vmul.f32 %v5362_v35, %v5362_v35 }
0x11b7   : > { %v5363_v6 = vsub.f32 %v5345_v26, %v5361_v5  ;;  %v5366_v46 = vsel %vm1295_vm3, %v5364_v19, 0.0 }
0x11b8   : > { %5367 = vadd.xlane.f32.xlu1 %v5366_v46 }
0x11b9   : > { %v5365_v22 = vmul.f32 %v5363_v6, %v5363_v6 }
0x11bb   : > { %v5369_v7 = vsel %vm1295_vm3, %v5365_v22, 0.0 }
0x11bc   : > { %5370 = vadd.xlane.f32.xlu1 %v5369_v7 }
0x1241   : > { %v5368_v8 = vpop.xlane.xlu1 %5367 }
0x1242   : > { %v5372_v9 = vmul.f32 0.015873017, %v5368_v8 }
0x1244   : > { %6648 = vrsqrt.f32 %v5372_v9  ;;  %vm5376_vm5 = vcmp.eq.f32.partialorder %v5372_v9, inf  ;;  %v5379_v15 = vand.u32 2147483648, %v5372_v9  ;;  %vm5378_vm6 = vcmp.eq.f32.partialorder %v5372_v9, 0.0 }
0x1245   : > { %v5371_v10 = vpop.xlane.xlu1 %5370 }
0x1246   : > { %v5373_v11 = vmul.f32 0.015873017, %v5371_v10 }
0x1248   : > { %6650 = vrsqrt.f32 %v5373_v11  ;;  %vm5383_vm7 = vcmp.eq.f32.partialorder %v5373_v11, inf  ;;  %v5386_v25 = vand.u32 2147483648, %v5373_v11  ;;  %vm5385_vm8 = vcmp.eq.f32.partialorder %v5373_v11, 0.0 }
0x1251   : > { %v6649_v13 = vpop.eup %6648 }
0x1252   : > { %v5375_v14 = vmul.f32 %v6649_v13, %v5372_v9 }
0x1254   : > { %v5377_v4 = vsel %vm5376_vm5, %v5372_v9, %v5375_v14 }
0x1255   : > { %v6651_v51 = vpop.eup %6650  ;;  %v5380_v16 = vsel %vm5378_vm6, %v5379_v15, %v5377_v4 }
0x1256   : > { %v5388_v17 = vadd.f32 1e-06, %v5380_v16  ;;  %v5382_v18 = vmul.f32 %v6651_v51, %v5373_v11 }
0x1258   : > { %6652 = vrcp.f32 %v5388_v17  ;;  %v5384_v27 = vsel %vm5383_vm7, %v5373_v11, %v5382_v18 }
0x1259   : > { %v5387_v29 = vsel %vm5385_vm8, %v5386_v25, %v5384_v27 }
0x125a   : > { %v5389_v50 = vadd.f32 1e-06, %v5387_v29 }
0x125c   : > { %6654 = vrcp.f32 %v5389_v50 }
0x1265   : > { %v6653_v30 = vpop.eup %6652 }
0x1266   : > { %v5391_v31 = vmul.f32 %v6653_v30, %v5362_v35 }
0x1268   : > { %v5400_v36 = vmul.f32 %v5954_v59, %v5391_v31 }
0x1269   : > { %v6655_v37 = vpop.eup %6654 }
0x126a   : > { %v5408_v41 = vadd.f32 %v5955_v33, %v5400_v36  ;;  %v5393_v44 = vmul.f32 %v6655_v37, %v5363_v6 }
0x126c   : > { %5410 = vst.msk [vmem:[#allocation3] sm:$0xff] %vm1295_vm3, %v5408_v41  ;;  %v5401_v28 = vmul.f32 %v5954_v59, %v5393_v44 }
0x126e   : > { %v5409_v45 = vadd.f32 %v5955_v33, %v5401_v28 }
0x1270   : > { %5411 = vst.msk [vmem:[#allocation3 + $0x8] sm:$0xff] %vm1295_vm3, %v5409_v45 }
0x1271 PF: > { %s7793_s10 = sld [smem:[#allocation7_spill]]  ;;  %s6698_s26 = smov [#allocation3]  }
0x1272   : > { %s5418_s2 = sshll.u32 %s6698_s26, 4  ;;  %s5419_s2 = int_to_ptr.vmem [resolvable:$true] %s5418_s2 }
0x1273   : > { %s6656_s25 = scalar_lea.vmem %s5419_s2, 256  ;;  %p6663_p10 = scmp.lt.s32.totalorder %s5419_s2, %s5419_s2 }
0x1274   : > { %p6657_p7 = scmp.ne.s32.totalorder %s5419_s2, %s6656_s25  ;;  %p6664_p11 = scmp.lt.s32.totalorder %s6656_s25, %s6656_s25 }
0x1276   : > { %p6665_p12 = por %p6664_p11, %p6663_p10 }
0x1277   : > { %p6397_p6 = scmp.eq.s32.totalorder %s7793_s10, 1 }
0x1279   : > { %p6658_p8 = pnand %p6657_p7, %p6397_p6 }
0x127b   : > { %p6659_p9 = pneg %p6658_p8 }
0x127d   : > { %p6666_p13 = pnand %p6665_p12, %p6659_p9 }
0x127f   : > { %6669 = shalt.err (!%p6666_p13)
}
0x1280   : > { %s6699_s1 = smov 128   ;;  %s6700_s0 = smov 8  }
0x1281   : > { %s7794_s15 = sld [smem:[#allocation29_spill]] }
0x1287   : > { %6394 = dma.vmem_to_hbm [thread:$0]  (%p6397_p6), %s5419_s2, 256, %s7794_s15, [#allocation4], %s6699_s1, %s6699_s1, %s6700_s0  }
0x1288   : > { %6685 = dma.done.wait (%p6397_p6), [#allocation4], 256  }
0x1289   : > { %6687 = vsyncadd (%p6397_p6), [#allocation4], 4294967040 }
0x128a PF: > { %s7795_s23 = sld [smem:[#allocation6_spill]] }
0x1290   : > { %s38_s7 = sadd.s32 1, %s7795_s23  }
0x1291   : > { %p35_p0 = scmp.ge.s32.totalorder %s38_s7, 4  }
0x1293   :  { %37 = sbr.rel (!%p35_p0) target bundleno = 23 (0x17), region = 220 }
0x1298   :  { %5434 = vsyncpa [#allocation4], 1 }
0x1299   :  { %5436 = vsyncpa [#allocation4 + $0x1], 1 }

</bundles_post_ra>
